<compile_context>
chip_gen: v7x
topology: tpu7x:2x2x1
jax: 0.10.0
libtpu: 0.0.40
codegen_flags: <defaults>
</compile_context>

<pallas_src>
import numpy as np
import jax
import jax.numpy as jnp
from jax.experimental import pallas as pl
from jax.experimental.pallas import tpu as pltpu


_SQRT_HALF = 0.7071067811865476


def _erf_approx(z):
    # Abramowitz & Stegun 7.1.26 (|err| <= 1.5e-7 vs exact erf), f32 math.
    # 1/(1+p|z|) goes to the EUP via approx reciprocal; sign is folded with one
    # select at the end instead of materializing a sign vector and multiplying.
    p = 0.3275911
    a1, a2, a3, a4, a5 = (0.254829592, -0.284496736, 1.421413741,
                          -1.453152027, 1.061405429)
    za = jnp.abs(z)
    t = pl.reciprocal(1.0 + p * za, approx=True)
    poly = ((((a5 * t + a4) * t + a3) * t + a2) * t + a1) * t
    e = 1.0 - poly * jnp.exp(-za * za)
    return jnp.where(z < 0.0, -e, e)


def _gelu_exact(x):
    # erf-based GELU, matching torch.nn.GELU() default (approximate='none').
    return 0.5 * x * (1.0 + _erf_approx(x * _SQRT_HALF))


# ----------------------------- Pallas kernel --------------------------------

def _ffn_kernel(x_ref, w1_ref, b1_ref, w2_ref, b2_ref, o_ref):
    # Fused Linear -> GELU -> Linear on one lane-packed (tm, 128) row tile.
    # bf16 MXU operands, f32 accumulation and f32 elementwise math.
    x = x_ref[...].astype(jnp.bfloat16)
    h = jnp.dot(x, w1_ref[...], preferred_element_type=jnp.float32)
    h = _gelu_exact(h + b1_ref[...])
    y = jnp.dot(h.astype(jnp.bfloat16), w2_ref[...],
                preferred_element_type=jnp.float32) + b2_ref[...]
    o_ref[...] = y.astype(o_ref.dtype)


def pallas_feedforward(x2d, w1, b1, w2, b2, *, max_tile_rows=1024, min_grid=2):
    """Fused MLP on a (M, dim) activation matrix."""
    M, dim = x2d.shape
    hidden = w1.shape[1]

    # Lane packing factor: pack `pack` consecutive rows into one 128-lane row.
    pack = 128 // dim if (dim < 128 and 128 % dim == 0) else 1
    lane_w = dim * pack          # packed activation width   (demo: 128)
    hid_w = hidden * pack        # packed hidden width        (demo: 512)

    # Block-diagonal packed weights (bf16 operands) and tiled biases (f32).
    eye = jnp.eye(pack, dtype=w1.dtype)
    w1_blk = jnp.kron(eye, w1).astype(jnp.bfloat16)              # (lane_w, hid_w)
    w2_blk = jnp.kron(eye, w2).astype(jnp.bfloat16)              # (hid_w, lane_w)
    b1_blk = jnp.tile(b1, pack).reshape(1, hid_w).astype(jnp.float32)
    b2_blk = jnp.tile(b2, pack).reshape(1, lane_w).astype(jnp.float32)

    # Pack rows (pure reshape when M % pack == 0; pad only if actually needed).
    M4 = pl.cdiv(M, pack) * pack
    xp = x2d if M4 == M else jnp.pad(x2d, ((0, M4 - M), (0, 0)))
    Mp = M4 // pack
    xpk = xp.reshape(Mp, lane_w)

    # Row tile: as large as a conservative VMEM budget allows, but keep at
    # least `min_grid` grid steps so the "parallel" axis can shard across both
    # v7x TensorCores (v5e/v6e are single-TC; one extra step costs ~0.35 us).
    grid_n = max(min_grid if Mp >= 2 * 8 else 1, pl.cdiv(Mp, max_tile_rows))
    tm = pl.cdiv(pl.cdiv(Mp, grid_n), 8) * 8      # sublane-aligned rows/step
    Mpp = tm * grid_n
    if Mpp != Mp:
        xpk = jnp.pad(xpk, ((0, Mpp - Mp), (0, 0)))

    out = pl.pallas_call(
        _ffn_kernel,
        out_shape=jax.ShapeDtypeStruct((Mpp, lane_w), x2d.dtype),
        grid=(grid_n,),
        in_specs=[
            pl.BlockSpec((tm, lane_w), lambda i: (i, 0)),      # packed rows
            pl.BlockSpec((lane_w, hid_w), lambda i: (0, 0)),   # W1 blk: resident
            pl.BlockSpec((1, hid_w), lambda i: (0, 0)),        # b1: resident
            pl.BlockSpec((hid_w, lane_w), lambda i: (0, 0)),   # W2 blk: resident
            pl.BlockSpec((1, lane_w), lambda i: (0, 0)),       # b2: resident
        ],
        out_specs=pl.BlockSpec((tm, lane_w), lambda i: (i, 0)),
        compiler_params=pltpu.CompilerParams(
            dimension_semantics=("parallel",)),
    )(xpk, w1_blk, b1_blk, w2_blk, b2_blk)

    y = out.reshape(Mpp * pack, dim)
    return y[:M] if Mpp * pack != M else y


def feedforward3d_forward(x, params):
    """FeedForward3D.forward: net(x) = Linear -> GELU -> Linear, then dropout.

    Default dropout=0.0 is nn.Identity (no-op).
    """
    # TODO(synk): training-mode dropout (p > 0) is not implemented; default p=0 is Identity.
    lead = x.shape[:-1]
    dim = x.shape[-1]
    y = pallas_feedforward(x.reshape(-1, dim), params["w1"], params["b1"],
                           params["w2"], params["b2"])
    return y.reshape(*lead, dim)


# --------------------------- pure-JAX reference ------------------------------

def reference_forward(x, params):
    h = x @ params["w1"] + params["b1"]
    h = jax.nn.gelu(h, approximate=False)   # exact erf GELU, like nn.GELU()
    return h @ params["w2"] + params["b2"]


# --------------------------------- main --------------------------------------

if __name__ == "__main__":
    dim, hidden_dim = 32, 128
    b, nx, ny, nz = 2, 8, 8, 8   # channels-last 3D volume, as SwinUnet feeds it

    key = jax.random.PRNGKey(0)
    k1, k2, k3, k4, k5 = jax.random.split(key, 5)
    params = {
        "w1": jax.random.normal(k1, (dim, hidden_dim), jnp.float32) * 0.1,
        "b1": jax.random.normal(k2, (hidden_dim,), jnp.float32) * 0.01,
        "w2": jax.random.normal(k3, (hidden_dim, dim), jnp.float32) * 0.1,
        "b2": jax.random.normal(k4, (dim,), jnp.float32) * 0.01,
    }
    x = jax.random.normal(k5, (b, nx, ny, nz, dim), jnp.float32)

    fwd = jax.jit(feedforward3d_forward)
    out = jax.block_until_ready(fwd(x, params))
    assert out.shape == (b, nx, ny, nz, dim)

    ref = jax.block_until_ready(reference_forward(x, params))
    # Tolerance sized for bf16 MXU operands with f32 accumulation (~1e-3-level
    # rounding on these magnitudes) plus the approx-reciprocal erf path.
    np.testing.assert_allclose(np.asarray(out), np.asarray(ref),
                               atol=1e-2, rtol=1e-2)
    print("KERNEL_OK")
</pallas_src>

<mosaic_0001>
module attributes {stable_mosaic.version = 11 : i64} {
  func.func @_ffn_kernel(%arg0: i32, %arg1: memref<128x128xf32, #tpu.memory_space<vmem>>, %arg2: memref<128x512xbf16, #tpu.memory_space<vmem>>, %arg3: memref<1x512xf32, #tpu.memory_space<vmem>>, %arg4: memref<512x128xbf16, #tpu.memory_space<vmem>>, %arg5: memref<1x128xf32, #tpu.memory_space<vmem>>, %arg6: memref<128x128xf32, #tpu.memory_space<vmem>>) attributes {dimension_semantics = [#tpu.dimension_semantics<parallel>], iteration_bounds = array<i64: 2>, scalar_prefetch = 0 : i64, scratch_operands = 0 : i64, tpu.core_type = #tpu.core_type<tc>, window_params = [{transform_indices = @transform_0, window_bounds = array<i64: 128, 128>}, {pipeline_mode = #tpu.pipeline_mode<synchronous>, transform_indices = @transform_1, window_bounds = array<i64: 128, 512>}, {pipeline_mode = #tpu.pipeline_mode<synchronous>, transform_indices = @transform_2, window_bounds = array<i64: 1, 512>}, {pipeline_mode = #tpu.pipeline_mode<synchronous>, transform_indices = @transform_3, window_bounds = array<i64: 512, 128>}, {pipeline_mode = #tpu.pipeline_mode<synchronous>, transform_indices = @transform_4, window_bounds = array<i64: 1, 128>}, {transform_indices = @transform_5, window_bounds = array<i64: 128, 128>}]} {
    %c0 = arith.constant 0 : index
    %c0_0 = arith.constant 0 : index
    %0 = vector.load %arg1[%c0, %c0_0] : memref<128x128xf32, #tpu.memory_space<vmem>>, vector<128x128xf32>
    %1 = arith.truncf %0 : vector<128x128xf32> to vector<128x128xbf16>
    %c0_1 = arith.constant 0 : index
    %c0_2 = arith.constant 0 : index
    %2 = vector.load %arg2[%c0_1, %c0_2] : memref<128x512xbf16, #tpu.memory_space<vmem>>, vector<128x512xbf16>
    %cst = arith.constant dense<0.000000e+00> : vector<128x512xf32>
    %3 = tpu.matmul %1, %2, %cst {dimension_numbers = #tpu.dot_dimension_numbers<[1], [0], [0], [1], [0, 0, 1, 1], [], []>} : vector<128x128xbf16>, vector<128x512xbf16>, vector<128x512xf32> -> vector<128x512xf32>
    %c0_3 = arith.constant 0 : index
    %c0_4 = arith.constant 0 : index
    %4 = vector.load %arg3[%c0_3, %c0_4] : memref<1x512xf32, #tpu.memory_space<vmem>>, vector<1x512xf32>
    %5 = vector.broadcast %4 : vector<1x512xf32> to vector<128x512xf32>
    %6 = arith.addf %3, %5 : vector<128x512xf32>
    %cst_5 = arith.constant 5.000000e-01 : f32
    %7 = vector.broadcast %cst_5 : f32 to vector<128x512xf32>
    %8 = arith.mulf %7, %6 : vector<128x512xf32>
    %cst_6 = arith.constant 0.707106769 : f32
    %9 = vector.broadcast %cst_6 : f32 to vector<128x512xf32>
    %10 = arith.mulf %6, %9 : vector<128x512xf32>
    %11 = math.absf %10 : vector<128x512xf32>
    %cst_7 = arith.constant 0.327591091 : f32
    %12 = vector.broadcast %cst_7 : f32 to vector<128x512xf32>
    %13 = arith.mulf %12, %11 : vector<128x512xf32>
    %cst_8 = arith.constant 1.000000e+00 : f32
    %14 = vector.broadcast %cst_8 : f32 to vector<128x512xf32>
    %15 = arith.addf %14, %13 : vector<128x512xf32>
    %16 = tpu.reciprocal %15 {approx = true} : vector<128x512xf32> -> vector<128x512xf32>
    %cst_9 = arith.constant 1.06140542 : f32
    %17 = vector.broadcast %cst_9 : f32 to vector<128x512xf32>
    %18 = arith.mulf %17, %16 : vector<128x512xf32>
    %cst_10 = arith.constant -1.45315206 : f32
    %19 = vector.broadcast %cst_10 : f32 to vector<128x512xf32>
    %20 = arith.addf %18, %19 : vector<128x512xf32>
    %21 = arith.mulf %20, %16 : vector<128x512xf32>
    %cst_11 = arith.constant 1.42141378 : f32
    %22 = vector.broadcast %cst_11 : f32 to vector<128x512xf32>
    %23 = arith.addf %21, %22 : vector<128x512xf32>
    %24 = arith.mulf %23, %16 : vector<128x512xf32>
    %cst_12 = arith.constant -0.284496725 : f32
    %25 = vector.broadcast %cst_12 : f32 to vector<128x512xf32>
    %26 = arith.addf %24, %25 : vector<128x512xf32>
    %27 = arith.mulf %26, %16 : vector<128x512xf32>
    %cst_13 = arith.constant 0.254829586 : f32
    %28 = vector.broadcast %cst_13 : f32 to vector<128x512xf32>
    %29 = arith.addf %27, %28 : vector<128x512xf32>
    %30 = arith.mulf %29, %16 : vector<128x512xf32>
    %cst_14 = arith.constant 0.000000e+00 : f32
    %31 = vector.broadcast %cst_14 : f32 to vector<128x512xf32>
    %32 = arith.subf %31, %11 : vector<128x512xf32>
    %33 = arith.mulf %32, %11 : vector<128x512xf32>
    %34 = math.exp %33 : vector<128x512xf32>
    %35 = arith.mulf %30, %34 : vector<128x512xf32>
    %cst_15 = arith.constant 1.000000e+00 : f32
    %36 = vector.broadcast %cst_15 : f32 to vector<128x512xf32>
    %37 = arith.subf %36, %35 : vector<128x512xf32>
    %cst_16 = arith.constant 0.000000e+00 : f32
    %38 = vector.broadcast %cst_16 : f32 to vector<128x512xf32>
    %39 = arith.cmpf olt, %10, %38 : vector<128x512xf32>
    %cst_17 = arith.constant 0.000000e+00 : f32
    %40 = vector.broadcast %cst_17 : f32 to vector<128x512xf32>
    %41 = arith.subf %40, %37 : vector<128x512xf32>
    %42 = arith.select %39, %41, %37 : vector<128x512xi1>, vector<128x512xf32>
    %cst_18 = arith.constant 1.000000e+00 : f32
    %43 = vector.broadcast %cst_18 : f32 to vector<128x512xf32>
    %44 = arith.addf %43, %42 : vector<128x512xf32>
    %45 = arith.mulf %8, %44 : vector<128x512xf32>
    %46 = arith.truncf %45 : vector<128x512xf32> to vector<128x512xbf16>
    %c0_19 = arith.constant 0 : index
    %c0_20 = arith.constant 0 : index
    %47 = vector.load %arg4[%c0_19, %c0_20] : memref<512x128xbf16, #tpu.memory_space<vmem>>, vector<512x128xbf16>
    %cst_21 = arith.constant dense<0.000000e+00> : vector<128x128xf32>
    %48 = tpu.matmul %46, %47, %cst_21 {dimension_numbers = #tpu.dot_dimension_numbers<[1], [0], [0], [1], [0, 0, 1, 1], [], []>} : vector<128x512xbf16>, vector<512x128xbf16>, vector<128x128xf32> -> vector<128x128xf32>
    %c0_22 = arith.constant 0 : index
    %c0_23 = arith.constant 0 : index
    %49 = vector.load %arg5[%c0_22, %c0_23] : memref<1x128xf32, #tpu.memory_space<vmem>>, vector<1x128xf32>
    %50 = vector.broadcast %49 : vector<1x128xf32> to vector<128x128xf32>
    %51 = arith.addf %48, %50 : vector<128x128xf32>
    %c0_24 = arith.constant 0 : index
    %c0_25 = arith.constant 0 : index
    %52 = vector.load %arg6[%c0_24, %c0_25] : memref<128x128xf32, #tpu.memory_space<vmem>>, vector<128x128xf32>
    tpu.vector_store %arg6[%c0_24, %c0_25], %51 {strides = array<i32>} : memref<128x128xf32, #tpu.memory_space<vmem>>, vector<128x128xf32>,
    return
  }
  func.func @transform_0(%arg0: i32) -> (i32, i32) {
    %c0_i32 = arith.constant 0 : i32
    %c0_i32_0 = arith.constant 0 : i32
    return %arg0, %c0_i32 : i32, i32
  }
  func.func @transform_1(%arg0: i32) -> (i32, i32) {
    %c0_i32 = arith.constant 0 : i32
    %c0_i32_0 = arith.constant 0 : i32
    %c0_i32_1 = arith.constant 0 : i32
    return %c0_i32, %c0_i32_0 : i32, i32
  }
  func.func @transform_2(%arg0: i32) -> (i32, i32) {
    %c0_i32 = arith.constant 0 : i32
    %c0_i32_0 = arith.constant 0 : i32
    %c0_i32_1 = arith.constant 0 : i32
    return %c0_i32, %c0_i32_0 : i32, i32
  }
  func.func @transform_3(%arg0: i32) -> (i32, i32) {
    %c0_i32 = arith.constant 0 : i32
    %c0_i32_0 = arith.constant 0 : i32
    %c0_i32_1 = arith.constant 0 : i32
    return %c0_i32, %c0_i32_0 : i32, i32
  }
  func.func @transform_4(%arg0: i32) -> (i32, i32) {
    %c0_i32 = arith.constant 0 : i32
    %c0_i32_0 = arith.constant 0 : i32
    %c0_i32_1 = arith.constant 0 : i32
    return %c0_i32, %c0_i32_0 : i32, i32
  }
  func.func @transform_5(%arg0: i32) -> (i32, i32) {
    %c0_i32 = arith.constant 0 : i32
    %c0_i32_0 = arith.constant 0 : i32
    return %arg0, %c0_i32 : i32, i32
  }
}

</mosaic_0001>

<bundles_post_ra>
// kernel: tile.13
= control target key start
LH: loop header
LB: loop body
LE: loop exit
PB: predicated region body
PF: predicated region fallthrough
CT: control target
= control target key end

     0   :  { %2 = vsyncpa [#allocation1], 0  ;;  %s44_s6 = smov [#allocation0]   ;;  %s70_s0 = inlined_call_operand.hbm [shape: f32[128], index: 0, kind: input, shape index: {}]   ;;  %s71_s1 = inlined_call_operand.vmem [shape: f32[4,128], index: 1, kind: output, shape index: {}]  }
   0x1   :  { %s9_s7 = sshll.u32 %s44_s6, 4  ;;  %s20_s10 = scalar_lea.hbm %s70_s0, 16  ;;  %s10_s7 = int_to_ptr.vmem [resolvable:$true] %s9_s7 }
   0x2   :  { %p21_p0 = scmp.ne.s32.totalorder %s70_s0, %s20_s10  ;;  %p24_p1 = scmp.lt.u32.totalorder %s20_s10, %s70_s0 }
   0x4   :  { %p26_p2 = pnand %p24_p1, %p21_p0 }
   0x6   :  { %29 = shalt.err (!%p26_p2)
}
   0x7   :  { %s30_s15 = scalar_lea.vmem %s10_s7, 16  ;;  %s34_s16 = scalar_lea.vmem %s10_s7, 32 }
   0x8   :  { %p31_p3 = scmp.ne.s32.totalorder %s10_s7, %s30_s15  ;;  %p35_p4 = scmp.lt.s32.totalorder %s10_s7, %s10_s7 }
   0x9   :  { %p36_p5 = scmp.lt.s32.totalorder %s34_s16, %s30_s15 }
   0xb   :  { %p37_p6 = por %p36_p5, %p35_p4 }
   0xd   :  { %p38_p7 = pnand %p37_p6, %p31_p3 }
   0xf   :  { %41 = shalt.err (!%p38_p7)
}
  0x10   :  { %12 = dma.hbm_to_vmem [thread:$0]  %s70_s0, 16, %s10_s7, [#allocation1]  }
  0x11   :  { %42 = dma.done.wait [#allocation1], 16  }
  0x12   :  { %43 = vsyncadd [#allocation1], 4294967280  ;;  %v16_v0 = vld [vmem:[#allocation0] ss:$0 sm:$0xff] }
  0x13   :  { %17 = vst [vmem:[%s71_s1] sm:$0xf] %v16_v0 }
  0x14   :  { %18 = vsyncpa [#allocation1], 1 }

// kernel: tile.18
= control target key start
LH: loop header
LB: loop body
LE: loop exit
PB: predicated region body
PF: predicated region fallthrough
CT: control target
= control target key end

     0   :  { %s22_s0 = inlined_call_operand.vmem [shape: f32[32], index: 0, kind: input, shape index: {}]   ;;  %s23_s1 = inlined_call_operand.vmem [shape: f32[4,32], index: 1, kind: output, shape index: {}]  }
   0x1   :  { %v4_v0 = vld [vmem:[%s22_s0] ss:$0 sm:$0xff] }
   0x2   :  { %5 = vst [vmem:[%s23_s1] sm:$0xf] %v4_v0 }

// kernel: tile.19
= control target key start
LH: loop header
LB: loop body
LE: loop exit
PB: predicated region body
PF: predicated region fallthrough
CT: control target
= control target key end

     0   :  { %vm7_vm0 = vcmask 261120   ;;  %s37_s8 = smov 32   ;;  %s38_s9 = smov 64   ;;  %vm13_vm1 = vcmask 1048320   ;;  %vm19_vm2 = vcmask 785920   ;;  %vm25_vm3 = vcmask 523520   ;;  %s55_s0 = inlined_call_operand.vmem [shape: f32[4,32], index: 0, kind: input, shape index: {}]   ;;  %s56_s1 = inlined_call_operand.vmem [shape: f32[1,128], index: 1, kind: output, shape index: {}]  }
   0x1   :  { %v4_v0 = vld [vmem:[%s55_s0] sm:$0xf]  ;;  %s36_s0 = smov 96  }
   0x2   :  { %5 = vst [vmem:[#allocation1] sm:$0xf] %v4_v0 }
   0x9   :  { %v10_v1 = vld [vmem:[#allocation1 + $0x3] sm:$0x1]   ;;  %v22_v2 = vld [vmem:[#allocation1 + $0x1] sm:$0x1]   ;;  %v6_v3 = vld [vmem:[#allocation1] sm:$0x1]  }
   0xa   :  { %11 = vrot.lane.b32.xlu0 %v10_v1, %s36_s0  ;;  %23 = vrot.lane.b32.xlu1 %v22_v2, %s37_s8  ;;  %v16_v4 = vld [vmem:[#allocation1 + $0x2] sm:$0x1]   ;;  %8 = vst.msk [vmem:[#allocation0] sm:$0x1] %vm7_vm0, %v6_v3  }
   0xe   :  { %17 = vrot.lane.b32.xlu0 %v16_v4, %s38_s9 }
  0x7c   :  { %v12_v5 = vpop.permute.xlu0 %11   ;;  %v24_v6 = vpop.permute.xlu1 %23  }
  0x7d   :  { %14 = vst.msk [vmem:[#allocation0] sm:$0x1] %vm13_vm1, %v12_v5  }
  0x80   :  { %v18_v7 = vpop.permute.xlu0 %17  }
  0x81   :  { %20 = vst.msk [vmem:[#allocation0] sm:$0x1] %vm19_vm2, %v18_v7  }
  0x82   :  { %26 = vst.msk [vmem:[#allocation0] sm:$0x1] %vm25_vm3, %v24_v6  }
  0x89   :  { %v30_v8 = vld [vmem:[#allocation0] sm:$0x1] }
  0x8a   :  { %32 = vst [vmem:[%s56_s1] sm:$0x1] %v30_v8 }

// kernel: feedforward3d_forward.1
= control target key start
LH: loop header
LB: loop body
LE: loop exit
PB: predicated region body
PF: predicated region fallthrough
CT: control target
= control target key end

     0   :  { %s3506_s18 = smov 0   ;;  %s5810_s0 = inlined_call_operand.vmem [shape: f32[256,128], index: 0, kind: input, shape index: {}]   ;;  %s5811_s1 = inlined_call_operand.vmem [shape: bf16[128,512], index: 1, kind: input, shape index: {}]   ;;  %s5812_s2 = inlined_call_operand.vmem [shape: f32[1,512], index: 2, kind: input, shape index: {}]   ;;  %s5813_s3 = inlined_call_operand.vmem [shape: bf16[512,128], index: 3, kind: input, shape index: {}]   ;;  %s5814_s4 = inlined_call_operand.vmem [shape: f32[1,128], index: 4, kind: input, shape index: {}]   ;;  %s5815_s5 = inlined_call_operand.vmem [shape: f32[256,128], index: 5, kind: output, shape index: {}]  }
   0x1 LB: > { %s2918_s19 = sadd.s32 4294967295, %s3473_s18   ;;  %p2922_p0 = scmp.ge.s32.totalorder %s3473_s18, 1  ;;  %s3473_s18 = sphi %s3506_s18, %s15_s18  }
   0x2   : > { %p188_p1 = scmp.lt.s32.totalorder %s3473_s18, 3 }
   0x4   : > { %p189_p2 = pnand %p2922_p0, %p188_p1 }
   0x6   : > { %192 = sbr.rel (%p189_p2) target bundleno = 949 (0x3b5), region = 40 }
   0xd   : > { %v3131_v0 = vld [vmem:[%s5811_s1 + $0x4] ss:$16 sps:$4 sm:$0xff]   ;;  %v3133_v1 = vld [vmem:[%s5811_s1 + $0xc] ss:$16 sps:$4 sm:$0xff]   ;;  %v3475_v2 = vmov 0   ;;  %s2923_s25 = sshll.u32 %s2918_s19, 4 }
   0xe   : > { %499 = vmatprep.mubr.bf16.mxu0 %v3475_v2  ;;  %612 = vmatprep.mubr.bf16.mxu1 %v3475_v2  ;;  %v3135_v3 = vld [vmem:[%s5811_s1] ss:$16 sps:$4 sm:$0xff]   ;;  %v3136_v4 = vld [vmem:[%s5811_s1 + $0x8] ss:$16 sps:$4 sm:$0xff]   ;;  %v3137_v5 = vld [vmem:[%s5811_s1 + $0x24] ss:$16 sps:$4 sm:$0xff]  }
   0xf   : > { %467 = vmatprep.subr.bf16.mxu0 %v3131_v0  ;;  %580 = vmatprep.subr.bf16.mxu1 %v3133_v1  ;;  %v3139_v6 = vld [vmem:[%s5811_s1 + $0x2c] ss:$16 sps:$4 sm:$0xff]   ;;  %v3141_v7 = vld [vmem:[%s5811_s1 + $0x20] ss:$16 sps:$4 sm:$0xff]   ;;  %v3142_v8 = vld [vmem:[%s5811_s1 + $0x28] ss:$16 sps:$4 sm:$0xff]  }
  0x10   : > { %468 = vmatpush1.bf16.msra.mxu0 %v3135_v3  ;;  %581 = vmatpush1.bf16.msra.mxu1 %v3136_v4  ;;  %v3143_v9 = vld [vmem:[%s5811_s1 + $0x44] ss:$16 sps:$4 sm:$0xff]   ;;  %v3145_v10 = vld [vmem:[%s5811_s1 + $0x4c] ss:$16 sps:$4 sm:$0xff]   ;;  %v3147_v11 = vld [vmem:[%s5811_s1 + $0x40] ss:$16 sps:$4 sm:$0xff]  }
  0x11   : > { %469 = vmatprep.subr.bf16.mxu0 %v3137_v5  ;;  %582 = vmatprep.subr.bf16.mxu1 %v3139_v6  ;;  %v3148_v12 = vld [vmem:[%s5811_s1 + $0x48] ss:$16 sps:$4 sm:$0xff]   ;;  %v3149_v13 = vld [vmem:[%s5811_s1 + $0x64] ss:$16 sps:$4 sm:$0xff]   ;;  %v3151_v14 = vld [vmem:[%s5811_s1 + $0x6c] ss:$16 sps:$4 sm:$0xff]   ;;  %v287_v5 = vlaneseq }
  0x12   : > { %v3153_v15 = vld [vmem:[%s5811_s1 + $0x60] ss:$16 sps:$4 sm:$0xff]   ;;  %v3154_v16 = vld [vmem:[%s5811_s1 + $0x68] ss:$16 sps:$4 sm:$0xff]   ;;  %v3155_v17 = vld [vmem:[%s5811_s1 + $0x84] ss:$16 sps:$4 sm:$0xff]  }
  0x13   : > { %p217_p3 = scmp.lt.s32.totalorder %s2923_s25, 31  ;;  %v3157_v18 = vld [vmem:[%s5811_s1 + $0x8c] ss:$16 sps:$4 sm:$0xff]   ;;  %v3159_v19 = vld [vmem:[%s5811_s1 + $0x80] ss:$16 sps:$4 sm:$0xff]   ;;  %v288_v6 = vshrl.u32 %v287_v5, 7 }
  0x14   : > { %470 = vmatpush1.bf16.msra.mxu0 %v3141_v7  ;;  %583 = vmatpush1.bf16.msra.mxu1 %v3142_v8  ;;  %v3160_v20 = vld [vmem:[%s5811_s1 + $0x88] ss:$16 sps:$4 sm:$0xff]   ;;  %v3161_v21 = vld [vmem:[%s5811_s1 + $0xa4] ss:$16 sps:$4 sm:$0xff]   ;;  %v3163_v22 = vld [vmem:[%s5811_s1 + $0xac] ss:$16 sps:$4 sm:$0xff]  }
  0x15   : > { %471 = vmatprep.subr.bf16.mxu0 %v3143_v9  ;;  %584 = vmatprep.subr.bf16.mxu1 %v3145_v10  ;;  %s6069_s25 = smov (!%p217_p3, %s2923_s25), 31  ;;  %v3165_v23 = vld [vmem:[%s5811_s1 + $0xa0] ss:$16 sps:$4 sm:$0xff]   ;;  %v3166_v24 = vld [vmem:[%s5811_s1 + $0xa8] ss:$16 sps:$4 sm:$0xff]   ;;  %v289_v8 = vsub.s32 0, %v288_v6 }
  0x16   : > { %s2924_s22 = sshll.u32 %s6069_s25, 3  ;;  %v3167_v25 = vld [vmem:[%s5811_s1 + $0xc4] ss:$16 sps:$4 sm:$0xff]   ;;  %v3169_v26 = vld [vmem:[%s5811_s1 + $0xcc] ss:$16 sps:$4 sm:$0xff]   ;;  %v297_v9 = vsub.s32 2, %v288_v6 }
  0x17   : > { %s3604_s30 = scalar_lea.vmem %s5810_s0, %s2924_s22  ;;  %v3171_v27 = vld [vmem:[%s5811_s1 + $0xc0] ss:$16 sps:$4 sm:$0xff]   ;;  %v3172_v28 = vld [vmem:[%s5811_s1 + $0xc8] ss:$16 sps:$4 sm:$0xff]   ;;  %v3173_v29 = vld [vmem:[%s5811_s1 + $0xe4] ss:$16 sps:$4 sm:$0xff]   ;;  %s5775_s24 = scalar_lea.vmem %s5815_s5, %s2924_s22 }
  0x18   : > { %472 = vmatpush1.bf16.msra.mxu0 %v3147_v11  ;;  %585 = vmatpush1.bf16.msra.mxu1 %v3148_v12  ;;  %v3175_v30 = vld [vmem:[%s5811_s1 + $0xec] ss:$16 sps:$4 sm:$0xff]   ;;  %v3177_v31 = vld [vmem:[%s5811_s1 + $0xe0] ss:$16 sps:$4 sm:$0xff]   ;;  %v3178_v32 = vld [vmem:[%s5811_s1 + $0xe8] ss:$16 sps:$4 sm:$0xff]  }
  0x19   : > { %473 = vmatprep.subr.bf16.mxu0 %v3149_v13  ;;  %586 = vmatprep.subr.bf16.mxu1 %v3151_v14  ;;  %v229_v33 = vld [vmem:[%s3604_s30] sm:$0xff]  ;;  %v230_v34 = vld [vmem:[%s3604_s30 + $0x8] sm:$0xff]  ;;  %v231_v40 = vld [vmem:[%s3604_s30 + $0x10] sm:$0xff]  ;;  %v293_v13 = vsub.s32 1, %v288_v6  ;;  %v301_v14 = vsub.s32 3, %v288_v6 }
  0x1a   : > { %v3179_v35 = vld [vmem:[%s5813_s3 + $0x40] sm:$0xff]   ;;  %v245_v37 = vpack.c.bf16 %v230_v34, %v229_v33  ;;  %v232_v41 = vld [vmem:[%s3604_s30 + $0x18] sm:$0xff]  ;;  %v234_v44 = vld [vmem:[%s3604_s30 + $0x28] sm:$0xff] }
  0x1b   : > { %v3181_v36 = vld [vmem:[%s5813_s3 + $0xc0] sm:$0xff]   ;;  %v246_v42 = vpack.c.bf16 %v232_v41, %v231_v40  ;;  %v235_v46 = vld [vmem:[%s3604_s30 + $0x30] sm:$0xff]  ;;  %v236_v47 = vld [vmem:[%s3604_s30 + $0x38] sm:$0xff] }
  0x1c   : > { %474 = vmatpush1.bf16.msra.mxu0 %v3153_v15  ;;  %587 = vmatpush1.bf16.msra.mxu1 %v3154_v16  ;;  %v3180_v38 = vld [vmem:[%s5813_s3] sm:$0xff]   ;;  %v248_v48 = vpack.c.bf16 %v236_v47, %v235_v46  ;;  %v238_v50 = vld [vmem:[%s3604_s30 + $0x48] sm:$0xff]  ;;  %v239_v52 = vld [vmem:[%s3604_s30 + $0x50] sm:$0xff] }
  0x1d   : > { %475 = vmatprep.subr.bf16.mxu0 %v3155_v17  ;;  %588 = vmatprep.subr.bf16.mxu1 %v3157_v18  ;;  %v3182_v39 = vld [vmem:[%s5813_s3 + $0x80] sm:$0xff]   ;;  %v240_v53 = vld [vmem:[%s3604_s30 + $0x58] sm:$0xff]  ;;  %v242_v56 = vld [vmem:[%s3604_s30 + $0x68] sm:$0xff] }
  0x1e   : > { %v233_v43 = vld [vmem:[%s3604_s30 + $0x20] sm:$0xff]  ;;  %v250_v54 = vpack.c.bf16 %v240_v53, %v239_v52  ;;  %v243_v58 = vld [vmem:[%s3604_s30 + $0x70] sm:$0xff]  ;;  %v244_v59 = vld [vmem:[%s3604_s30 + $0x78] sm:$0xff] }
  0x1f   : > { %v247_v45 = vpack.c.bf16 %v234_v44, %v233_v43  ;;  %v237_v49 = vld [vmem:[%s3604_s30 + $0x40] sm:$0xff]  ;;  %v252_v60 = vpack.c.bf16 %v244_v59, %v243_v58  ;;  %v3183_v61 = vld [vmem:[%s5813_s3 + $0x48] sm:$0xff]   ;;  %v3187_v1 = vld [vmem:[%s5813_s3 + $0x50] sm:$0xff]  }
  0x20   : > { %476 = vmatpush1.bf16.msra.mxu0 %v3159_v19  ;;  %589 = vmatpush1.bf16.msra.mxu1 %v3160_v20  ;;  %v249_v51 = vpack.c.bf16 %v238_v50, %v237_v49  ;;  %v241_v55 = vld [vmem:[%s3604_s30 + $0x60] sm:$0xff]  ;;  %v3184_v62 = vld [vmem:[%s5813_s3 + $0x8] sm:$0xff]   ;;  %v3189_v3 = vld [vmem:[%s5813_s3 + $0xd0] sm:$0xff]  }
  0x21   : > { %477 = vmatprep.subr.bf16.mxu0 %v3161_v21  ;;  %590 = vmatprep.subr.bf16.mxu1 %v3163_v22  ;;  %v251_v57 = vpack.c.bf16 %v242_v56, %v241_v55  ;;  %v3185_v63 = vld [vmem:[%s5813_s3 + $0xc8] sm:$0xff]   ;;  %v3190_v4 = vld [vmem:[%s5813_s3 + $0x90] sm:$0xff]   ;;  %v3191_v7 = vld [vmem:[%s5813_s3 + $0x58] sm:$0xff]  }
  0x22   : > { %v3186_v0 = vld [vmem:[%s5813_s3 + $0x88] sm:$0xff]   ;;  %v285_v10 = vld [vmem:[%s5812_s2] sm:$0xf]  ;;  %v3192_v40 = vld [vmem:[%s5813_s3 + $0x18] sm:$0xff]  }
  0x23   : > { %v3696_v11 = vrot.slane %v285_v10, %v289_v8  ;;  %v3698_v12 = vrot.slane %v285_v10, %v297_v9  ;;  %v3706_v19 = vrot.slane %v285_v10, %v293_v13  ;;  %v3193_v13 = vld [vmem:[%s5813_s3 + $0xd8] sm:$0xff]  }
  0x24   : > { %478 = vmatpush1.bf16.msra.mxu0 %v3165_v23  ;;  %591 = vmatpush1.bf16.msra.mxu1 %v3166_v24 }
  0x25   : > { %479 = vmatprep.subr.bf16.mxu0 %v3167_v25  ;;  %592 = vmatprep.subr.bf16.mxu1 %v3169_v26  ;;  %v3714_v26 = vrot.slane %v285_v10, %v301_v14 }
  0x28   : > { %480 = vmatpush1.bf16.msra.mxu0 %v3171_v27  ;;  %593 = vmatpush1.bf16.msra.mxu1 %v3172_v28 }
  0x29   : > { %481 = vmatprep.subr.bf16.mxu0 %v3173_v29  ;;  %594 = vmatprep.subr.bf16.mxu1 %v3175_v30 }
  0x2c   : > { %482 = vmatpush1.bf16.msra.mxu0 %v3177_v31  ;;  %595 = vmatpush1.bf16.msra.mxu1 %v3178_v32 }
  0x2d   : > { %2994 = vmatprep.subr.bf16.mxu0 %v3179_v35  ;;  %3058 = vmatprep.subr.bf16.mxu1 %v3181_v36 }
  0x2f   : > { %500 = vmatmul.mubr.bf16.vlgmr.msra.gmra.mrb[0].mxu0 %v245_v37  ;;  %613 = vmatmul.mubr.bf16.vlgmr.msra.gmra.mrb[0].mxu1 %v245_v37 }
  0x30   : > { %509 = vmatprep.mubr.bf16.mxu0 %v3475_v2  ;;  %622 = vmatprep.mubr.bf16.mxu1 %v3475_v2 }
  0x31   : > { %2995 = vmatpush3.bf16.msra.mxu0 %v3180_v38  ;;  %3059 = vmatpush3.bf16.msra.mxu1 %v3182_v39 }
  0x32   : > { %2996 = vmatprep.subr.bf16.mxu0 %v3183_v61  ;;  %3060 = vmatprep.subr.bf16.mxu1 %v3185_v63 }
  0x35   : > { %2997 = vmatpush3.bf16.msra.mxu0 %v3184_v62  ;;  %3061 = vmatpush3.bf16.msra.mxu1 %v3186_v0 }
  0x36   : > { %2998 = vmatprep.subr.bf16.mxu0 %v3187_v1  ;;  %3062 = vmatprep.subr.bf16.mxu1 %v3189_v3 }
  0x37   : > { %510 = vmatmul.mubr.bf16.gmra.mrb[4].mxu0 %v246_v42  ;;  %623 = vmatmul.mubr.bf16.gmra.mrb[4].mxu1 %v246_v42 }
  0x38   : > { %519 = vmatprep.mubr.bf16.mxu0 %v3475_v2  ;;  %632 = vmatprep.mubr.bf16.mxu1 %v3475_v2 }
  0x39   : > { %3063 = vmatpush3.bf16.msra.mxu1 %v3190_v4 }
  0x3a   : > { %3064 = vmatprep.subr.bf16.mxu1 %v3193_v13 }
  0x3f   : > { %520 = vmatmul.mubr.bf16.gmra.mrb[8].mxu0 %v247_v45  ;;  %633 = vmatmul.mubr.bf16.gmra.mrb[8].mxu1 %v247_v45 }
  0x40   : > { %529 = vmatprep.mubr.bf16.mxu0 %v3475_v2  ;;  %642 = vmatprep.mubr.bf16.mxu1 %v3475_v2 }
  0x47   : > { %530 = vmatmul.mubr.bf16.gmra.mrb[12].mxu0 %v248_v48  ;;  %643 = vmatmul.mubr.bf16.gmra.mrb[12].mxu1 %v248_v48 }
  0x48   : > { %539 = vmatprep.mubr.bf16.mxu0 %v3475_v2  ;;  %652 = vmatprep.mubr.bf16.mxu1 %v3475_v2 }
  0x4f   : > { %540 = vmatmul.mubr.bf16.gmra.mrb[16].mxu0 %v249_v51  ;;  %653 = vmatmul.mubr.bf16.gmra.mrb[16].mxu1 %v249_v51 }
  0x50   : > { %549 = vmatprep.mubr.bf16.mxu0 %v3475_v2  ;;  %662 = vmatprep.mubr.bf16.mxu1 %v3475_v2 }
  0x57   : > { %550 = vmatmul.mubr.bf16.gmra.mrb[20].mxu0 %v250_v54  ;;  %663 = vmatmul.mubr.bf16.gmra.mrb[20].mxu1 %v250_v54 }
  0x58   : > { %559 = vmatprep.mubr.bf16.mxu0 %v3475_v2  ;;  %672 = vmatprep.mubr.bf16.mxu1 %v3475_v2 }
  0x5f   : > { %560 = vmatmul.mubr.bf16.gmra.mrb[24].mxu0 %v251_v57  ;;  %673 = vmatmul.mubr.bf16.gmra.mrb[24].mxu1 %v251_v57 }
  0x60   : > { %569 = vmatprep.mubr.bf16.mxu0 %v3475_v2  ;;  %682 = vmatprep.mubr.bf16.mxu1 %v3475_v2  ;;  %v3188_v2 = vld [vmem:[%s5813_s3 + $0x10] sm:$0xff]  }
  0x61   : > { %2999 = vmatpush3.bf16.msra.mxu0 %v3188_v2 }
  0x62   : > { %3000 = vmatprep.subr.bf16.mxu0 %v3191_v7 }
  0x65   : > { %3001 = vmatpush3.bf16.msra.mxu0 %v3192_v40 }
  0x67   : > { %570 = vmatmul.mubr.bf16.gmra.mrb[28].mxu0 %v252_v60  ;;  %683 = vmatmul.mubr.bf16.gmra.mrb[28].mxu1 %v252_v60 }
 0x102   : > { %v501_v15 = vpop.f32.mrb[0].mxu0  ;;  %v614_v16 = vpop.f32.mrb[0].mxu1 }
 0x103   : > { %v3701_v17 = vadd.f32 %v501_v15, %v3696_v11  ;;  %v3704_v18 = vadd.f32 %v614_v16, %v3698_v12  ;;  %v503_v20 = vpop.f32.mrb[1].mxu0  ;;  %v616_v21 = vpop.f32.mrb[1].mxu1 }
 0x104   : > { %v505_v22 = vpop.f32.mrb[2].mxu0  ;;  %v618_v23 = vpop.f32.mrb[2].mxu1  ;;  %v3719_v29 = vadd.f32 %v503_v20, %v3706_v19  ;;  %v3722_v32 = vadd.f32 %v616_v21, %v3714_v26 }
 0x105   : > { %v3709_v24 = vmul.f32 0.70710677, %v3701_v17  ;;  %v3712_v25 = vmul.f32 0.70710677, %v3704_v18  ;;  %v507_v36 = vpop.f32.mrb[3].mxu0  ;;  %v620_v37 = vpop.f32.mrb[3].mxu1  ;;  %v3736_v42 = vadd.f32 %v505_v22, %v3696_v11  ;;  %v3743_v45 = vadd.f32 %v618_v23, %v3698_v12 }
 0x106   : > { %v3725_v35 = vmul.f32 0.70710677, %v3719_v29  ;;  %v3733_v41 = vmul.f32 0.70710677, %v3722_v32  ;;  %v3756_v50 = vadd.f32 %v507_v36, %v3706_v19  ;;  %v3772_v56 = vadd.f32 %v620_v37, %v3714_v26 }
 0x107   : > { %v821_v27 = vand.u32 2147483647, %v3709_v24  ;;  %v823_v28 = vand.u32 2147483647, %v3712_v25  ;;  %v3753_v49 = vmul.f32 0.70710677, %v3736_v42 }
 0x108   : > { %v3750_v48 = vand.u32 2147483647, %v3725_v35  ;;  %v3763_v53 = vmul.f32 0.70710677, %v3743_v45  ;;  %v3766_v54 = vand.u32 2147483647, %v3733_v41 }
 0x109   : > { %v885_v30 = vmul.f32 0.3275911, %v821_v27  ;;  %v887_v31 = vmul.f32 0.3275911, %v823_v28  ;;  %v3769_v55 = vand.u32 2147483647, %v3753_v49 }
 0x10a   : > { %v511_v38 = vpop.f32.mrb[4].mxu0  ;;  %v3727_v39 = vpop.f32.mrb[4].mxu1  ;;  %v1653_v57 = vsub.f32 0.0, %v821_v27  ;;  %v3775_v58 = vand.u32 2147483647, %v3763_v53  ;;  %v1655_v1 = vsub.f32 0.0, %v823_v28 }
 0x10b   : > { %v949_v33 = vadd.f32 1.0, %v885_v30  ;;  %v951_v34 = vadd.f32 1.0, %v887_v31  ;;  %v3738_v43 = vpop.f32.mrb[5].mxu0  ;;  %v3740_v44 = vpop.f32.mrb[5].mxu1  ;;  %v3778_v59 = vmul.f32 0.70710677, %v3756_v50  ;;  %v3823_v40 = vadd.f32 %v511_v38, %v3696_v11 }
 0x10c   : > { %v3745_v46 = vpop.f32.mrb[6].mxu0  ;;  %v3747_v47 = vpop.f32.mrb[6].mxu1  ;;  %v886_v61 = vmul.f32 0.3275911, %v3750_v48  ;;  %v889_v62 = vmul.f32 0.3275911, %v3769_v55  ;;  %v1717_v9 = vmul.f32 %v1653_v57, %v821_v27  ;;  %v1719_v27 = vmul.f32 %v1655_v1, %v823_v28 }
 0x10d   : > { %3211 = vrcp.f32 %v949_v33  ;;  %v3758_v51 = vpop.f32.mrb[7].mxu0  ;;  %v3760_v52 = vpop.f32.mrb[7].mxu1  ;;  %v891_v2 = vmul.f32 0.3275911, %v3775_v58  ;;  %v3790_v3 = vand.u32 2147483647, %v3778_v59 }
 0x10e   : > { %3213 = vrcp.f32 %v951_v34  ;;  %v953_v5 = vadd.f32 1.0, %v889_v62  ;;  %v3795_v6 = vmul.f32 0.70710677, %v3772_v56  ;;  %v950_v16 = vadd.f32 1.0, %v886_v61  ;;  %v3194_v34 = vld [vmem:[%s5813_s3 + $0x98] sm:$0xff]   ;;  %5859 = vst [vmem:[#allocation8_spill] sm:$0xff] %v3823_v40 }
 0x10f   : > { %v955_v10 = vadd.f32 1.0, %v891_v2  ;;  %v888_v20 = vmul.f32 0.3275911, %v3766_v54  ;;  %v890_v33 = vmul.f32 0.3275911, %v3790_v3  ;;  %3065 = vmatpush3.bf16.msra.mxu1 %v3194_v34  ;;  %v1657_v38 = vsub.f32 0.0, %v3769_v55 }
 0x110   : > { %3215 = vrcp.f32 %v953_v5  ;;  %v3815_v30 = vand.u32 2147483647, %v3795_v6  ;;  %v1781_v37 = vmul.f32 1.442695, %v1717_v9  ;;  %v1785_v5 = vmul.f32 1.442695, %v1719_v27 }
 0x111   : > { %3217 = vrcp.f32 %v955_v10  ;;  %v952_v62 = vadd.f32 1.0, %v888_v20  ;;  %v954_v13 = vadd.f32 1.0, %v890_v33  ;;  %vm2037_vm0 = vcmp.lt.f32.partialorder %v3709_v24, 0.0 }
 0x112   : > { %v3780_v60 = vpop.f32.mrb[8].mxu0  ;;  %v3784_v63 = vpop.f32.mrb[8].mxu1  ;;  %3219 = vrcp.f32 %v950_v16  ;;  %v892_v10 = vmul.f32 0.3275911, %v3815_v30  ;;  %v3837_v16 = vmul.f32 0.70710677, %v3823_v40 }
 0x113   : > { %v3786_v0 = vpop.f32.mrb[9].mxu0  ;;  %v3792_v4 = vpop.f32.mrb[9].mxu1  ;;  %3221 = vpow2.f32 %v1781_v37  ;;  %vm2039_vm1 = vcmp.lt.f32.partialorder %v3712_v25, 0.0  ;;  %vm2041_vm2 = vcmp.lt.f32.partialorder %v3753_v49, 0.0  ;;  %vm2043_vm3 = vcmp.lt.f32.partialorder %v3763_v53, 0.0 }
 0x114   : > { %5853 = vst [vmem:[#allocation2_spill] sm:$0xff] %v3786_v0  ;;  %5854 = vst [vmem:[#allocation3_spill] sm:$0xff] %v3792_v4  ;;  %v3797_v7 = vpop.f32.mrb[10].mxu0  ;;  %v3799_v8 = vpop.f32.mrb[10].mxu1  ;;  %3223 = vrcp.f32 %v952_v62  ;;  %v956_v27 = vadd.f32 1.0, %v892_v10  ;;  %v3195_v10 = vld [vmem:[%s5813_s3 + $0x60] sm:$0xff]   ;;  %v3920_v49 = vadd.f32 %v3738_v43, %v3706_v19 }
 0x115   : > { %5855 = vst [vmem:[#allocation4_spill] sm:$0xff] %v3797_v7  ;;  %5856 = vst [vmem:[#allocation5_spill] sm:$0xff] %v3799_v8  ;;  %v3804_v14 = vpop.f32.mrb[11].mxu0  ;;  %v3809_v21 = vpop.f32.mrb[11].mxu1  ;;  %3225 = vpow2.f32 %v1785_v5  ;;  %v3849_v62 = vand.u32 2147483647, %v3837_v16  ;;  %3002 = vmatprep.subr.bf16.mxu0 %v3195_v10 }
 0x116   : > { %5857 = vst [vmem:[#allocation6_spill] sm:$0xff] %v3804_v14  ;;  %5858 = vst [vmem:[#allocation7_spill] sm:$0xff] %v3809_v21  ;;  %3227 = vrcp.f32 %v954_v13  ;;  %vm2038_vm4 = vcmp.lt.f32.partialorder %v3725_v35, 0.0  ;;  %vm2040_vm5 = vcmp.lt.f32.partialorder %v3733_v41, 0.0  ;;  %vm2042_vm6 = vcmp.lt.f32.partialorder %v3778_v59, 0.0 }
 0x117   : > { %v3806_v15 = vpop.eup %3211  ;;  %5863 = vst [vmem:[#allocation12_spill] sm:$0xff] %v3837_v16  ;;  %3229 = vrcp.f32 %v956_v27  ;;  %v893_v21 = vmul.f32 0.3275911, %v3849_v62  ;;  %v3897_v16 = vadd.f32 %v3727_v39, %v3698_v12  ;;  %vm2044_vm7 = vcmp.lt.f32.partialorder %v3795_v6, 0.0 }
 0x118   : > { %v3811_v22 = vpop.eup %3213  ;;  %v1077_v23 = vmul.f32 1.0614054, %v3806_v15 }
 0x119   : > { %v1079_v31 = vmul.f32 1.0614054, %v3811_v22 }
 0x11a   : > { %v1141_v36 = vadd.f32 -1.4531521, %v1077_v23  ;;  %v3825_v57 = vpop.f32.mrb[12].mxu0  ;;  %v3827_v28 = vpop.f32.mrb[12].mxu1 }
 0x11b   : > { %5860 = vst [vmem:[#allocation9_spill] sm:$0xff] %v3825_v57  ;;  %5861 = vst [vmem:[#allocation10_spill] sm:$0xff] %v3827_v28  ;;  %v1143_v61 = vadd.f32 -1.4531521, %v1079_v31  ;;  %v3829_v1 = vpop.f32.mrb[13].mxu0  ;;  %v1659_v28 = vsub.f32 0.0, %v3775_v58  ;;  %v3840_v34 = vpop.eup %3215 }
 0x11c   : > { %5862 = vst [vmem:[#allocation11_spill] sm:$0xff] %v3829_v1  ;;  %v1205_v2 = vmul.f32 %v3806_v15, %v1141_v36  ;;  %v3844_v33 = vpop.eup %3217  ;;  %v3856_v13 = vpop.f32.mrb[13].mxu1 }
 0x11d   : > { %v1207_v9 = vmul.f32 %v3811_v22, %v1143_v61  ;;  %v1721_v61 = vmul.f32 %v1657_v38, %v3769_v55  ;;  %v1723_v1 = vmul.f32 %v1659_v28, %v3775_v58  ;;  %v1083_v5 = vmul.f32 1.0614054, %v3844_v33  ;;  %5864 = vst [vmem:[#allocation13_spill] sm:$0xff] %v3856_v13  ;;  %v3874_v0 = vpop.f32.mrb[14].mxu0 }
 0x11e   : > { %v1269_v23 = vadd.f32 1.4214138, %v1205_v2  ;;  %v1081_v2 = vmul.f32 1.0614054, %v3840_v34  ;;  %5865 = vst [vmem:[#allocation14_spill] sm:$0xff] %v3874_v0 }
 0x11f   : > { %v1271_v20 = vadd.f32 1.4214138, %v1207_v9  ;;  %v1789_v28 = vmul.f32 1.442695, %v1721_v61  ;;  %v1793_v57 = vmul.f32 1.442695, %v1723_v1 }
 0x120   : > { %v1333_v31 = vmul.f32 %v3806_v15, %v1269_v23  ;;  %v1145_v38 = vadd.f32 -1.4531521, %v1081_v2  ;;  %v3858_v23 = vpop.eup %3219 }
 0x121   : > { %v1335_v36 = vmul.f32 %v3811_v22, %v1271_v20  ;;  %v1147_v20 = vadd.f32 -1.4531521, %v1083_v5  ;;  %v3222_v2 = vpop.eup %3221  ;;  %v1078_v13 = vmul.f32 1.0614054, %v3858_v23  ;;  %3231 = vpow2.f32 %v1789_v28 }
 0x122   : > { %v1397_v37 = vadd.f32 -0.28449672, %v1333_v31  ;;  %v3866_v7 = vpop.eup %3223  ;;  %3233 = vpow2.f32 %v1793_v57  ;;  %v1654_v57 = vsub.f32 0.0, %v3750_v48 }
 0x123   : > { %v1399_v9 = vadd.f32 -0.28449672, %v1335_v36  ;;  %v1209_v36 = vmul.f32 %v3840_v34, %v1145_v38  ;;  %v3226_v5 = vpop.eup %3225 }
 0x124   : > { %v1461_v55 = vmul.f32 %v3806_v15, %v1397_v37  ;;  %v1211_v37 = vmul.f32 %v3844_v33, %v1147_v20  ;;  %v3870_v38 = vpop.eup %3227  ;;  %v1142_v20 = vadd.f32 -1.4531521, %v1078_v13  ;;  %v693_v13 = vmul.f32 0.5, %v3701_v17 }
 0x125   : > { %v1463_v58 = vmul.f32 %v3811_v22, %v1399_v9  ;;  %v1273_v8 = vadd.f32 1.4214138, %v1209_v36 }
 0x126   : > { %v1525_v31 = vadd.f32 0.2548296, %v1461_v55  ;;  %v1275_v9 = vadd.f32 1.4214138, %v1211_v37  ;;  %v957_v55 = vadd.f32 1.0, %v893_v21 }
 0x127   : > { %v1527_v14 = vadd.f32 0.2548296, %v1463_v58  ;;  %v1337_v1 = vmul.f32 %v3840_v34, %v1273_v8  ;;  %v1082_v8 = vmul.f32 1.0614054, %v3870_v38 }
 0x128   : > { %v1589_v27 = vmul.f32 %v3806_v15, %v1525_v31  ;;  %v1339_v15 = vmul.f32 %v3844_v33, %v1275_v9  ;;  %v1080_v31 = vmul.f32 1.0614054, %v3866_v7  ;;  %3235 = vrcp.f32 %v957_v55 }
 0x129   : > { %v1591_v61 = vmul.f32 %v3811_v22, %v1527_v14  ;;  %v1401_v36 = vadd.f32 -0.28449672, %v1337_v1  ;;  %v3876_v14 = vpop.eup %3229  ;;  %v695_v9 = vmul.f32 0.5, %v3704_v18  ;;  %v3892_v18 = vpop.f32.mrb[14].mxu1 }
 0x12a   : > { %v1909_v10 = vmul.f32 %v3222_v2, %v1589_v27  ;;  %v1403_v4 = vadd.f32 -0.28449672, %v1339_v15  ;;  %v1206_v2 = vmul.f32 %v3858_v23, %v1142_v20  ;;  %v1144_v27 = vadd.f32 -1.4531521, %v1080_v31  ;;  %5866 = vst [vmem:[#allocation15_spill] sm:$0xff] %v3892_v18 }
 0x12b   : > { %v1911_v58 = vmul.f32 %v3226_v5, %v1591_v61  ;;  %v1465_v28 = vmul.f32 %v3840_v34, %v1401_v36  ;;  %v1656_v5 = vsub.f32 0.0, %v3766_v54  ;;  %v1084_v1 = vmul.f32 1.0614054, %v3876_v14 }
 0x12c   : > { %v1973_v22 = vsub.f32 1.0, %v1909_v10  ;;  %v1467_v37 = vmul.f32 %v3844_v33, %v1403_v4  ;;  %v1146_v15 = vadd.f32 -1.4531521, %v1082_v8  ;;  %v3232_v4 = vpop.eup %3231  ;;  %v1718_v20 = vmul.f32 %v1654_v57, %v3750_v48 }
 0x12d   : > { %v1975_v21 = vsub.f32 1.0, %v1911_v58  ;;  %v1529_v61 = vadd.f32 0.2548296, %v1465_v28  ;;  %v3234_v36 = vpop.eup %3233  ;;  %v1270_v28 = vadd.f32 1.4214138, %v1206_v2  ;;  %v697_v8 = vmul.f32 0.5, %v3736_v42 }
 0x12e   : > { %v1531_v10 = vadd.f32 0.2548296, %v1467_v37  ;;  %v2101_v55 = vsub.f32 0.0, %v1973_v22  ;;  %v1208_v37 = vmul.f32 %v3866_v7, %v1144_v27  ;;  %v1148_v40 = vadd.f32 -1.4531521, %v1084_v1 }
 0x12f   : > { %v1593_v58 = vmul.f32 %v3840_v34, %v1529_v61  ;;  %v2103_v17 = vsub.f32 0.0, %v1975_v21  ;;  %v1720_v34 = vmul.f32 %v1656_v5, %v3766_v54  ;;  %v699_v57 = vmul.f32 0.5, %v3743_v45  ;;  %v3915_v45 = vpop.f32.mrb[15].mxu0 }
 0x130   : > { %v1595_v31 = vmul.f32 %v3844_v33, %v1531_v10  ;;  %v2165_v48 = vsel %vm2037_vm0, %v2101_v55, %v1973_v22  ;;  %v1210_v2 = vmul.f32 %v3870_v38, %v1146_v15  ;;  %v1334_v42 = vmul.f32 %v3858_v23, %v1270_v28  ;;  %5867 = vst [vmem:[#allocation16_spill] sm:$0xff] %v3915_v45 }
 0x131   : > { %v1913_v0 = vmul.f32 %v3232_v4, %v1593_v58  ;;  %v2167_v27 = vsel %vm2039_vm1, %v2103_v17, %v1975_v21  ;;  %v1272_v5 = vadd.f32 1.4214138, %v1208_v37  ;;  %v2229_v22 = vadd.f32 1.0, %v2165_v48 }
 0x132   : > { %v1915_v61 = vmul.f32 %v3234_v36, %v1595_v31  ;;  %v3909_v54 = vpop.eup %3235  ;;  %v1212_v25 = vmul.f32 %v3876_v14, %v1148_v40  ;;  %v2231_v21 = vadd.f32 1.0, %v2167_v27  ;;  %v1274_v55 = vadd.f32 1.4214138, %v1210_v2  ;;  %v3196_v40 = vld [vmem:[%s5813_s3 + $0x20] sm:$0xff]   ;;  %v3941_v2 = vpop.f32.mrb[15].mxu1 }
 0x133   : > { %v1977_v33 = vsub.f32 1.0, %v1913_v0  ;;  %v3913_v0 = vmul.f32 0.70710677, %v3897_v16  ;;  %v1658_v17 = vsub.f32 0.0, %v3790_v3  ;;  %v1085_v31 = vmul.f32 1.0614054, %v3909_v54  ;;  %3003 = vmatpush3.bf16.msra.mxu0 %v3196_v40 }
 0x134   : > { %v1979_v39 = vsub.f32 1.0, %v1915_v61  ;;  %v1398_v43 = vadd.f32 -0.28449672, %v1334_v42  ;;  %v1336_v36 = vmul.f32 %v3866_v7, %v1272_v5  ;;  %v3934_v61 = vmul.f32 %v2229_v22, %v693_v13  ;;  %5870 = vst [vmem:[#allocation19_spill] sm:$0xff] %v3941_v2 }
 0x135   : > { %v2105_v24 = vsub.f32 0.0, %v1977_v33  ;;  %v3923_v58 = vand.u32 2147483647, %v3913_v0  ;;  %v1276_v53 = vadd.f32 1.4214138, %v1212_v25  ;;  %v3943_v27 = vmul.f32 %v2231_v21, %v695_v9 }
 0x136   : > { %v2107_v10 = vsub.f32 0.0, %v1979_v39  ;;  %5868 = vst [vmem:[#allocation17_spill] sm:$0xff] %v3934_v61  ;;  %v1338_v5 = vmul.f32 %v3870_v38, %v1274_v55  ;;  %v1660_v25 = vsub.f32 0.0, %v3815_v30  ;;  %v1462_v9 = vmul.f32 %v3858_v23, %v1398_v43 }
 0x137   : > { %v2169_v1 = vsel %vm2041_vm2, %v2105_v24, %v1977_v33  ;;  %v895_v37 = vmul.f32 0.3275911, %v3923_v58  ;;  %v3939_v33 = vmul.f32 0.70710677, %v3920_v49  ;;  %5871 = vst [vmem:[#allocation20_spill] sm:$0xff] %v3943_v27  ;;  %v3968_v40 = vadd.f32 %v3745_v46, %v3696_v11  ;;  %v3982_v46 = vpop.f32.mrb[16].mxu0 }
 0x138   : > { %v2233_v15 = vadd.f32 1.0, %v2169_v1  ;;  %v2171_v4 = vsel %vm2043_vm3, %v2107_v10, %v1979_v39  ;;  %v1783_v39 = vmul.f32 1.442695, %v1718_v20  ;;  %v1149_v24 = vadd.f32 -1.4531521, %v1085_v31  ;;  %5873 = vst [vmem:[#allocation22_spill] sm:$0xff] %v3982_v46 }
 0x139   : > { %v2235_v28 = vadd.f32 1.0, %v2171_v4  ;;  %v959_v22 = vadd.f32 1.0, %v895_v37  ;;  %v1400_v21 = vadd.f32 -0.28449672, %v1336_v36  ;;  %v1340_v20 = vmul.f32 %v3876_v14, %v1276_v53 }
 0x13a   : > { %v3936_v48 = vmul.f32 %v2233_v15, %v697_v8  ;;  %v1722_v8 = vmul.f32 %v1658_v17, %v3790_v3  ;;  %3237 = vpow2.f32 %v1783_v39  ;;  %v1787_v1 = vmul.f32 1.442695, %v1720_v34  ;;  %v3197_v34 = vld [vmem:[%s5813_s3 + $0xe0] sm:$0xff]  }
 0x13b   : > { %v3945_v42 = vmul.f32 %v2235_v28, %v699_v57  ;;  %v3957_v57 = vand.u32 2147483647, %v3939_v33  ;;  %v1402_v55 = vadd.f32 -0.28449672, %v1338_v5  ;;  %v1213_v3 = vmul.f32 %v3909_v54, %v1149_v24  ;;  %3066 = vmatprep.subr.bf16.mxu1 %v3197_v34 }
 0x13c   : > { %5869 = vst [vmem:[#allocation18_spill] sm:$0xff] %v3936_v48  ;;  %v1791_v15 = vmul.f32 1.442695, %v1722_v8  ;;  %3239 = vrcp.f32 %v959_v22  ;;  %v3962_v4 = vadd.f32 %v3740_v44, %v3714_v26  ;;  %v1724_v17 = vmul.f32 %v1660_v25, %v3815_v30  ;;  %v3988_v8 = vpop.f32.mrb[16].mxu1 }
 0x13d   : > { %5872 = vst [vmem:[#allocation21_spill] sm:$0xff] %v3945_v42  ;;  %v1661_v31 = vsub.f32 0.0, %v3849_v62  ;;  %v1526_v43 = vadd.f32 0.2548296, %v1462_v9  ;;  %v1464_v36 = vmul.f32 %v3866_v7, %v1400_v21  ;;  %v1404_v28 = vadd.f32 -0.28449672, %v1340_v20 }
 0x13e   : > { %v894_v37 = vmul.f32 0.3275911, %v3957_v57  ;;  %3241 = vpow2.f32 %v1787_v1  ;;  %v1466_v44 = vmul.f32 %v3870_v38, %v1402_v55  ;;  %v3977_v30 = vmul.f32 0.70710677, %v3962_v4  ;;  %5874 = vst [vmem:[#allocation23_spill] sm:$0xff] %v3988_v8 }
 0x13f   : > { %v3980_v53 = vmul.f32 0.70710677, %v3968_v40  ;;  %3243 = vpow2.f32 %v1791_v15  ;;  %v1277_v39 = vadd.f32 1.4214138, %v1213_v3  ;;  %v3986_v5 = vadd.f32 %v3747_v47, %v3698_v12 }
 0x140   : > { %v3991_v24 = vand.u32 2147483647, %v3977_v30  ;;  %v1590_v25 = vmul.f32 %v3858_v23, %v1526_v43  ;;  %v1528_v9 = vadd.f32 0.2548296, %v1464_v36  ;;  %v1795_v21 = vmul.f32 1.442695, %v1724_v17 }
 0x141   : > { %v3994_v22 = vand.u32 2147483647, %v3980_v53  ;;  %v1725_v20 = vmul.f32 %v1661_v31, %v3849_v62  ;;  %v1530_v1 = vadd.f32 0.2548296, %v1466_v44  ;;  %v1468_v55 = vmul.f32 %v3876_v14, %v1404_v28 }
 0x142   : > { %v958_v15 = vadd.f32 1.0, %v894_v37  ;;  %v896_v47 = vmul.f32 0.3275911, %v3991_v24  ;;  %v1341_v3 = vmul.f32 %v3909_v54, %v1277_v39  ;;  %v4002_v34 = vmul.f32 0.70710677, %v3986_v5  ;;  %v3198_v37 = vld [vmem:[%s5813_s3 + $0xa0] sm:$0xff]  }
 0x143   : > { %v897_v27 = vmul.f32 0.3275911, %v3994_v22  ;;  %v4007_v23 = vadd.f32 %v3758_v51, %v3706_v19  ;;  %3245 = vpow2.f32 %v1795_v21  ;;  %v1797_v31 = vmul.f32 1.442695, %v1725_v20  ;;  %v4019_v51 = vpop.f32.mrb[17].mxu0  ;;  %3067 = vmatpush3.bf16.msra.mxu1 %v3198_v37 }
 0x144   : > { %v3238_v10 = vpop.eup %3237  ;;  %v960_v13 = vadd.f32 1.0, %v896_v47  ;;  %v1592_v43 = vmul.f32 %v3866_v7, %v1528_v9  ;;  %v1594_v36 = vmul.f32 %v3870_v38, %v1530_v1  ;;  %v1532_v28 = vadd.f32 0.2548296, %v1468_v55  ;;  %5875 = vst [vmem:[#allocation24_spill] sm:$0xff] %v4019_v51  ;;  %v4076_v51 = vpop.f32.mrb[17].mxu1 }
 0x145   : > { %v1910_v17 = vmul.f32 %v3238_v10, %v1590_v25  ;;  %3247 = vrcp.f32 %v958_v15  ;;  %v1405_v44 = vadd.f32 -0.28449672, %v1341_v3  ;;  %v4017_v39 = vand.u32 2147483647, %v4002_v34  ;;  %5878 = vst [vmem:[#allocation27_spill] sm:$0xff] %v4076_v51  ;;  %v4094_v18 = vpop.f32.mrb[18].mxu0 }
 0x146   : > { %v4009_v62 = vpop.eup %3239  ;;  %3249 = vrcp.f32 %v960_v13  ;;  %v961_v25 = vadd.f32 1.0, %v897_v27  ;;  %v4023_v7 = vmul.f32 0.70710677, %v4007_v23  ;;  %v4027_v9 = vadd.f32 %v3760_v52, %v3714_v26 }
 0x147   : > { %v1087_v10 = vmul.f32 1.0614054, %v4009_v62  ;;  %v4031_v21 = vadd.f32 %v3780_v60, %v3696_v11  ;;  %v1974_v20 = vsub.f32 1.0, %v1910_v17  ;;  %3251 = vpow2.f32 %v1797_v31 }
 0x148   : > { %v3242_v47 = vpop.eup %3241  ;;  %v1469_v13 = vmul.f32 %v3909_v54, %v1405_v44  ;;  %v899_v27 = vmul.f32 0.3275911, %v4017_v39  ;;  %v4036_v15 = vand.u32 2147483647, %v4023_v7  ;;  %v4039_v3 = vmul.f32 0.70710677, %v4027_v9 }
 0x149   : > { %v3244_v38 = vpop.eup %3243  ;;  %v1912_v1 = vmul.f32 %v3242_v47, %v1592_v43  ;;  %v1596_v52 = vmul.f32 %v3876_v14, %v1532_v28  ;;  %v1151_v37 = vadd.f32 -1.4531521, %v1087_v10  ;;  %3253 = vrcp.f32 %v961_v25 }
 0x14a   : > { %v1914_v55 = vmul.f32 %v3244_v38, %v1594_v36  ;;  %5876 = vst [vmem:[#allocation25_spill] sm:$0xff] %v4039_v3  ;;  %v694_v60 = vmul.f32 0.5, %v3719_v29  ;;  %v4044_v17 = vand.u32 2147483647, %v4039_v3  ;;  %v4047_v31 = vmul.f32 0.70710677, %v4031_v21 }
 0x14b   : > { %v2102_v43 = vsub.f32 0.0, %v1974_v20  ;;  %v4050_v36 = vmul.f32 0.5, %v3722_v32  ;;  %v1976_v44 = vsub.f32 1.0, %v1912_v1  ;;  %v1533_v14 = vadd.f32 0.2548296, %v1469_v13  ;;  %v3199_v13 = vld [vmem:[%s5813_s3 + $0x68] sm:$0xff]  }
 0x14c   : > { %5877 = vst [vmem:[#allocation26_spill] sm:$0xff] %v4047_v31  ;;  %v1978_v47 = vsub.f32 1.0, %v1914_v55  ;;  %v963_v28 = vadd.f32 1.0, %v899_v27  ;;  %v898_v10 = vmul.f32 0.3275911, %v4036_v15  ;;  %v4058_v25 = vmul.f32 0.5, %v3756_v50  ;;  %3004 = vmatprep.subr.bf16.mxu0 %v3199_v13 }
 0x14d   : > { %v3246_v38 = vpop.eup %3245  ;;  %v1215_v32 = vmul.f32 %v4009_v62, %v1151_v37  ;;  %v4062_v1 = vmul.f32 0.5, %v3772_v56  ;;  %v900_v55 = vmul.f32 0.3275911, %v4044_v17  ;;  %v4066_v35 = vand.u32 2147483647, %v4047_v31 }
 0x14e   : > { %v1916_v42 = vmul.f32 %v3246_v38, %v1596_v52  ;;  %v2166_v61 = vsel %vm2038_vm4, %v2102_v43, %v1974_v20  ;;  %v2104_v50 = vsub.f32 0.0, %v1976_v44  ;;  %v2106_v48 = vsub.f32 0.0, %v1978_v47 }
 0x14f   : > { %v4054_v29 = vpop.eup %3247  ;;  %v1663_v52 = vsub.f32 0.0, %v3923_v58  ;;  %v1597_v37 = vmul.f32 %v3909_v54, %v1533_v14  ;;  %3255 = vrcp.f32 %v963_v28  ;;  %v962_v38 = vadd.f32 1.0, %v898_v10 }
 0x150   : > { %v4071_v27 = vpop.eup %3249  ;;  %v1086_v56 = vmul.f32 1.0614054, %v4054_v29  ;;  %v1980_v46 = vsub.f32 1.0, %v1916_v42  ;;  %v1279_v20 = vadd.f32 1.4214138, %v1215_v32  ;;  %v964_v2 = vadd.f32 1.0, %v900_v55 }
 0x151   : > { %v3252_v8 = vpop.eup %3251  ;;  %v1088_v43 = vmul.f32 1.0614054, %v4071_v27  ;;  %v901_v45 = vmul.f32 0.3275911, %v4066_v35  ;;  %v4084_v54 = vadd.f32 %v3784_v63, %v3698_v12  ;;  %v2230_v28 = vadd.f32 1.0, %v2166_v61  ;;  %v5879_v42 = vld [vmem:[#allocation8_spill] sm:$0xff] }
 0x152   : > { %v2168_v10 = vsel %vm2040_vm5, %v2104_v50, %v1976_v44  ;;  %v2170_v59 = vsel %vm2042_vm6, %v2106_v48, %v1978_v47  ;;  %v4091_v13 = vmul.f32 0.5, %v5879_v42  ;;  %v1917_v32 = vmul.f32 %v3252_v8, %v1597_v37  ;;  %5880 = vst [vmem:[#allocation8_spill] sm:$0xff] %v4094_v18  ;;  %v5882_v47 = vld [vmem:[#allocation12_spill] sm:$0xff] }
 0x153   : > { %v4086_v14 = vpop.eup %3253  ;;  %v1727_v51 = vmul.f32 %v1663_v52, %v3923_v58  ;;  %v1150_v55 = vadd.f32 -1.4531521, %v1086_v56  ;;  %3257 = vrcp.f32 %v962_v38  ;;  %v2108_v31 = vsub.f32 0.0, %v1980_v46 }
 0x154   : > { %v1343_v63 = vmul.f32 %v4009_v62, %v1279_v20  ;;  %v1662_v3 = vsub.f32 0.0, %v3957_v57  ;;  %v4099_v61 = vmul.f32 0.70710677, %v4084_v54  ;;  %v1152_v41 = vadd.f32 -1.4531521, %v1088_v43 }
 0x155   : > { %v1089_v48 = vmul.f32 1.0614054, %v4086_v14  ;;  %3259 = vrcp.f32 %v964_v2  ;;  %v965_v44 = vadd.f32 1.0, %v901_v45  ;;  %v4102_v8 = vmul.f32 %v2230_v28, %v694_v60 }
 0x156   : > { %v2232_v58 = vadd.f32 1.0, %v2168_v10  ;;  %vm2045_vm8 = vcmp.lt.f32.partialorder %v5882_v47, 0.0  ;;  %v4106_v50 = vmul.f32 0.5, %v3897_v16  ;;  %v4109_v52 = vand.u32 2147483647, %v4099_v61  ;;  %v5887_v47 = vld [vmem:[#allocation2_spill] sm:$0xff] }
 0x157   : > { %5881 = vst [vmem:[#allocation28_spill] sm:$0xff] %v4102_v8  ;;  %v2234_v37 = vadd.f32 1.0, %v2170_v59  ;;  %v1981_v56 = vsub.f32 1.0, %v1917_v32  ;;  %v1214_v38 = vmul.f32 %v4054_v29, %v1150_v55  ;;  %v1664_v20 = vsub.f32 0.0, %v3991_v24 }
 0x158   : > { %v1407_v43 = vadd.f32 -0.28449672, %v1343_v63  ;;  %v1801_v2 = vmul.f32 1.442695, %v1727_v51  ;;  %v1726_v45 = vmul.f32 %v1662_v3, %v3957_v57  ;;  %v903_v60 = vmul.f32 0.3275911, %v4109_v52 }
 0x159   : > { %v4115_v28 = vpop.eup %3255  ;;  %v2172_v16 = vsel %vm2044_vm7, %v2108_v31, %v1980_v46  ;;  %v1216_v10 = vmul.f32 %v4071_v27, %v1152_v41  ;;  %v1153_v42 = vadd.f32 -1.4531521, %v1089_v48  ;;  %3261 = vrcp.f32 %v965_v44  ;;  %v4134_v48 = vpop.f32.mrb[18].mxu1 }
 0x15a   : > { %v4121_v59 = vmul.f32 %v2232_v58, %v4050_v36  ;;  %v4124_v32 = vmul.f32 0.5, %v3920_v49  ;;  %v1665_v51 = vsub.f32 0.0, %v3994_v22  ;;  %v967_v57 = vadd.f32 1.0, %v903_v60  ;;  %5885 = vst [vmem:[#allocation30_spill] sm:$0xff] %v4134_v48 }
 0x15b   : > { %v2109_v3 = vsub.f32 0.0, %v1981_v56  ;;  %v1278_v55 = vadd.f32 1.4214138, %v1214_v38  ;;  %v1728_v63 = vmul.f32 %v1664_v20, %v3991_v24  ;;  %v1667_v6 = vsub.f32 0.0, %v4017_v39  ;;  %v3200_v24 = vld [vmem:[%s5813_s3 + $0x28] sm:$0xff]  }
 0x15c   : > { %5883 = vst [vmem:[#allocation12_spill] sm:$0xff] %v4121_v59  ;;  %v4130_v46 = vmul.f32 %v2234_v37, %v4058_v25  ;;  %v2236_v31 = vadd.f32 1.0, %v2172_v16  ;;  %v1471_v41 = vmul.f32 %v4009_v62, %v1407_v43  ;;  %v1091_v36 = vmul.f32 1.0614054, %v4115_v28  ;;  %3005 = vmatpush3.bf16.msra.mxu0 %v3200_v24  ;;  %v5891_v59 = vld [vmem:[#allocation3_spill] sm:$0xff] }
 0x15d   : > { %v4136_v49 = vpop.eup %3257  ;;  %3263 = vpow2.f32 %v1801_v2  ;;  %v1799_v44 = vmul.f32 1.442695, %v1726_v45  ;;  %v1280_v58 = vadd.f32 1.4214138, %v1216_v10  ;;  %v1217_v38 = vmul.f32 %v4086_v14, %v1153_v42 }
 0x15e   : > { %5884 = vst [vmem:[#allocation29_spill] sm:$0xff] %v4130_v46  ;;  %v4143_v25 = vmul.f32 0.5, %v3962_v4  ;;  %v4146_v37 = vmul.f32 0.5, %v3968_v40  ;;  %v1729_v20 = vmul.f32 %v1665_v51, %v3994_v22  ;;  %3265 = vrcp.f32 %v967_v57 }
 0x15f   : > { %v4149_v43 = vpop.eup %3259  ;;  %v2173_v2 = vsel %vm2045_vm8, %v2109_v3, %v1981_v56  ;;  %v1342_v45 = vmul.f32 %v4054_v29, %v1278_v55  ;;  %v1803_v60 = vmul.f32 1.442695, %v1728_v63  ;;  %v1731_v16 = vmul.f32 %v1667_v6, %v4017_v39 }
 0x160   : > { %v4156_v4 = vmul.f32 %v2236_v31, %v4062_v1  ;;  %v1535_v10 = vadd.f32 0.2548296, %v1471_v41  ;;  %v1155_v40 = vadd.f32 -1.4531521, %v1091_v36  ;;  %v1090_v42 = vmul.f32 1.0614054, %v4136_v49 }
 0x161   : > { %3267 = vpow2.f32 %v1799_v44  ;;  %v1344_v22 = vmul.f32 %v4071_v27, %v1280_v58  ;;  %v1281_v51 = vadd.f32 1.4214138, %v1217_v38  ;;  %v4162_v56 = vadd.f32 %v5887_v47, %v3706_v19 }
 0x162   : > { %5886 = vst [vmem:[#allocation31_spill] sm:$0xff] %v4156_v4  ;;  %v2237_v57 = vadd.f32 1.0, %v2173_v2  ;;  %v1805_v3 = vmul.f32 1.442695, %v1729_v20  ;;  %v4165_v39 = vmul.f32 0.5, %v3986_v5  ;;  %v4171_v31 = vmul.f32 0.5, %v4007_v23 }
 0x163   : > { %v1092_v1 = vmul.f32 1.0614054, %v4149_v43  ;;  %v4168_v55 = vpop.eup %3261  ;;  %v1406_v63 = vadd.f32 -0.28449672, %v1342_v45  ;;  %v1809_v6 = vmul.f32 1.442695, %v1731_v16  ;;  %v1599_v36 = vmul.f32 %v4009_v62, %v1535_v10 }
 0x164   : > { %v1666_v41 = vsub.f32 0.0, %v4036_v15  ;;  %3269 = vpow2.f32 %v1803_v60  ;;  %v1219_v44 = vmul.f32 %v4115_v28, %v1155_v40  ;;  %v1154_v58 = vadd.f32 -1.4531521, %v1090_v42  ;;  %v4181_v2 = vpop.f32.mrb[19].mxu0 }
 0x165   : > { %v1408_v38 = vadd.f32 -0.28449672, %v1344_v22  ;;  %v1345_v5 = vmul.f32 %v4086_v14, %v1281_v51  ;;  %v1668_v24 = vsub.f32 0.0, %v4044_v17  ;;  %v4179_v20 = vmul.f32 0.70710677, %v4162_v56  ;;  %5888 = vst [vmem:[#allocation2_spill] sm:$0xff] %v4181_v2 }
 0x166   : > { %v4184_v23 = vmul.f32 %v2237_v57, %v4091_v13  ;;  %3271 = vpow2.f32 %v1805_v3  ;;  %v1156_v45 = vadd.f32 -1.4531521, %v1092_v1  ;;  %v1093_v62 = vmul.f32 1.0614054, %v4168_v55 }
 0x167   : > { %v3264_v60 = vpop.eup %3263  ;;  %v1470_v16 = vmul.f32 %v4054_v29, %v1406_v63  ;;  %3273 = vpow2.f32 %v1809_v6  ;;  %v1730_v10 = vmul.f32 %v1666_v41, %v4036_v15  ;;  %v1669_v40 = vsub.f32 0.0, %v4066_v35  ;;  %v4201_v15 = vpop.f32.mrb[19].mxu1 }
 0x168   : > { %5889 = vst [vmem:[#allocation32_spill] sm:$0xff] %v4184_v23  ;;  %v4190_v42 = vpop.eup %3265  ;;  %v1919_v22 = vmul.f32 %v3264_v60, %v1599_v36  ;;  %v1283_v51 = vadd.f32 1.4214138, %v1219_v44  ;;  %v1218_v47 = vmul.f32 %v4136_v49, %v1154_v58  ;;  %v4194_v13 = vand.u32 2147483647, %v4179_v20  ;;  %5890 = vst [vmem:[#allocation33_spill] sm:$0xff] %v4201_v15 }
 0x169   : > { %v1472_v57 = vmul.f32 %v4071_v27, %v1408_v38  ;;  %v1409_v3 = vadd.f32 -0.28449672, %v1345_v5  ;;  %v4198_v1 = vmul.f32 0.5, %v4027_v9  ;;  %v1732_v63 = vmul.f32 %v1668_v24, %v4044_v17 }
 0x16a   : > { %v1220_v6 = vmul.f32 %v4149_v43, %v1156_v45  ;;  %v4205_v41 = vmul.f32 0.5, %v4031_v21  ;;  %v1157_v36 = vadd.f32 -1.4531521, %v1093_v62  ;;  %v902_v44 = vmul.f32 0.3275911, %v4194_v13 }
 0x16b   : > { %v3268_v58 = vpop.eup %3267  ;;  %vm2047_vm9 = vcmp.lt.f32.partialorder %v3913_v0, 0.0  ;;  %v1534_v38 = vadd.f32 0.2548296, %v1470_v16  ;;  %v1807_v5 = vmul.f32 1.442695, %v1730_v10  ;;  %v1733_v9 = vmul.f32 %v1669_v40, %v4066_v35  ;;  %v3201_v16 = vld [vmem:[%s5813_s3 + $0xe8] sm:$0xff]  }
 0x16c   : > { %v1095_v60 = vmul.f32 1.0614054, %v4190_v42  ;;  %v1983_v17 = vsub.f32 1.0, %v1919_v22  ;;  %v1347_v24 = vmul.f32 %v4115_v28, %v1283_v51  ;;  %v1282_v23 = vadd.f32 1.4214138, %v1218_v47  ;;  %v5892_v22 = vld [vmem:[#allocation4_spill] sm:$0xff]  ;;  %3068 = vmatprep.subr.bf16.mxu1 %v3201_v16 }
 0x16d   : > { %v966_v45 = vadd.f32 1.0, %v902_v44  ;;  %v1536_v4 = vadd.f32 0.2548296, %v1472_v57  ;;  %v1473_v21 = vmul.f32 %v4086_v14, %v1409_v3  ;;  %v1811_v62 = vmul.f32 1.442695, %v1732_v63 }
 0x16e   : > { %v4215_v46 = vadd.f32 %v5891_v59, %v3714_v26  ;;  %v3270_v35 = vpop.eup %3269  ;;  %v1284_v10 = vadd.f32 1.4214138, %v1220_v6  ;;  %v1221_v40 = vmul.f32 %v4168_v55, %v1157_v36  ;;  %v4223_v51 = vadd.f32 %v5892_v22, %v3696_v11 }
 0x16f   : > { %3275 = vrcp.f32 %v966_v45  ;;  %v1598_v47 = vmul.f32 %v4054_v29, %v1534_v38  ;;  %v1813_v57 = vmul.f32 1.442695, %v1733_v9  ;;  %v1159_v3 = vadd.f32 -1.4531521, %v1095_v60  ;;  %v4236_v38 = vpop.f32.mrb[20].mxu0 }
 0x170   : > { %3277 = vpow2.f32 %v1807_v5  ;;  %v3272_v59 = vpop.eup %3271  ;;  %v2111_v63 = vsub.f32 0.0, %v1983_v17  ;;  %v1411_v44 = vadd.f32 -0.28449672, %v1347_v24  ;;  %v1346_v8 = vmul.f32 %v4136_v49, %v1282_v23  ;;  %5895 = vst [vmem:[#allocation34_spill] sm:$0xff] %v4236_v38  ;;  %v4245_v24 = vpop.f32.mrb[20].mxu1 }
 0x171   : > { %v4228_v6 = vmul.f32 0.70710677, %v4215_v46  ;;  %v4230_v36 = vpop.eup %3273  ;;  %v1600_v45 = vmul.f32 %v4071_v27, %v1536_v4  ;;  %v1537_v22 = vadd.f32 0.2548296, %v1473_v21  ;;  %3279 = vpow2.f32 %v1811_v62  ;;  %5896 = vst [vmem:[#allocation35_spill] sm:$0xff] %v4245_v24 }
 0x172   : > { %v4234_v29 = vmul.f32 0.70710677, %v4223_v51  ;;  %v1348_v5 = vmul.f32 %v4149_v43, %v1284_v10  ;;  %v1285_v9 = vadd.f32 1.4214138, %v1221_v40  ;;  %v4240_v60 = vmul.f32 0.5, %v4084_v54 }
 0x173   : > { %5893 = vst [vmem:[#allocation3_spill] sm:$0xff] %v4228_v6  ;;  %v4243_v23 = vand.u32 2147483647, %v4228_v6  ;;  %v1918_v16 = vmul.f32 %v3268_v58, %v1598_v47  ;;  %3281 = vpow2.f32 %v1813_v57  ;;  %v1223_v27 = vmul.f32 %v4190_v42, %v1159_v3  ;;  %v3202_v47 = vld [vmem:[%s5813_s3 + $0xa8] sm:$0xff]  }
 0x174   : > { %5894 = vst [vmem:[#allocation4_spill] sm:$0xff] %v4234_v29  ;;  %v4249_v4 = vand.u32 2147483647, %v4234_v29  ;;  %v2175_v21 = vsel %vm2047_vm9, %v2111_v63, %v1983_v17  ;;  %v1475_v62 = vmul.f32 %v4115_v28, %v1411_v44  ;;  %v1410_v10 = vadd.f32 -0.28449672, %v1346_v8  ;;  %v5897_v8 = vld [vmem:[#allocation5_spill] sm:$0xff]  ;;  %3069 = vmatpush3.bf16.msra.mxu1 %v3202_v47 }
 0x175   : > { %v904_v54 = vmul.f32 0.3275911, %v4243_v23  ;;  %v1920_v40 = vmul.f32 %v3270_v35, %v1600_v45  ;;  %v1601_v38 = vmul.f32 %v4086_v14, %v1537_v22  ;;  %v1671_v24 = vsub.f32 0.0, %v4109_v52 }
 0x176   : > { %v905_v58 = vmul.f32 0.3275911, %v4249_v4  ;;  %vm2046_vm10 = vcmp.lt.f32.partialorder %v3939_v33, 0.0  ;;  %v1412_v0 = vadd.f32 -0.28449672, %v1348_v5  ;;  %v1349_v17 = vmul.f32 %v4168_v55, %v1285_v9 }
 0x177   : > { %v968_v57 = vadd.f32 1.0, %v904_v54  ;;  %v4265_v3 = vadd.f32 %v5897_v8, %v3698_v12  ;;  %v2239_v35 = vadd.f32 1.0, %v2175_v21  ;;  %v1982_v14 = vsub.f32 1.0, %v1918_v16 }
 0x178   : > { %v1287_v63 = vadd.f32 1.4214138, %v1223_v27  ;;  %v969_v44 = vadd.f32 1.0, %v905_v58  ;;  %vm2048_vm11 = vcmp.lt.f32.partialorder %v3977_v30, 0.0  ;;  %v1539_v22 = vadd.f32 0.2548296, %v1475_v62 }
 0x179   : > { %v4267_v45 = vpop.eup %3275  ;;  %v1474_v15 = vmul.f32 %v4136_v49, %v1410_v10  ;;  %3283 = vrcp.f32 %v968_v57  ;;  %v4272_v5 = vmul.f32 0.70710677, %v4265_v3  ;;  %v1984_v54 = vsub.f32 1.0, %v1920_v40  ;;  %v4276_v27 = vpop.f32.mrb[21].mxu0  ;;  %v5900_v40 = vld [vmem:[#allocation6_spill] sm:$0xff] }
 0x17a   : > { %v3278_v9 = vpop.eup %3277  ;;  %v1921_v8 = vmul.f32 %v3272_v59, %v1601_v38  ;;  %v1735_v21 = vmul.f32 %v1671_v24, %v4109_v52  ;;  %v1094_v16 = vmul.f32 1.0614054, %v4267_v45  ;;  %5899 = vst [vmem:[#allocation36_spill] sm:$0xff] %v4276_v27  ;;  %v1476_v58 = vmul.f32 %v4149_v43, %v1412_v0  ;;  %v5901_v52 = vld [vmem:[#allocation7_spill] sm:$0xff] }
 0x17b   : > { %5898 = vst [vmem:[#allocation5_spill] sm:$0xff] %v4272_v5  ;;  %v1413_v47 = vadd.f32 -0.28449672, %v1349_v17  ;;  %3285 = vrcp.f32 %v969_v44  ;;  %v4280_v62 = vand.u32 2147483647, %v4272_v5  ;;  %v3280_v10 = vpop.eup %3279  ;;  %v2110_v57 = vsub.f32 0.0, %v1982_v14 }
 0x17c   : > { %v1351_v2 = vmul.f32 %v4190_v42, %v1287_v63  ;;  %v4285_v59 = vadd.f32 %v5900_v40, %v3706_v19  ;;  %v4289_v38 = vadd.f32 %v5901_v52, %v3714_v26  ;;  %vm2049_vm12 = vcmp.lt.f32.partialorder %v3980_v53, 0.0 }
 0x17d   : > { %v1603_v24 = vmul.f32 %v4115_v28, %v1539_v22  ;;  %v1538_v0 = vadd.f32 0.2548296, %v1474_v15  ;;  %v1158_v17 = vadd.f32 -1.4531521, %v1094_v16  ;;  %v907_v44 = vmul.f32 0.3275911, %v4280_v62  ;;  %v4294_v27 = vpop.eup %3281 }
 0x17e   : > { %v2112_v48 = vsub.f32 0.0, %v1984_v54  ;;  %v1985_v63 = vsub.f32 1.0, %v1921_v8  ;;  %v1817_v18 = vmul.f32 1.442695, %v1735_v21  ;;  %v4297_v40 = vmul.f32 0.70710677, %v4285_v59 }
 0x17f   : > { %v1540_v5 = vadd.f32 0.2548296, %v1476_v58  ;;  %v1477_v52 = vmul.f32 %v4168_v55, %v1413_v47  ;;  %v971_v29 = vadd.f32 1.0, %v907_v44  ;;  %v4301_v6 = vmul.f32 0.70710677, %v4289_v38  ;;  %v3203_v21 = vld [vmem:[%s5813_s3 + $0x70] sm:$0xff]  }
 0x180   : > { %v4304_v28 = vmul.f32 %v2239_v35, %v4106_v50  ;;  %v2174_v15 = vsel %vm2046_vm10, %v2110_v57, %v1982_v14  ;;  %v1415_v22 = vadd.f32 -0.28449672, %v1351_v2  ;;  %v4309_v8 = vand.u32 2147483647, %v4297_v40  ;;  %v4319_v50 = vpop.f32.mrb[21].mxu1  ;;  %3006 = vmatprep.subr.bf16.mxu0 %v3203_v21 }
 0x181   : > { %v1602_v16 = vmul.f32 %v4136_v49, %v1538_v0  ;;  %v1222_v58 = vmul.f32 %v4267_v45, %v1158_v17  ;;  %3287 = vrcp.f32 %v971_v29  ;;  %v4317_v47 = vand.u32 2147483647, %v4301_v6  ;;  %5903 = vst [vmem:[#allocation7_spill] sm:$0xff] %v4319_v50  ;;  %v5904_v17 = vld [vmem:[#allocation9_spill] sm:$0xff] }
 0x182   : > { %5902 = vst [vmem:[#allocation6_spill] sm:$0xff] %v4304_v28  ;;  %v2176_v33 = vsel %vm2048_vm11, %v2112_v48, %v1984_v54  ;;  %v2113_v2 = vsub.f32 0.0, %v1985_v63  ;;  %v1923_v35 = vmul.f32 %v4230_v36, %v1603_v24  ;;  %v906_v14 = vmul.f32 0.3275911, %v4309_v8 }
 0x183   : > { %v4325_v57 = vpop.eup %3283  ;;  %v1604_v49 = vmul.f32 %v4149_v43, %v1540_v5  ;;  %v1541_v0 = vadd.f32 0.2548296, %v1477_v52  ;;  %v908_v29 = vmul.f32 0.3275911, %v4317_v47  ;;  %v4331_v44 = vadd.f32 %v5904_v17, %v3696_v11 }
 0x184   : > { %v2238_v28 = vadd.f32 1.0, %v2174_v15  ;;  %v1479_v30 = vmul.f32 %v4190_v42, %v1415_v22  ;;  %3289 = vpow2.f32 %v1817_v18  ;;  %v970_v48 = vadd.f32 1.0, %v906_v14  ;;  %v5907_v14 = vld [vmem:[#allocation25_spill] sm:$0xff] }
 0x185   : > { %v4334_v36 = vpop.eup %3285  ;;  %vm2051_vm13 = vcmp.lt.f32.partialorder %v4002_v34, 0.0  ;;  %v1922_v54 = vmul.f32 %v3278_v9, %v1602_v16  ;;  %v1286_v24 = vadd.f32 1.4214138, %v1222_v58  ;;  %v1670_v43 = vsub.f32 0.0, %v4194_v13  ;;  %v5905_v58 = vld [vmem:[#allocation10_spill] sm:$0xff] }
 0x186   : > { %v972_v5 = vadd.f32 1.0, %v908_v29  ;;  %v2240_v52 = vadd.f32 1.0, %v2176_v33  ;;  %v2177_v21 = vsel %vm2049_vm12, %v2113_v2, %v1985_v63  ;;  %v1987_v17 = vsub.f32 1.0, %v1923_v35  ;;  %v4363_v29 = vpop.f32.mrb[22].mxu0 }
 0x187   : > { %v1096_v15 = vmul.f32 1.0614054, %v4325_v57  ;;  %v1924_v50 = vmul.f32 %v3280_v10, %v1604_v49  ;;  %v1605_v18 = vmul.f32 %v4168_v55, %v1541_v0  ;;  %3291 = vrcp.f32 %v970_v48  ;;  %5909 = vst [vmem:[#allocation25_spill] sm:$0xff] %v4363_v29 }
 0x188   : > { %v4343_v22 = vmul.f32 0.70710677, %v4331_v44  ;;  %vm2050_vm14 = vcmp.lt.f32.partialorder %v4023_v7, 0.0  ;;  %v1543_v9 = vadd.f32 0.2548296, %v1479_v30  ;;  %3293 = vrcp.f32 %v972_v5 }
 0x189   : > { %v1097_v16 = vmul.f32 1.0614054, %v4334_v36  ;;  %v4349_v53 = vadd.f32 %v5905_v58, %v3698_v12  ;;  %v1986_v63 = vsub.f32 1.0, %v1922_v54  ;;  %v1350_v33 = vmul.f32 %v4267_v45, %v1286_v24 }
 0x18a   : > { %v1734_v10 = vmul.f32 %v1670_v43, %v4194_v13  ;;  %v4354_v55 = vand.u32 2147483647, %v4343_v22  ;;  %v4357_v2 = vmul.f32 %v2238_v28, %v4124_v32  ;;  %v2115_v35 = vsub.f32 0.0, %v1987_v17 }
 0x18b   : > { %vm2052_vm15 = vcmp.lt.f32.partialorder %v5907_v14, 0.0  ;;  %v1160_v49 = vadd.f32 -1.4531521, %v1096_v15  ;;  %v4361_v0 = vmul.f32 0.70710677, %v4349_v53  ;;  %v4365_v30 = vpop.eup %3287  ;;  %v1988_v48 = vsub.f32 1.0, %v1924_v50 }
 0x18c   : > { %5906 = vst [vmem:[#allocation9_spill] sm:$0xff] %v4357_v2  ;;  %v1925_v13 = vmul.f32 %v4294_v27, %v1605_v18  ;;  %v4369_v54 = vmul.f32 0.5, %v4162_v56  ;;  %v909_v32 = vmul.f32 0.3275911, %v4354_v55  ;;  %v2241_v28 = vadd.f32 1.0, %v2177_v21  ;;  %v5911_v27 = vld [vmem:[#allocation26_spill] sm:$0xff] }
 0x18d   : > { %5908 = vst [vmem:[#allocation10_spill] sm:$0xff] %v4361_v0  ;;  %v1607_v24 = vmul.f32 %v4190_v42, %v1543_v9  ;;  %v1161_v43 = vadd.f32 -1.4531521, %v1097_v16  ;;  %v4374_v5 = vand.u32 2147483647, %v4361_v0  ;;  %v4377_v15 = vmul.f32 %v2240_v52, %v4143_v25 }
 0x18e   : > { %v2114_v58 = vsub.f32 0.0, %v1986_v63  ;;  %v1414_v2 = vadd.f32 -0.28449672, %v1350_v33  ;;  %v1815_v50 = vmul.f32 1.442695, %v1734_v10  ;;  %v3290_v29 = vpop.eup %3289  ;;  %v2179_v56 = vsel %vm2051_vm13, %v2115_v35, %v1987_v17  ;;  %v3204_v10 = vld [vmem:[%s5813_s3 + $0x30] sm:$0xff]  }
 0x18f   : > { %5910 = vst [vmem:[#allocation37_spill] sm:$0xff] %v4377_v15  ;;  %vm2053_vm0 = vcmp.lt.f32.partialorder %v5911_v27, 0.0  ;;  %v1224_v21 = vmul.f32 %v4325_v57, %v1160_v49  ;;  %v1099_v42 = vmul.f32 1.0614054, %v4365_v30  ;;  %v973_v18 = vadd.f32 1.0, %v909_v32  ;;  %3007 = vmatpush3.bf16.msra.mxu0 %v3204_v10 }
 0x190   : > { %v2116_v9 = vsub.f32 0.0, %v1988_v48  ;;  %v1989_v16 = vsub.f32 1.0, %v1925_v13  ;;  %v1672_v0 = vsub.f32 0.0, %v4243_v23  ;;  %v911_v25 = vmul.f32 0.3275911, %v4374_v5 }
 0x191   : > { %v4387_v52 = vmul.f32 %v2241_v28, %v4146_v37  ;;  %v1927_v33 = vmul.f32 %v3290_v29, %v1607_v24  ;;  %v1225_v34 = vmul.f32 %v4334_v36, %v1161_v43  ;;  %v1673_v17 = vsub.f32 0.0, %v4249_v4  ;;  %v4394_v35 = vpop.eup %3291  ;;  %v4399_v37 = vpop.f32.mrb[22].mxu1 }
 0x192   : > { %v2243_v49 = vadd.f32 1.0, %v2179_v56  ;;  %v2178_v13 = vsel %vm2050_vm14, %v2114_v58, %v1986_v63  ;;  %v1478_v32 = vmul.f32 %v4267_v45, %v1414_v2  ;;  %3295 = vpow2.f32 %v1815_v50  ;;  %5913 = vst [vmem:[#allocation38_spill] sm:$0xff] %v4399_v37  ;;  %v4401_v29 = vpop.eup %3293  ;;  %v5914_v63 = vld [vmem:[#allocation11_spill] sm:$0xff] }
 0x193   : > { %5912 = vst [vmem:[#allocation26_spill] sm:$0xff] %v4387_v52  ;;  %v1288_v28 = vadd.f32 1.4214138, %v1224_v21  ;;  %v1163_v24 = vadd.f32 -1.4531521, %v1099_v42  ;;  %3297 = vrcp.f32 %v973_v18  ;;  %v975_v43 = vadd.f32 1.0, %v911_v25 }
 0x194   : > { %v2180_v52 = vsel %vm2052_vm15, %v2116_v9, %v1988_v48  ;;  %v2117_v15 = vsub.f32 0.0, %v1989_v16  ;;  %vm2055_vm1 = vcmp.lt.f32.partialorder %v4099_v61, 0.0  ;;  %v1736_v7 = vmul.f32 %v1672_v0, %v4243_v23  ;;  %v3205_v61 = vld [vmem:[%s5813_s3 + $0xf0] sm:$0xff]  }
 0x195   : > { %v4409_v2 = vadd.f32 %v5914_v63, %v3706_v19  ;;  %v1991_v58 = vsub.f32 1.0, %v1927_v33  ;;  %v1289_v50 = vadd.f32 1.4214138, %v1225_v34  ;;  %v1737_v56 = vmul.f32 %v1673_v17, %v4249_v4  ;;  %3070 = vmatprep.subr.bf16.mxu1 %v3205_v61 }
 0x196   : > { %v1098_v21 = vmul.f32 1.0614054, %v4394_v35  ;;  %v4414_v42 = vmul.f32 %v2243_v49, %v4165_v39  ;;  %v1542_v14 = vadd.f32 0.2548296, %v1478_v32  ;;  %v4417_v48 = vmul.f32 0.5, %v4215_v46 }
 0x197   : > { %v1100_v18 = vmul.f32 1.0614054, %v4401_v29  ;;  %v2242_v23 = vadd.f32 1.0, %v2178_v13  ;;  %v1352_v0 = vmul.f32 %v4325_v57, %v1288_v28  ;;  %v1227_v9 = vmul.f32 %v4365_v30, %v1163_v24  ;;  %v4439_v24 = vpop.f32.mrb[23].mxu0 }
 0x198   : > { %5915 = vst [vmem:[#allocation11_spill] sm:$0xff] %v4414_v42  ;;  %3299 = vrcp.f32 %v975_v43  ;;  %v2244_v25 = vadd.f32 1.0, %v2180_v52  ;;  %v2181_v4 = vsel %vm2053_vm0, %v2117_v15, %v1989_v16  ;;  %v1819_v33 = vmul.f32 1.442695, %v1736_v7  ;;  %5917 = vst [vmem:[#allocation40_spill] sm:$0xff] %v4439_v24 }
 0x199   : > { %v4425_v39 = vmul.f32 0.70710677, %v4409_v2  ;;  %v2119_v34 = vsub.f32 0.0, %v1991_v58  ;;  %v1353_v46 = vmul.f32 %v4334_v36, %v1289_v50  ;;  %v1821_v17 = vmul.f32 1.442695, %v1737_v56 }
 0x19a   : > { %v1162_v10 = vadd.f32 -1.4531521, %v1098_v21  ;;  %v1606_v49 = vmul.f32 %v4267_v45, %v1542_v14  ;;  %v1675_v13 = vsub.f32 0.0, %v4280_v62  ;;  %v1164_v32 = vadd.f32 -1.4531521, %v1100_v18 }
 0x19b   : > { %v4431_v28 = vand.u32 2147483647, %v4425_v39  ;;  %v4434_v27 = vmul.f32 %v2242_v23, %v4171_v31  ;;  %v1416_v15 = vadd.f32 -0.28449672, %v1352_v0  ;;  %v4437_v16 = vmul.f32 0.5, %v4223_v51 }
 0x19c   : > { %v1291_v52 = vadd.f32 1.4214138, %v1227_v9  ;;  %v3296_v43 = vpop.eup %3295  ;;  %v4442_v7 = vmul.f32 %v2244_v25, %v4198_v1  ;;  %v2245_v45 = vadd.f32 1.0, %v2181_v4  ;;  %v4445_v63 = vmul.f32 0.5, %v4265_v3  ;;  %v5919_v9 = vld [vmem:[#allocation13_spill] sm:$0xff] }
 0x19d   : > { %5916 = vst [vmem:[#allocation39_spill] sm:$0xff] %v4434_v27  ;;  %v910_v50 = vmul.f32 0.3275911, %v4431_v28  ;;  %v4448_v56 = vpop.eup %3297  ;;  %v2183_v31 = vsel %vm2055_vm1, %v2119_v34, %v1991_v58  ;;  %3301 = vpow2.f32 %v1819_v33  ;;  %v1417_v51 = vadd.f32 -0.28449672, %v1353_v46  ;;  %v4464_v58 = vpop.f32.mrb[23].mxu1 }
 0x19e   : > { %5918 = vst [vmem:[#allocation41_spill] sm:$0xff] %v4442_v7  ;;  %v1226_v21 = vmul.f32 %v4394_v35, %v1162_v10  ;;  %v1926_v14 = vmul.f32 %v3296_v43, %v1606_v49  ;;  %v1739_v18 = vmul.f32 %v1675_v13, %v4280_v62  ;;  %v1228_v1 = vmul.f32 %v4401_v29, %v1164_v32 }
 0x19f   : > { %v974_v23 = vadd.f32 1.0, %v910_v50  ;;  %v1480_v3 = vmul.f32 %v4325_v57, %v1416_v15  ;;  %3303 = vpow2.f32 %v1821_v17  ;;  %v1355_v0 = vmul.f32 %v4365_v30, %v1291_v52  ;;  %5920 = vst [vmem:[#allocation13_spill] sm:$0xff] %v4464_v58 }
 0x1a0   : > { %v4459_v25 = vadd.f32 %v5919_v9, %v3714_v26  ;;  %v2247_v4 = vadd.f32 1.0, %v2183_v31  ;;  %v1674_v62 = vsub.f32 0.0, %v4309_v8  ;;  %v1101_v33 = vmul.f32 1.0614054, %v4448_v56 }
 0x1a1   : > { %3305 = vrcp.f32 %v974_v23  ;;  %v1481_v46 = vmul.f32 %v4334_v36, %v1417_v51  ;;  %v4472_v17 = vmul.f32 0.5, %v4285_v59  ;;  %v1290_v10 = vadd.f32 1.4214138, %v1226_v21 }
 0x1a2   : > { %v4468_v34 = vpop.eup %3299  ;;  %v1676_v49 = vsub.f32 0.0, %v4317_v47  ;;  %v1990_v13 = vsub.f32 1.0, %v1926_v14  ;;  %vm2054_vm2 = vcmp.lt.f32.partialorder %v4179_v20, 0.0  ;;  %v1825_v32 = vmul.f32 1.442695, %v1739_v18 }
 0x1a3   : > { %v4477_v15 = vmul.f32 0.5, %v4289_v38  ;;  %v1292_v52 = vadd.f32 1.4214138, %v1228_v1  ;;  %v4480_v43 = vmul.f32 %v2245_v45, %v4205_v41  ;;  %v1544_v50 = vadd.f32 0.2548296, %v1480_v3 }
 0x1a4   : > { %v1419_v31 = vadd.f32 -0.28449672, %v1355_v0  ;;  %v4483_v59 = vmul.f32 0.70710677, %v4459_v25  ;;  %v4486_v51 = vmul.f32 %v2247_v4, %v4240_v60  ;;  %v1738_v21 = vmul.f32 %v1674_v62, %v4309_v8  ;;  %v5923_v60 = vld [vmem:[#allocation14_spill] sm:$0xff] }
 0x1a5   : > { %5921 = vst [vmem:[#allocation42_spill] sm:$0xff] %v4480_v43  ;;  %v1165_v14 = vadd.f32 -1.4531521, %v1101_v33  ;;  %v1103_v18 = vmul.f32 1.0614054, %v4468_v34  ;;  %v1354_v38 = vmul.f32 %v4394_v35, %v1290_v10  ;;  %v1740_v1 = vmul.f32 %v1676_v49, %v4317_v47 }
 0x1a6   : > { %5922 = vst [vmem:[#allocation43_spill] sm:$0xff] %v4486_v51  ;;  %v1545_v23 = vadd.f32 0.2548296, %v1481_v46  ;;  %v4493_v41 = vand.u32 2147483647, %v4483_v59  ;;  %3307 = vpow2.f32 %v1825_v32  ;;  %v1356_v45 = vmul.f32 %v4401_v29, %v1292_v52 }
 0x1a7   : > { %v1677_v3 = vsub.f32 0.0, %v4354_v55  ;;  %v4499_v0 = vadd.f32 %v5923_v60, %v3696_v11  ;;  %v3302_v8 = vpop.eup %3301  ;;  %v2118_v9 = vsub.f32 0.0, %v1990_v13  ;;  %v1608_v61 = vmul.f32 %v4325_v57, %v1544_v50 }
 0x1a8   : > { %v1483_v4 = vmul.f32 %v4365_v30, %v1419_v31  ;;  %v912_v47 = vmul.f32 0.3275911, %v4493_v41  ;;  %v1823_v62 = vmul.f32 1.442695, %v1738_v21  ;;  %v4505_v33 = vmul.f32 0.5, %v4331_v44 }
 0x1a9   : > { %v1229_v46 = vmul.f32 %v4448_v56, %v1165_v14  ;;  %v1167_v10 = vadd.f32 -1.4531521, %v1103_v18  ;;  %v3304_v49 = vpop.eup %3303  ;;  %v1609_v32 = vmul.f32 %v4334_v36, %v1545_v23  ;;  %v1418_v52 = vadd.f32 -0.28449672, %v1354_v38 }
 0x1aa   : > { %v1827_v60 = vmul.f32 1.442695, %v1740_v1  ;;  %v976_v51 = vadd.f32 1.0, %v912_v47  ;;  %v1420_v57 = vadd.f32 -0.28449672, %v1356_v45  ;;  %v1741_v50 = vmul.f32 %v1677_v3, %v4354_v55  ;;  %v5924_v1 = vld [vmem:[#allocation15_spill] sm:$0xff] }
 0x1ab   : > { %v4509_v43 = vpop.eup %3305  ;;  %v1679_v31 = vsub.f32 0.0, %v4374_v5  ;;  %v4514_v21 = vmul.f32 0.70710677, %v4499_v0  ;;  %v2182_v44 = vsel %vm2054_vm2, %v2118_v9, %v1990_v13  ;;  %v4518_v14 = vmul.f32 %v3302_v8, %v1608_v61  ;;  %v3206_v13 = vld [vmem:[%s5813_s3 + $0xb0] sm:$0xff]   ;;  %v4535_v8 = vpop.f32.mrb[24].mxu0 }
 0x1ac   : > { %v1547_v18 = vadd.f32 0.2548296, %v1483_v4  ;;  %v1102_v36 = vmul.f32 1.0614054, %v4509_v43  ;;  %v1293_v23 = vadd.f32 1.4214138, %v1229_v46  ;;  %v1231_v38 = vmul.f32 %v4468_v34, %v1167_v10  ;;  %3071 = vmatpush3.bf16.msra.mxu1 %v3206_v13 }
 0x1ad   : > { %3309 = vrcp.f32 %v976_v51  ;;  %v4524_v55 = vadd.f32 %v5924_v1, %v3698_v12  ;;  %v4526_v45 = vmul.f32 %v3304_v49, %v1609_v32  ;;  %v1482_v3 = vmul.f32 %v4394_v35, %v1418_v52  ;;  %5925 = vst [vmem:[#allocation14_spill] sm:$0xff] %v4535_v8  ;;  %v4539_v4 = vpop.f32.mrb[24].mxu1  ;;  %v5927_v46 = vld [vmem:[#allocation3_spill] sm:$0xff]  ;;  %v5928_v1 = vld [vmem:[#allocation4_spill] sm:$0xff] }
 0x1ae   : > { %3311 = vpow2.f32 %v1823_v62  ;;  %v4530_v20 = vand.u32 2147483647, %v4514_v21  ;;  %v1484_v51 = vmul.f32 %v4401_v29, %v1420_v57  ;;  %v1829_v9 = vmul.f32 1.442695, %v1741_v50  ;;  %5926 = vst [vmem:[#allocation15_spill] sm:$0xff] %v4539_v4 }
 0x1af   : > { %3313 = vpow2.f32 %v1827_v60  ;;  %v1743_v61 = vmul.f32 %v1679_v31, %v4374_v5  ;;  %v2246_v47 = vadd.f32 1.0, %v2182_v44  ;;  %vm2056_vm3 = vcmp.lt.f32.partialorder %v5927_v46, 0.0  ;;  %v5935_v46 = vld [vmem:[#allocation22_spill] sm:$0xff] }
 0x1b0   : > { %v1611_v62 = vmul.f32 %v4365_v30, %v1547_v18  ;;  %v1166_v10 = vadd.f32 -1.4531521, %v1102_v36  ;;  %v913_v49 = vmul.f32 0.3275911, %v4530_v20  ;;  %v3308_v32 = vpop.eup %3307  ;;  %v1992_v52 = vsub.f32 1.0, %v4518_v14  ;;  %v5929_v30 = vld [vmem:[#allocation16_spill] sm:$0xff] }
 0x1b1   : > { %vm2057_vm4 = vcmp.lt.f32.partialorder %v5928_v1, 0.0  ;;  %v1357_v60 = vmul.f32 %v4448_v56, %v1293_v23  ;;  %v1295_v57 = vadd.f32 1.4214138, %v1231_v38  ;;  %v4548_v5 = vmul.f32 0.70710677, %v4524_v55  ;;  %v4561_v23 = vpop.f32.mrb[25].mxu0 }
 0x1b2   : > { %v1993_v50 = vsub.f32 1.0, %v4526_v45  ;;  %v1546_v31 = vadd.f32 0.2548296, %v1482_v3  ;;  %v977_v44 = vadd.f32 1.0, %v913_v49  ;;  %v4553_v18 = vadd.f32 %v5929_v30, %v3706_v19  ;;  %5930 = vst [vmem:[#allocation3_spill] sm:$0xff] %v4561_v23  ;;  %v4637_v24 = vpop.f32.mrb[26].mxu0 }
 0x1b3   : > { %v1548_v36 = vadd.f32 0.2548296, %v1484_v51  ;;  %3315 = vpow2.f32 %v1829_v9  ;;  %v4556_v14 = vmul.f32 0.5, %v4349_v53  ;;  %v4559_v13 = vand.u32 2147483647, %v4548_v5  ;;  %v3207_v53 = vld [vmem:[%s5813_s3 + $0x78] sm:$0xff]  }
 0x1b4   : > { %v4563_v38 = vmul.f32 %v3308_v32, %v1611_v62  ;;  %v1833_v42 = vmul.f32 1.442695, %v1743_v61  ;;  %v1230_v45 = vmul.f32 %v4509_v43, %v1166_v10  ;;  %3317 = vrcp.f32 %v977_v44  ;;  %v5932_v44 = vld [vmem:[#allocation19_spill] sm:$0xff]  ;;  %3008 = vmatprep.subr.bf16.mxu0 %v3207_v53  ;;  %5939 = vst [vmem:[#allocation44_spill] sm:$0xff] %v4637_v24 }
 0x1b5   : > { %v2120_v3 = vsub.f32 0.0, %v1992_v52  ;;  %v1421_v49 = vadd.f32 -0.28449672, %v1357_v60  ;;  %v1359_v30 = vmul.f32 %v4468_v34, %v1295_v57  ;;  %v915_v51 = vmul.f32 0.3275911, %v4559_v13 }
 0x1b6   : > { %v4572_v9 = vmul.f32 %v2246_v47, %v4369_v54  ;;  %v2121_v7 = vsub.f32 0.0, %v1993_v50  ;;  %v1610_v62 = vmul.f32 %v4394_v35, %v1546_v31  ;;  %v4576_v61 = vmul.f32 0.70710677, %v4553_v18  ;;  %v5933_v35 = vld [vmem:[#allocation5_spill] sm:$0xff] }
 0x1b7   : > { %v4578_v10 = vpop.eup %3309  ;;  %v1612_v32 = vmul.f32 %v4401_v29, %v1548_v36  ;;  %v4582_v60 = vmul.f32 0.5, %v4409_v2  ;;  %v979_v57 = vadd.f32 1.0, %v915_v51  ;;  %v4586_v27 = vadd.f32 %v5932_v44, %v3714_v26 }
 0x1b8   : > { %5931 = vst [vmem:[#allocation4_spill] sm:$0xff] %v4572_v9  ;;  %v3312_v54 = vpop.eup %3311  ;;  %v1995_v47 = vsub.f32 1.0, %v4563_v38  ;;  %vm2059_vm5 = vcmp.lt.f32.partialorder %v5933_v35, 0.0  ;;  %v1294_v31 = vadd.f32 1.4214138, %v1230_v45  ;;  %v1678_v9 = vsub.f32 0.0, %v4431_v28 }
 0x1b9   : > { %v4592_v23 = vand.u32 2147483647, %v4576_v61  ;;  %v3314_v29 = vpop.eup %3313  ;;  %v2184_v2 = vsel %vm2056_vm3, %v2120_v3, %v1992_v52  ;;  %v1485_v36 = vmul.f32 %v4448_v56, %v1421_v49  ;;  %v1423_v51 = vadd.f32 -0.28449672, %v1359_v30  ;;  %v4610_v3 = vpop.f32.mrb[25].mxu1 }
 0x1ba   : > { %3319 = vrcp.f32 %v979_v57  ;;  %v2185_v53 = vsel %vm2057_vm4, %v2121_v7, %v1993_v50  ;;  %v4599_v38 = vmul.f32 %v3312_v54, %v1610_v62  ;;  %v1104_v45 = vmul.f32 1.0614054, %v4578_v10  ;;  %5936 = vst [vmem:[#allocation19_spill] sm:$0xff] %v4610_v3 }
 0x1bb   : > { %3321 = vpow2.f32 %v1833_v42  ;;  %v1932_v44 = vmul.f32 %v3314_v29, %v1612_v32  ;;  %v914_v4 = vmul.f32 0.3275911, %v4592_v23  ;;  %v4604_v8 = vmul.f32 0.70710677, %v4586_v27 }
 0x1bc   : > { %v4608_v52 = vadd.f32 %v5935_v46, %v3696_v11  ;;  %v2248_v49 = vadd.f32 1.0, %v2184_v2  ;;  %v2123_v1 = vsub.f32 0.0, %v1995_v47  ;;  %v1358_v7 = vmul.f32 %v4509_v43, %v1294_v31 }
 0x1bd   : > { %5934 = vst [vmem:[#allocation16_spill] sm:$0xff] %v4604_v8  ;;  %v1742_v42 = vmul.f32 %v1678_v9, %v4431_v28  ;;  %v3316_v50 = vpop.eup %3315  ;;  %v1549_v30 = vadd.f32 0.2548296, %v1485_v36  ;;  %v1487_v62 = vmul.f32 %v4468_v34, %v1423_v51  ;;  %v978_v32 = vadd.f32 1.0, %v914_v4 }
 0x1be   : > { %v4616_v57 = vand.u32 2147483647, %v4604_v8  ;;  %v4618_v54 = vpop.eup %3317  ;;  %v2249_v29 = vadd.f32 1.0, %v2185_v53  ;;  %v1994_v46 = vsub.f32 1.0, %v4599_v38  ;;  %vm2058_vm6 = vcmp.lt.f32.partialorder %v4297_v40, 0.0 }
 0x1bf   : > { %vm2060_vm7 = vcmp.lt.f32.partialorder %v4301_v6, 0.0  ;;  %v1168_v31 = vadd.f32 -1.4531521, %v1104_v45  ;;  %v4624_v28 = vmul.f32 0.70710677, %v4608_v52  ;;  %v1996_v9 = vsub.f32 1.0, %v1932_v44 }
 0x1c0   : > { %v1105_v2 = vmul.f32 1.0614054, %v4618_v54  ;;  %3323 = vrcp.f32 %v978_v32  ;;  %v916_v4 = vmul.f32 0.3275911, %v4616_v57  ;;  %v4629_v36 = vmul.f32 %v2248_v49, %v4417_v48 }
 0x1c1   : > { %5937 = vst [vmem:[#allocation5_spill] sm:$0xff] %v4624_v28  ;;  %v1422_v51 = vadd.f32 -0.28449672, %v1358_v7  ;;  %v1831_v53 = vmul.f32 1.442695, %v1742_v42  ;;  %v2187_v45 = vsel %vm2059_vm5, %v2123_v1, %v1995_v47  ;;  %v1613_v3 = vmul.f32 %v4448_v56, %v1549_v30  ;;  %v5940_v47 = vld [vmem:[#allocation23_spill] sm:$0xff] }
 0x1c2   : > { %5938 = vst [vmem:[#allocation22_spill] sm:$0xff] %v4629_v36  ;;  %v4632_v38 = vand.u32 2147483647, %v4624_v28  ;;  %v1551_v58 = vadd.f32 0.2548296, %v1487_v62  ;;  %v980_v44 = vadd.f32 1.0, %v916_v4  ;;  %v1232_v32 = vmul.f32 %v4578_v10, %v1168_v31 }
 0x1c3   : > { %v1680_v37 = vsub.f32 0.0, %v4493_v41  ;;  %v1169_v48 = vadd.f32 -1.4531521, %v1105_v2  ;;  %v2122_v42 = vsub.f32 0.0, %v1994_v46  ;;  %v2124_v36 = vsub.f32 0.0, %v1996_v9  ;;  %v3208_v56 = vld [vmem:[%s5813_s3 + $0x38] sm:$0xff]  }
 0x1c4   : > { %v917_v49 = vmul.f32 0.3275911, %v4632_v38  ;;  %v4642_v7 = vpop.eup %3319  ;;  %3325 = vrcp.f32 %v980_v44  ;;  %v4646_v35 = vadd.f32 %v5940_v47, %v3698_v12  ;;  %v4652_v30 = vmul.f32 %v2249_v29, %v4437_v16  ;;  %3009 = vmatpush3.bf16.msra.mxu0 %v3208_v56 }
 0x1c5   : > { %v3322_v1 = vpop.eup %3321  ;;  %v1486_v62 = vmul.f32 %v4509_v43, %v1422_v51  ;;  %v1107_v31 = vmul.f32 1.0614054, %v4642_v7  ;;  %v1933_v4 = vmul.f32 %v3316_v50, %v1613_v3  ;;  %v1615_v44 = vmul.f32 %v4468_v34, %v1551_v58  ;;  %v5942_v51 = vld [vmem:[#allocation24_spill] sm:$0xff] }
 0x1c6   : > { %5941 = vst [vmem:[#allocation23_spill] sm:$0xff] %v4652_v30  ;;  %v981_v2 = vadd.f32 1.0, %v917_v49  ;;  %3327 = vpow2.f32 %v1831_v53  ;;  %v4658_v47 = vmul.f32 0.5, %v4459_v25  ;;  %v2251_v24 = vadd.f32 1.0, %v2187_v45 }
 0x1c7   : > { %v1296_v28 = vadd.f32 1.4214138, %v1232_v32  ;;  %v1233_v8 = vmul.f32 %v4618_v54, %v1169_v48  ;;  %v2186_v16 = vsel %vm2058_vm6, %v2122_v42, %v1994_v46  ;;  %v2188_v29 = vsel %vm2060_vm7, %v2124_v36, %v1996_v9  ;;  %v4686_v48 = vpop.f32.mrb[26].mxu1 }
 0x1c8   : > { %3329 = vrcp.f32 %v981_v2  ;;  %v1744_v3 = vmul.f32 %v1680_v37, %v4493_v41  ;;  %v4667_v58 = vmul.f32 0.70710677, %v4646_v35  ;;  %vm2061_vm8 = vcmp.lt.f32.partialorder %v4343_v22, 0.0  ;;  %5943 = vst [vmem:[#allocation24_spill] sm:$0xff] %v4686_v48  ;;  %v5974_v48 = vld [vmem:[#allocation7_spill] sm:$0xff] }
 0x1c9   : > { %v1550_v25 = vadd.f32 0.2548296, %v1486_v62  ;;  %v1681_v34 = vsub.f32 0.0, %v4530_v20  ;;  %v1171_v50 = vadd.f32 -1.4531521, %v1107_v31  ;;  %v4673_v53 = vadd.f32 %v5942_v51, %v3706_v19 }
 0x1ca   : > { %v4675_v40 = vpop.eup %3323  ;;  %v1997_v46 = vsub.f32 1.0, %v1933_v4  ;;  %v4677_v6 = vmul.f32 %v3322_v1, %v1615_v44  ;;  %v4680_v37 = vmul.f32 0.5, %v4499_v0  ;;  %v4683_v41 = vand.u32 2147483647, %v4667_v58 }
 0x1cb   : > { %v2250_v9 = vadd.f32 1.0, %v2186_v16  ;;  %v2252_v36 = vadd.f32 1.0, %v2188_v29  ;;  %v1360_v45 = vmul.f32 %v4578_v10, %v1296_v28  ;;  %v1297_v32 = vadd.f32 1.4214138, %v1233_v8 }
 0x1cc   : > { %v4689_v49 = vmul.f32 %v2251_v24, %v4445_v63  ;;  %v1106_v42 = vmul.f32 1.0614054, %v4675_v40  ;;  %v919_v56 = vmul.f32 0.3275911, %v4683_v41  ;;  %v4694_v0 = vmul.f32 0.70710677, %v4673_v53 }
 0x1cd   : > { %v1614_v1 = vmul.f32 %v4509_v43, %v1550_v25  ;;  %v1835_v62 = vmul.f32 1.442695, %v1744_v3  ;;  %v1745_v31 = vmul.f32 %v1681_v34, %v4530_v20  ;;  %v1235_v28 = vmul.f32 %v4642_v7, %v1171_v50  ;;  %v5947_v43 = vld [vmem:[#allocation10_spill] sm:$0xff] }
 0x1ce   : > { %5944 = vst [vmem:[#allocation45_spill] sm:$0xff] %v4689_v49  ;;  %v4699_v8 = vpop.eup %3325  ;;  %v2125_v2 = vsub.f32 0.0, %v1997_v46  ;;  %v1999_v24 = vsub.f32 1.0, %v4677_v6  ;;  %v983_v63 = vadd.f32 1.0, %v919_v56  ;;  %v4703_v4 = vand.u32 2147483647, %v4694_v0 }
 0x1cf   : > { %v4706_v44 = vmul.f32 %v2250_v9, %v4472_v17  ;;  %v4709_v16 = vmul.f32 %v2252_v36, %v4477_v15  ;;  %vm2063_vm9 = vcmp.lt.f32.partialorder %v5947_v43, 0.0  ;;  %v1424_v20 = vadd.f32 -0.28449672, %v1360_v45  ;;  %v4762_v43 = vpop.f32.mrb[27].mxu1 }
 0x1d0   : > { %v1108_v29 = vmul.f32 1.0614054, %v4699_v8  ;;  %v3328_v3 = vpop.eup %3327  ;;  %v1361_v25 = vmul.f32 %v4618_v54, %v1297_v32  ;;  %v1683_v34 = vsub.f32 0.0, %v4559_v13  ;;  %v1170_v50 = vadd.f32 -1.4531521, %v1106_v42  ;;  %v3209_v32 = vld [vmem:[%s5813_s3 + $0xf8] sm:$0xff]  }
 0x1d1   : > { %5945 = vst [vmem:[#allocation46_spill] sm:$0xff] %v4706_v44  ;;  %5946 = vst [vmem:[#allocation47_spill] sm:$0xff] %v4709_v16  ;;  %v918_v51 = vmul.f32 0.3275911, %v4703_v4  ;;  %v1934_v17 = vmul.f32 %v3328_v3, %v1614_v1  ;;  %v1837_v9 = vmul.f32 1.442695, %v1745_v31  ;;  %3331 = vrcp.f32 %v983_v63  ;;  %3072 = vmatprep.subr.bf16.mxu1 %v3209_v32 }
 0x1d2   : > { %v4716_v6 = vpop.eup %3329  ;;  %v1299_v56 = vadd.f32 1.4214138, %v1235_v28  ;;  %v2189_v15 = vsel %vm2061_vm8, %v2125_v2, %v1997_v46  ;;  %v2127_v36 = vsub.f32 0.0, %v1999_v24  ;;  %3333 = vpow2.f32 %v1835_v62  ;;  %v4724_v42 = vpop.f32.mrb[27].mxu0  ;;  %v5949_v31 = vld [vmem:[#allocation27_spill] sm:$0xff]  ;;  %5951 = vst [vmem:[#allocation48_spill] sm:$0xff] %v4762_v43 }
 0x1d3   : > { %v1109_v45 = vmul.f32 1.0614054, %v4716_v6  ;;  %5948 = vst [vmem:[#allocation10_spill] sm:$0xff] %v4724_v42  ;;  %v1488_v49 = vmul.f32 %v4578_v10, %v1424_v20  ;;  %v1172_v30 = vadd.f32 -1.4531521, %v1108_v29  ;;  %v982_v1 = vadd.f32 1.0, %v918_v51 }
 0x1d4   : > { %v4729_v28 = vadd.f32 %v5949_v31, %v3714_v26  ;;  %vm2062_vm10 = vcmp.lt.f32.partialorder %v4425_v39, 0.0  ;;  %v1425_v22 = vadd.f32 -0.28449672, %v1361_v25  ;;  %v1747_v46 = vmul.f32 %v1683_v34, %v4559_v13 }
 0x1d5   : > { %v1234_v62 = vmul.f32 %v4675_v40, %v1170_v50  ;;  %v1173_v2 = vadd.f32 -1.4531521, %v1109_v45  ;;  %v1998_v63 = vsub.f32 1.0, %v1934_v17  ;;  %v1363_v3 = vmul.f32 %v4642_v7, %v1299_v56 }
 0x1d6   : > { %v1682_v20 = vsub.f32 0.0, %v4592_v23  ;;  %3335 = vrcp.f32 %v982_v1  ;;  %v2253_v29 = vadd.f32 1.0, %v2189_v15  ;;  %v4737_v51 = vmul.f32 0.5, %v4524_v55 }
 0x1d7   : > { %3337 = vpow2.f32 %v1837_v9  ;;  %v4740_v31 = vmul.f32 0.5, %v4553_v18  ;;  %v1552_v25 = vadd.f32 0.2548296, %v1488_v49  ;;  %v1236_v13 = vmul.f32 %v4699_v8, %v1172_v30 }
 0x1d8   : > { %v1684_v34 = vsub.f32 0.0, %v4616_v57  ;;  %v4745_v50 = vmul.f32 0.70710677, %v4729_v28  ;;  %v2191_v17 = vsel %vm2063_vm9, %v2127_v36, %v1999_v24  ;;  %v1489_v56 = vmul.f32 %v4618_v54, %v1425_v22 }
 0x1d9   : > { %v1298_v9 = vadd.f32 1.4214138, %v1234_v62  ;;  %v1237_v55 = vmul.f32 %v4716_v6, %v1173_v2  ;;  %v2126_v15 = vsub.f32 0.0, %v1998_v63  ;;  %v1427_v45 = vadd.f32 -0.28449672, %v1363_v3 }
 0x1da   : > { %v1841_v18 = vmul.f32 1.442695, %v1747_v46  ;;  %v1746_v49 = vmul.f32 %v1682_v20, %v4592_v23  ;;  %v4753_v30 = vmul.f32 %v2253_v29, %v4505_v33  ;;  %v4756_v32 = vmul.f32 0.5, %v4586_v27 }
 0x1db   : > { %v1685_v1 = vsub.f32 0.0, %v4632_v38  ;;  %v4760_v24 = vand.u32 2147483647, %v4745_v50  ;;  %v4764_v36 = vpop.eup %3331  ;;  %v2255_v22 = vadd.f32 1.0, %v2191_v17  ;;  %v1616_v46 = vmul.f32 %v4578_v10, %v1552_v25 }
 0x1dc   : > { %5950 = vst [vmem:[#allocation27_spill] sm:$0xff] %v4753_v30  ;;  %v1300_v62 = vadd.f32 1.4214138, %v1236_v13  ;;  %v1748_v23 = vmul.f32 %v1684_v34, %v4616_v57  ;;  %v3334_v33 = vpop.eup %3333  ;;  %v1553_v2 = vadd.f32 0.2548296, %v1489_v56  ;;  %v1362_v27 = vmul.f32 %v4675_v40, %v1298_v9  ;;  %v5952_v57 = vld [vmem:[#allocation8_spill] sm:$0xff] }
 0x1dd   : > { %v1301_v3 = vadd.f32 1.4214138, %v1237_v55  ;;  %v920_v20 = vmul.f32 0.3275911, %v4760_v24  ;;  %v2190_v29 = vsel %vm2062_vm10, %v2126_v15, %v1998_v63  ;;  %v1491_v30 = vmul.f32 %v4642_v7, %v1427_v45 }
 0x1de   : > { %3339 = vpow2.f32 %v1841_v18  ;;  %v1839_v16 = vmul.f32 1.442695, %v1746_v49  ;;  %v1749_v17 = vmul.f32 %v1685_v1, %v4632_v38  ;;  %v1111_v10 = vmul.f32 1.0614054, %v4764_v36  ;;  %v3210_v38 = vld [vmem:[%s5813_s3 + $0xb8] sm:$0xff]  }
 0x1df   : > { %v984_v25 = vadd.f32 1.0, %v920_v20  ;;  %v4777_v13 = vadd.f32 %v5952_v57, %v3696_v11  ;;  %v4782_v56 = vmul.f32 %v2255_v22, %v4556_v14  ;;  %v1936_v39 = vmul.f32 %v3334_v33, %v1616_v46  ;;  %v5954_v14 = vld [vmem:[#allocation30_spill] sm:$0xff]  ;;  %3073 = vmatpush3.bf16.msra.mxu1 %v3210_v38 }
 0x1e0   : > { %v4779_v34 = vpop.eup %3335  ;;  %v1364_v63 = vmul.f32 %v4699_v8, %v1300_v62  ;;  %v1843_v9 = vmul.f32 1.442695, %v1748_v23  ;;  %v2254_v15 = vadd.f32 1.0, %v2190_v29  ;;  %v1617_v45 = vmul.f32 %v4618_v54, %v1553_v2  ;;  %v4802_v2 = vpop.f32.mrb[28].mxu0 }
 0x1e1   : > { %5953 = vst [vmem:[#allocation8_spill] sm:$0xff] %v4782_v56  ;;  %v3338_v55 = vpop.eup %3337  ;;  %v1426_v18 = vadd.f32 -0.28449672, %v1362_v27  ;;  %v1365_v49 = vmul.f32 %v4716_v6, %v1301_v3  ;;  %v1555_v1 = vadd.f32 0.2548296, %v1491_v30  ;;  %3341 = vrcp.f32 %v984_v25  ;;  %5955 = vst [vmem:[#allocation30_spill] sm:$0xff] %v4802_v2 }
 0x1e2   : > { %v1110_v20 = vmul.f32 1.0614054, %v4779_v34  ;;  %v4793_v22 = vadd.f32 %v5954_v14, %v3698_v12  ;;  %vm2064_vm11 = vcmp.lt.f32.partialorder %v4483_v59, 0.0  ;;  %3343 = vpow2.f32 %v1839_v16  ;;  %v4804_v27 = vpop.f32.mrb[28].mxu1  ;;  %v5958_v59 = vld [vmem:[#allocation2_spill] sm:$0xff] }
 0x1e3   : > { %v1845_v46 = vmul.f32 1.442695, %v1749_v17  ;;  %v1175_v62 = vadd.f32 -1.4531521, %v1111_v10  ;;  %v4797_v23 = vmul.f32 0.70710677, %v4777_v13  ;;  %3345 = vpow2.f32 %v1843_v9 }
 0x1e4   : > { %v2000_v54 = vsub.f32 1.0, %v1936_v39  ;;  %v1428_v33 = vadd.f32 -0.28449672, %v1364_v63  ;;  %v4800_v30 = vmul.f32 0.5, %v4608_v52  ;;  %5956 = vst [vmem:[#allocation49_spill] sm:$0xff] %v4804_v27  ;;  %v1937_v3 = vmul.f32 %v3338_v55, %v1617_v45  ;;  %v5963_v27 = vld [vmem:[#allocation16_spill] sm:$0xff] }
 0x1e5   : > { %v1490_v29 = vmul.f32 %v4675_v40, %v1426_v18  ;;  %v1429_v25 = vadd.f32 -0.28449672, %v1365_v49  ;;  %v4808_v16 = vmul.f32 0.5, %v4646_v35  ;;  %v1619_v17 = vmul.f32 %v4642_v7, %v1555_v1 }
 0x1e6   : > { %v1174_v10 = vadd.f32 -1.4531521, %v1110_v20  ;;  %v4812_v57 = vand.u32 2147483647, %v4797_v23  ;;  %v4815_v52 = vmul.f32 0.70710677, %v4793_v22  ;;  %v4818_v39 = vmul.f32 %v2254_v15, %v4582_v60 }
 0x1e7   : > { %3347 = vpow2.f32 %v1845_v46  ;;  %v1239_v63 = vmul.f32 %v4764_v36, %v1175_v62  ;;  %v1687_v9 = vsub.f32 0.0, %v4683_v41  ;;  %v2128_v35 = vsub.f32 0.0, %v2000_v54 }
 0x1e8   : > { %5957 = vst [vmem:[#allocation50_spill] sm:$0xff] %v4818_v39  ;;  %v3340_v38 = vpop.eup %3339  ;;  %vm2065_vm12 = vcmp.lt.f32.partialorder %v4514_v21, 0.0  ;;  %v1492_v7 = vmul.f32 %v4699_v8, %v1428_v33  ;;  %v921_v55 = vmul.f32 0.3275911, %v4812_v57  ;;  %v4826_v45 = vand.u32 2147483647, %v4815_v52 }
 0x1e9   : > { %v2001_v18 = vsub.f32 1.0, %v1937_v3  ;;  %v1554_v49 = vadd.f32 0.2548296, %v1490_v29  ;;  %v1493_v60 = vmul.f32 %v4716_v6, %v1429_v25  ;;  %v1686_v15 = vsub.f32 0.0, %v4703_v4 }
 0x1ea   : > { %v1939_v1 = vmul.f32 %v3340_v38, %v1619_v17  ;;  %v1238_v20 = vmul.f32 %v4779_v34, %v1174_v10  ;;  %v985_v14 = vadd.f32 1.0, %v921_v55  ;;  %v923_v46 = vmul.f32 0.3275911, %v4826_v45 }
 0x1eb   : > { %v1303_v62 = vadd.f32 1.4214138, %v1239_v63  ;;  %v1751_v33 = vmul.f32 %v1687_v9, %v4683_v41  ;;  %v4834_v56 = vmul.f32 0.5, %v4673_v53  ;;  %v4837_v39 = vmul.f32 0.5, %v4729_v28  ;;  %v4839_v3 = vpop.eup %3341 }
 0x1ec   : > { %v2192_v29 = vsel %vm2064_vm11, %v2128_v35, %v2000_v54  ;;  %v1556_v25 = vadd.f32 0.2548296, %v1492_v7  ;;  %3349 = vrcp.f32 %v985_v14  ;;  %v987_v17 = vadd.f32 1.0, %v923_v46  ;;  %v3344_v10 = vpop.eup %3343 }
 0x1ed   : > { %v2129_v38 = vsub.f32 0.0, %v2001_v18  ;;  %vm2067_vm13 = vcmp.lt.f32.partialorder %v4548_v5, 0.0  ;;  %v1618_v41 = vmul.f32 %v4675_v40, %v1554_v49  ;;  %v1557_v63 = vadd.f32 0.2548296, %v1493_v60  ;;  %v3346_v9 = vpop.eup %3345  ;;  %v5959_v60 = vld [vmem:[#allocation33_spill] sm:$0xff] }
 0x1ee   : > { %v1112_v53 = vmul.f32 1.0614054, %v4839_v3  ;;  %v2003_v28 = vsub.f32 1.0, %v1939_v1  ;;  %v1302_v55 = vadd.f32 1.4214138, %v1238_v20  ;;  %v1750_v44 = vmul.f32 %v1686_v15, %v4703_v4  ;;  %v5965_v5 = vld [vmem:[#allocation5_spill] sm:$0xff] }
 0x1ef   : > { %v4849_v54 = vadd.f32 %v5958_v59, %v3706_v19  ;;  %v1367_v35 = vmul.f32 %v4764_v36, %v1303_v62  ;;  %v1849_v7 = vmul.f32 1.442695, %v1751_v33  ;;  %3351 = vrcp.f32 %v987_v17  ;;  %v4864_v17 = vpop.f32.mrb[29].mxu0  ;;  %v4870_v59 = vpop.f32.mrb[29].mxu1 }
 0x1f0   : > { %v1176_v14 = vadd.f32 -1.4531521, %v1112_v53  ;;  %v2256_v46 = vadd.f32 1.0, %v2192_v29  ;;  %v1620_v40 = vmul.f32 %v4699_v8, %v1556_v25  ;;  %v4858_v1 = vadd.f32 %v5959_v60, %v3714_v26  ;;  %5960 = vst [vmem:[#allocation2_spill] sm:$0xff] %v4864_v17  ;;  %5961 = vst [vmem:[#allocation33_spill] sm:$0xff] %v4870_v59 }
 0x1f1   : > { %v4854_v49 = vmul.f32 0.70710677, %v4849_v54  ;;  %v3348_v4 = vpop.eup %3347  ;;  %v2193_v15 = vsel %vm2065_vm12, %v2129_v38, %v2001_v18  ;;  %v1938_v20 = vmul.f32 %v3344_v10, %v1618_v41  ;;  %v1621_v62 = vmul.f32 %v4716_v6, %v1557_v63  ;;  %v5962_v6 = vld [vmem:[#allocation34_spill] sm:$0xff] }
 0x1f2   : > { %v1240_v33 = vmul.f32 %v4839_v3, %v1176_v14  ;;  %v2131_v29 = vsub.f32 0.0, %v2003_v28  ;;  %v1366_v8 = vmul.f32 %v4779_v34, %v1302_v55  ;;  %v1847_v25 = vmul.f32 1.442695, %v1750_v44 }
 0x1f3   : > { %v4868_v53 = vand.u32 2147483647, %v4854_v49  ;;  %v1431_v60 = vadd.f32 -0.28449672, %v1367_v35  ;;  %v1688_v21 = vsub.f32 0.0, %v4760_v24  ;;  %v4878_v10 = vadd.f32 %v5962_v6, %v3696_v11 }
 0x1f4   : > { %v4874_v18 = vmul.f32 0.70710677, %v4858_v1  ;;  %v2257_v38 = vadd.f32 1.0, %v2193_v15  ;;  %vm2066_vm14 = vcmp.lt.f32.partialorder %v4576_v61, 0.0  ;;  %v1940_v41 = vmul.f32 %v3346_v9, %v1620_v40  ;;  %v5969_v61 = vld [vmem:[#allocation36_spill] sm:$0xff] }
 0x1f5   : > { %3353 = vpow2.f32 %v1849_v7  ;;  %v922_v44 = vmul.f32 0.3275911, %v4868_v53  ;;  %v2002_v63 = vsub.f32 1.0, %v1938_v20  ;;  %v1941_v55 = vmul.f32 %v3348_v4, %v1621_v62 }
 0x1f6   : > { %v1304_v14 = vadd.f32 1.4214138, %v1240_v33  ;;  %v4883_v35 = vand.u32 2147483647, %v4874_v18  ;;  %v4885_v59 = vpop.eup %3349  ;;  %v2195_v17 = vsel %vm2067_vm13, %v2131_v29, %v2003_v28  ;;  %v1430_v6 = vadd.f32 -0.28449672, %v1366_v8 }
 0x1f7   : > { %3355 = vpow2.f32 %v1847_v25  ;;  %v986_v15 = vadd.f32 1.0, %v922_v44  ;;  %vm2068_vm15 = vcmp.lt.f32.partialorder %v5963_v27, 0.0  ;;  %v1495_v9 = vmul.f32 %v4764_v36, %v1431_v60 }
 0x1f8   : > { %v1752_v7 = vmul.f32 %v1688_v21, %v4760_v24  ;;  %v1113_v40 = vmul.f32 1.0614054, %v4885_v59  ;;  %v4894_v4 = vmul.f32 0.70710677, %v4878_v10  ;;  %v4897_v20 = vmul.f32 %v2256_v46, %v4658_v47  ;;  %v4906_v46 = vpop.f32.mrb[30].mxu0 }
 0x1f9   : > { %v2004_v62 = vsub.f32 1.0, %v1940_v41  ;;  %vm2069_vm0 = vcmp.lt.f32.partialorder %v5965_v5, 0.0  ;;  %3357 = vrcp.f32 %v986_v15  ;;  %v924_v28 = vmul.f32 0.3275911, %v4883_v35  ;;  %v4901_v33 = vpop.eup %3351  ;;  %5966 = vst [vmem:[#allocation16_spill] sm:$0xff] %v4906_v46 }
 0x1fa   : > { %5964 = vst [vmem:[#allocation34_spill] sm:$0xff] %v4897_v20  ;;  %v2259_v29 = vadd.f32 1.0, %v2195_v17  ;;  %v2130_v8 = vsub.f32 0.0, %v2002_v63  ;;  %v2005_v25 = vsub.f32 1.0, %v1941_v55  ;;  %v1368_v24 = vmul.f32 %v4839_v3, %v1304_v14 }
 0x1fb   : > { %v1494_v60 = vmul.f32 %v4779_v34, %v1430_v6  ;;  %v1177_v21 = vadd.f32 -1.4531521, %v1113_v40  ;;  %v1115_v44 = vmul.f32 1.0614054, %v4901_v33  ;;  %v988_v47 = vadd.f32 1.0, %v924_v28 }
 0x1fc   : > { %v4909_v41 = vmul.f32 %v2257_v38, %v4680_v37  ;;  %v1559_v15 = vadd.f32 0.2548296, %v1495_v9  ;;  %v1851_v20 = vmul.f32 1.442695, %v1752_v7  ;;  %v4912_v2 = vand.u32 2147483647, %v4894_v4 }
 0x1fd   : > { %v2132_v17 = vsub.f32 0.0, %v2004_v62  ;;  %v4915_v55 = vmul.f32 0.5, %v4777_v13  ;;  %v1179_v14 = vadd.f32 -1.4531521, %v1115_v44  ;;  %3359 = vrcp.f32 %v988_v47 }
 0x1fe   : > { %5967 = vst [vmem:[#allocation5_spill] sm:$0xff] %v4909_v41  ;;  %v2194_v6 = vsel %vm2066_vm14, %v2130_v8, %v2002_v63  ;;  %v2133_v40 = vsub.f32 0.0, %v2005_v25  ;;  %v1432_v28 = vadd.f32 -0.28449672, %v1368_v24  ;;  %v925_v46 = vmul.f32 0.3275911, %v4912_v2 }
 0x1ff   : > { %v3354_v37 = vpop.eup %3353  ;;  %v1558_v38 = vadd.f32 0.2548296, %v1494_v60  ;;  %v1241_v9 = vmul.f32 %v4885_v59, %v1177_v21  ;;  %v1689_v7 = vsub.f32 0.0, %v4812_v57  ;;  %v5968_v41 = vld [vmem:[#allocation35_spill] sm:$0xff]  ;;  %v1623_v13 = vmul.f32 %v4764_v36, %v1559_v15 }
 0x200   : > { %v4924_v43 = vadd.f32 %v5968_v41, %v3698_v12  ;;  %3361 = vpow2.f32 %v1851_v20  ;;  %v989_v44 = vadd.f32 1.0, %v925_v46  ;;  %v4929_v63 = vadd.f32 %v5969_v61, %v3706_v19  ;;  %v4940_v41 = vpop.f32.mrb[30].mxu1 }
 0x201   : > { %v3356_v8 = vpop.eup %3355  ;;  %v2196_v24 = vsel %vm2068_vm15, %v2132_v17, %v2004_v62  ;;  %v4934_v60 = vmul.f32 0.5, %v4793_v22  ;;  %v1243_v21 = vmul.f32 %v4901_v33, %v1179_v14  ;;  %5970 = vst [vmem:[#allocation35_spill] sm:$0xff] %v4940_v41  ;;  %v2258_v36 = vadd.f32 1.0, %v2194_v6 }
 0x202   : > { %v4938_v47 = vmul.f32 0.70710677, %v4924_v43  ;;  %v2197_v20 = vsel %vm2069_vm0, %v2133_v40, %v2005_v25  ;;  %v1496_v46 = vmul.f32 %v4839_v3, %v1432_v28  ;;  %3363 = vrcp.f32 %v989_v44 }
 0x203   : > { %v4945_v15 = vpop.eup %3357  ;;  %v1622_v27 = vmul.f32 %v4779_v34, %v1558_v38  ;;  %v1305_v22 = vadd.f32 1.4214138, %v1241_v9  ;;  %v1753_v62 = vmul.f32 %v1689_v7, %v4812_v57  ;;  %v2260_v14 = vadd.f32 1.0, %v2196_v24 }
 0x204   : > { %v4950_v17 = vand.u32 2147483647, %v4938_v47  ;;  %v1943_v61 = vmul.f32 %v3354_v37, %v1623_v13  ;;  %v1114_v6 = vmul.f32 1.0614054, %v4945_v15  ;;  %v4954_v5 = vmul.f32 0.70710677, %v4929_v63 }
 0x205   : > { %v2261_v25 = vadd.f32 1.0, %v2197_v20  ;;  %v1307_v40 = vadd.f32 1.4214138, %v1243_v21  ;;  %v1691_v28 = vsub.f32 0.0, %v4826_v45  ;;  %v4959_v34 = vmul.f32 %v2259_v29, %v4737_v51  ;;  %v4968_v20 = vpop.f32.mrb[31].mxu0 }
 0x206   : > { %v927_v44 = vmul.f32 0.3275911, %v4950_v17  ;;  %v1560_v57 = vadd.f32 0.2548296, %v1496_v46  ;;  %v1178_v38 = vadd.f32 -1.4531521, %v1114_v6  ;;  %v1942_v7 = vmul.f32 %v3356_v8, %v1622_v27 }
 0x207   : > { %5971 = vst [vmem:[#allocation36_spill] sm:$0xff] %v4959_v34  ;;  %v4962_v9 = vand.u32 2147483647, %v4954_v5  ;;  %v4964_v37 = vpop.eup %3359  ;;  %vm2071_vm1 = vcmp.lt.f32.partialorder %v4667_v58, 0.0  ;;  %v1369_v13 = vmul.f32 %v4885_v59, %v1305_v22  ;;  %v1853_v24 = vmul.f32 1.442695, %v1753_v62 }
 0x208   : > { %v991_v21 = vadd.f32 1.0, %v927_v44  ;;  %5972 = vst [vmem:[#allocation51_spill] sm:$0xff] %v4968_v20  ;;  %v2007_v41 = vsub.f32 1.0, %v1943_v61  ;;  %v1242_v51 = vmul.f32 %v4945_v15, %v1178_v38  ;;  %v1116_v29 = vmul.f32 1.0614054, %v4964_v37 }
 0x209   : > { %v926_v46 = vmul.f32 0.3275911, %v4962_v9  ;;  %v1371_v6 = vmul.f32 %v4901_v33, %v1307_v40  ;;  %v1755_v34 = vmul.f32 %v1691_v28, %v4826_v45  ;;  %v1690_v42 = vsub.f32 0.0, %v4868_v53 }
 0x20a   : > { %3365 = vrcp.f32 %v991_v21  ;;  %v3362_v8 = vpop.eup %3361  ;;  %vm2070_vm2 = vcmp.lt.f32.partialorder %v4694_v0, 0.0  ;;  %v1624_v27 = vmul.f32 %v4839_v3, %v1560_v57  ;;  %v1306_v22 = vadd.f32 1.4214138, %v1242_v51 }
 0x20b   : > { %v1180_v62 = vadd.f32 -1.4531521, %v1116_v29  ;;  %v990_v61 = vadd.f32 1.0, %v926_v46  ;;  %v4979_v44 = vmul.f32 %v2258_v36, %v4740_v31  ;;  %v4982_v38 = vmul.f32 %v2260_v14, %v4756_v32 }
 0x20c   : > { %v2006_v40 = vsub.f32 1.0, %v1942_v7  ;;  %v1433_v20 = vadd.f32 -0.28449672, %v1369_v13  ;;  %v4984_v45 = vpop.eup %3363  ;;  %v2135_v28 = vsub.f32 0.0, %v2007_v41  ;;  %v4989_v3 = vadd.f32 %v5974_v48, %v3714_v26 }
 0x20d   : > { %5973 = vst [vmem:[#allocation52_spill] sm:$0xff] %v4982_v38  ;;  %v1244_v21 = vmul.f32 %v4964_v37, %v1180_v62  ;;  %3367 = vrcp.f32 %v990_v61  ;;  %v1435_v57 = vadd.f32 -0.28449672, %v1371_v6  ;;  %v1857_v51 = vmul.f32 1.442695, %v1755_v34  ;;  %v5001_v6 = vpop.f32.mrb[31].mxu1 }
 0x20e   : > { %v1754_v31 = vmul.f32 %v1690_v42, %v4868_v53  ;;  %v1117_v36 = vmul.f32 1.0614054, %v4984_v45  ;;  %v4994_v32 = vmul.f32 %v2261_v25, %v4800_v30  ;;  %v1944_v14 = vmul.f32 %v3362_v8, %v1624_v27 }
 0x20f   : > { %3369 = vpow2.f32 %v1853_v24  ;;  %v1370_v7 = vmul.f32 %v4945_v15, %v1306_v22  ;;  %v2134_v13 = vsub.f32 0.0, %v2006_v40  ;;  %v1497_v29 = vmul.f32 %v4885_v59, %v1433_v20 }
 0x210   : > { %5975 = vst [vmem:[#allocation7_spill] sm:$0xff] %v4994_v32  ;;  %v4999_v46 = vmul.f32 0.5, %v4849_v54  ;;  %v1181_v48 = vadd.f32 -1.4531521, %v1117_v36  ;;  %v2199_v42 = vsel %vm2071_vm1, %v2135_v28, %v2007_v41  ;;  %v1308_v53 = vadd.f32 1.4214138, %v1244_v21 }
 0x211   : > { %v1692_v30 = vsub.f32 0.0, %v4883_v35  ;;  %v5007_v25 = vmul.f32 0.70710677, %v4989_v3  ;;  %vm2072_vm3 = vcmp.lt.f32.partialorder %v4745_v50, 0.0  ;;  %v1499_v34 = vmul.f32 %v4901_v33, %v1435_v57 }
 0x212   : > { %3371 = vpow2.f32 %v1857_v51  ;;  %v1855_v24 = vmul.f32 1.442695, %v1754_v31  ;;  %v1245_v54 = vmul.f32 %v4984_v45, %v1181_v48  ;;  %v2008_v20 = vsub.f32 1.0, %v1944_v14  ;;  %v5976_v51 = vld [vmem:[#allocation25_spill] sm:$0xff] }
 0x213   : > { %v1434_v8 = vadd.f32 -0.28449672, %v1370_v7  ;;  %v5013_v27 = vmul.f32 0.5, %v4858_v1  ;;  %v5016_v58 = vand.u32 2147483647, %v5007_v25  ;;  %v2263_v22 = vadd.f32 1.0, %v2199_v42 }
 0x214   : > { %v5018_v41 = vpop.eup %3365  ;;  %v2198_v62 = vsel %vm2070_vm2, %v2134_v13, %v2006_v40  ;;  %v1561_v61 = vadd.f32 0.2548296, %v1497_v29  ;;  %v5023_v28 = vmul.f32 0.5, %v4878_v10  ;;  %v1372_v21 = vmul.f32 %v4964_v37, %v1308_v53 }
 0x215   : > { %v1756_v57 = vmul.f32 %v1692_v30, %v4883_v35  ;;  %v1119_v1 = vmul.f32 1.0614054, %v5018_v41  ;;  %v5030_v31 = vadd.f32 %v5976_v51, %v3696_v11  ;;  %v1563_v36 = vadd.f32 0.2548296, %v1499_v34 }
 0x216   : > { %3373 = vpow2.f32 %v1855_v24  ;;  %v1309_v14 = vadd.f32 1.4214138, %v1245_v54  ;;  %v928_v0 = vmul.f32 0.3275911, %v5016_v58  ;;  %v2136_v7 = vsub.f32 0.0, %v2008_v20 }
 0x217   : > { %v5033_v40 = vpop.eup %3367  ;;  %v1498_v10 = vmul.f32 %v4945_v15, %v1434_v8  ;;  %v1693_v13 = vsub.f32 0.0, %v4912_v2  ;;  %v1695_v35 = vsub.f32 0.0, %v4950_v17  ;;  %v1625_v29 = vmul.f32 %v4885_v59, %v1561_v61 }
 0x218   : > { %v1183_v48 = vadd.f32 -1.4531521, %v1119_v1  ;;  %v1118_v42 = vmul.f32 1.0614054, %v5033_v40  ;;  %v992_v53 = vadd.f32 1.0, %v928_v0  ;;  %v5041_v34 = vmul.f32 %v2263_v22, %v4808_v16 }
 0x219   : > { %v3370_v30 = vpop.eup %3369  ;;  %v2262_v24 = vadd.f32 1.0, %v2198_v62  ;;  %v1436_v54 = vadd.f32 -0.28449672, %v1372_v21  ;;  %v5044_v51 = vmul.f32 0.70710677, %v5030_v31  ;;  %v1627_v8 = vmul.f32 %v4901_v33, %v1563_v36 }
 0x21a   : > { %5977 = vst [vmem:[#allocation25_spill] sm:$0xff] %v5041_v34  ;;  %v1859_v32 = vmul.f32 1.442695, %v1756_v57  ;;  %v1373_v38 = vmul.f32 %v4984_v45, %v1309_v14  ;;  %3375 = vrcp.f32 %v992_v53  ;;  %v2200_v59 = vsel %vm2072_vm3, %v2136_v7, %v2008_v20  ;;  %v5979_v20 = vld [vmem:[#allocation38_spill] sm:$0xff] }
 0x21b   : > { %v1562_v61 = vadd.f32 0.2548296, %v1498_v10  ;;  %v1757_v1 = vmul.f32 %v1693_v13, %v4912_v2  ;;  %v5052_v16 = vand.u32 2147483647, %v5044_v51  ;;  %v1945_v62 = vmul.f32 %v3370_v30, %v1625_v29 }
 0x21c   : > { %v3372_v22 = vpop.eup %3371  ;;  %v1247_v21 = vmul.f32 %v5018_v41, %v1183_v48  ;;  %v1759_v0 = vmul.f32 %v1695_v35, %v4950_v17  ;;  %v1182_v33 = vadd.f32 -1.4531521, %v1118_v42  ;;  %v5057_v57 = vmul.f32 %v2262_v24, %v4834_v56 }
 0x21d   : > { %v1500_v36 = vmul.f32 %v4964_v37, %v1436_v54  ;;  %v929_v50 = vmul.f32 0.3275911, %v5052_v16  ;;  %v5063_v2 = vadd.f32 %v5979_v20, %v3698_v12  ;;  %v1947_v14 = vmul.f32 %v3372_v22, %v1627_v8  ;;  %v5980_v8 = vld [vmem:[#allocation40_spill] sm:$0xff] }
 0x21e   : > { %5978 = vst [vmem:[#allocation53_spill] sm:$0xff] %v5057_v57  ;;  %3377 = vpow2.f32 %v1859_v32  ;;  %v1437_v7 = vadd.f32 -0.28449672, %v1373_v38  ;;  %v5066_v10 = vmul.f32 0.5, %v4924_v43  ;;  %v2264_v13 = vadd.f32 1.0, %v2200_v59 }
 0x21f   : > { %vm2073_vm4 = vcmp.lt.f32.partialorder %v4797_v23, 0.0  ;;  %v1626_v56 = vmul.f32 %v4945_v15, %v1562_v61  ;;  %v1861_v17 = vmul.f32 1.442695, %v1757_v1  ;;  %v993_v35 = vadd.f32 1.0, %v929_v50 }
 0x220   : > { %v3374_v29 = vpop.eup %3373  ;;  %v2009_v48 = vsub.f32 1.0, %v1945_v62  ;;  %v1311_v42 = vadd.f32 1.4214138, %v1247_v21  ;;  %v1865_v53 = vmul.f32 1.442695, %v1759_v0  ;;  %v1246_v30 = vmul.f32 %v5033_v40, %v1182_v33 }
 0x221   : > { %v1564_v24 = vadd.f32 0.2548296, %v1500_v36  ;;  %v1694_v32 = vsub.f32 0.0, %v4962_v9  ;;  %3379 = vrcp.f32 %v993_v35  ;;  %v5073_v43 = vmul.f32 0.70710677, %v5063_v2 }
 0x222   : > { %v2011_v38 = vsub.f32 1.0, %v1947_v14  ;;  %vm2075_vm5 = vcmp.lt.f32.partialorder %v4815_v52, 0.0  ;;  %v1501_v15 = vmul.f32 %v4984_v45, %v1437_v7  ;;  %v5078_v54 = vmul.f32 0.5, %v4929_v63 }
 0x223   : > { %v5082_v59 = vadd.f32 %v5980_v8, %v3706_v19  ;;  %v5085_v61 = vmul.f32 %v2264_v13, %v4837_v39  ;;  %v1946_v1 = vmul.f32 %v3374_v29, %v1626_v56  ;;  %3381 = vpow2.f32 %v1861_v17 }
 0x224   : > { %v5088_v22 = vand.u32 2147483647, %v5073_v43  ;;  %v5090_v62 = vpop.eup %3375  ;;  %v2137_v21 = vsub.f32 0.0, %v2009_v48  ;;  %v1375_v0 = vmul.f32 %v5018_v41, %v1311_v42  ;;  %3383 = vpow2.f32 %v1865_v53 }
 0x225   : > { %5981 = vst [vmem:[#allocation38_spill] sm:$0xff] %v5085_v61  ;;  %v1310_v63 = vadd.f32 1.4214138, %v1246_v30  ;;  %v1628_v33 = vmul.f32 %v4964_v37, %v1564_v24  ;;  %v1758_v36 = vmul.f32 %v1694_v32, %v4962_v9  ;;  %v1120_v50 = vmul.f32 1.0614054, %v5090_v62  ;;  %v5982_v37 = vld [vmem:[#allocation13_spill] sm:$0xff] }
 0x226   : > { %v931_v39 = vmul.f32 0.3275911, %v5088_v22  ;;  %v2139_v20 = vsub.f32 0.0, %v2011_v38  ;;  %vm2074_vm6 = vcmp.lt.f32.partialorder %v4854_v49, 0.0  ;;  %v1565_v14 = vadd.f32 0.2548296, %v1501_v15 }
 0x227   : > { %v1696_v7 = vsub.f32 0.0, %v5016_v58  ;;  %v5100_v13 = vmul.f32 0.70710677, %v5082_v59  ;;  %v2010_v56 = vsub.f32 1.0, %v1946_v1  ;;  %v1184_v17 = vadd.f32 -1.4531521, %v1120_v50 }
 0x228   : > { %v995_v35 = vadd.f32 1.0, %v931_v39  ;;  %v5104_v29 = vadd.f32 %v5982_v37, %v3714_v26  ;;  %v3378_v9 = vpop.eup %3377  ;;  %v2201_v42 = vsel %vm2073_vm4, %v2137_v21, %v2009_v48  ;;  %v1439_v53 = vadd.f32 -0.28449672, %v1375_v0 }
 0x229   : > { %v1374_v30 = vmul.f32 %v5033_v40, %v1310_v63  ;;  %v5110_v24 = vand.u32 2147483647, %v5100_v13  ;;  %v1948_v32 = vmul.f32 %v3378_v9, %v1628_v33  ;;  %v1863_v15 = vmul.f32 1.442695, %v1758_v36 }
 0x22a   : > { %v1248_v8 = vmul.f32 %v5090_v62, %v1184_v17  ;;  %3385 = vrcp.f32 %v995_v35  ;;  %v1629_v1 = vmul.f32 %v4984_v45, %v1565_v14  ;;  %v5115_v50 = vmul.f32 0.5, %v4989_v3 }
 0x22b   : > { %v1760_v39 = vmul.f32 %v1696_v7, %v5016_v58  ;;  %v930_v23 = vmul.f32 0.3275911, %v5110_v24  ;;  %v5119_v48 = vpop.eup %3379  ;;  %v2265_v21 = vadd.f32 1.0, %v2201_v42  ;;  %v2203_v0 = vsel %vm2075_vm5, %v2139_v20, %v2011_v38 }
 0x22c   : > { %v2138_v63 = vsub.f32 0.0, %v2010_v56  ;;  %v5124_v33 = vmul.f32 0.70710677, %v5104_v29  ;;  %vm2076_vm7 = vcmp.lt.f32.partialorder %v4874_v18, 0.0  ;;  %v1503_v45 = vmul.f32 %v5018_v41, %v1439_v53 }
 0x22d   : > { %v1438_v3 = vadd.f32 -0.28449672, %v1374_v30  ;;  %v1121_v36 = vmul.f32 1.0614054, %v5119_v48  ;;  %v994_v58 = vadd.f32 1.0, %v930_v23  ;;  %v3382_v14 = vpop.eup %3381  ;;  %v2012_v7 = vsub.f32 1.0, %v1948_v32 }
 0x22e   : > { %3387 = vpow2.f32 %v1863_v15  ;;  %v1312_v17 = vadd.f32 1.4214138, %v1248_v8  ;;  %v5130_v35 = vand.u32 2147483647, %v5124_v33  ;;  %v3384_v52 = vpop.eup %3383  ;;  %v1949_v38 = vmul.f32 %v3382_v14, %v1629_v1  ;;  %v5983_v30 = vld [vmem:[#allocation14_spill] sm:$0xff] }
 0x22f   : > { %v1867_v20 = vmul.f32 1.442695, %v1760_v39  ;;  %v1185_v37 = vadd.f32 -1.4531521, %v1121_v36  ;;  %3389 = vrcp.f32 %v994_v58  ;;  %v2267_v9 = vadd.f32 1.0, %v2203_v0 }
 0x230   : > { %v2202_v42 = vsel %vm2074_vm6, %v2138_v63, %v2010_v56  ;;  %v932_v53 = vmul.f32 0.3275911, %v5130_v35  ;;  %v5137_v23 = vadd.f32 %v5983_v30, %v3696_v11  ;;  %v5140_v32 = vmul.f32 %v2265_v21, %v4915_v55 }
 0x231   : > { %v1567_v15 = vadd.f32 0.2548296, %v1503_v45  ;;  %v1502_v8 = vmul.f32 %v5033_v40, %v1438_v3  ;;  %v1249_v1 = vmul.f32 %v5119_v48, %v1185_v37  ;;  %v2140_v39 = vsub.f32 0.0, %v2012_v7 }
 0x232   : > { %5984 = vst [vmem:[#allocation40_spill] sm:$0xff] %v5140_v32  ;;  %vm2077_vm8 = vcmp.lt.f32.partialorder %v4894_v4, 0.0  ;;  %v1376_v49 = vmul.f32 %v5090_v62, %v1312_v17  ;;  %v1697_v56 = vsub.f32 0.0, %v5052_v16  ;;  %v996_v0 = vadd.f32 1.0, %v932_v53 }
 0x233   : > { %v2266_v63 = vadd.f32 1.0, %v2202_v42  ;;  %v2013_v36 = vsub.f32 1.0, %v1949_v38  ;;  %3391 = vpow2.f32 %v1867_v20  ;;  %v5148_v58 = vmul.f32 0.5, %v5030_v31  ;;  %v5986_v38 = vld [vmem:[#allocation15_spill] sm:$0xff] }
 0x234   : > { %v5150_v55 = vpop.eup %3385  ;;  %v5153_v21 = vmul.f32 %v2267_v9, %v4934_v60  ;;  %v1313_v45 = vadd.f32 1.4214138, %v1249_v1  ;;  %3393 = vrcp.f32 %v996_v0  ;;  %v5156_v3 = vmul.f32 0.70710677, %v5137_v23 }
 0x235   : > { %v1631_v14 = vmul.f32 %v5018_v41, %v1567_v15  ;;  %v1566_v17 = vadd.f32 0.2548296, %v1502_v8  ;;  %v1123_v37 = vmul.f32 1.0614054, %v5150_v55  ;;  %v5162_v20 = vadd.f32 %v5986_v38, %v3698_v12 }
 0x236   : > { %5985 = vst [vmem:[#allocation13_spill] sm:$0xff] %v5153_v21  ;;  %v2204_v31 = vsel %vm2076_vm7, %v2140_v39, %v2012_v7  ;;  %v1440_v42 = vadd.f32 -0.28449672, %v1376_v49  ;;  %v1761_v60 = vmul.f32 %v1697_v56, %v5052_v16  ;;  %v5168_v9 = vand.u32 2147483647, %v5156_v3  ;;  %v5988_v16 = vld [vmem:[#allocation3_spill] sm:$0xff] }
 0x237   : > { %v5171_v53 = vmul.f32 %v2266_v63, %v4999_v46  ;;  %v2141_v41 = vsub.f32 0.0, %v2013_v36  ;;  %v5174_v30 = vmul.f32 0.5, %v5063_v2  ;;  %v1187_v15 = vadd.f32 -1.4531521, %v1123_v37 }
 0x238   : > { %v3388_v8 = vpop.eup %3387  ;;  %v1377_v1 = vmul.f32 %v5119_v48, %v1313_v45  ;;  %v933_v18 = vmul.f32 0.3275911, %v5168_v9  ;;  %v5179_v7 = vmul.f32 0.70710677, %v5162_v20  ;;  %v5183_v39 = vadd.f32 %v5988_v16, %v3706_v19 }
 0x239   : > { %5987 = vst [vmem:[#allocation14_spill] sm:$0xff] %v5171_v53  ;;  %v5185_v49 = vpop.eup %3389  ;;  %v2268_v46 = vadd.f32 1.0, %v2204_v31  ;;  %v1951_v56 = vmul.f32 %v3384_v52, %v1631_v14  ;;  %v1630_v2 = vmul.f32 %v5033_v40, %v1566_v17  ;;  %v1251_v0 = vmul.f32 %v5150_v55, %v1187_v15 }
 0x23a   : > { %v1504_v63 = vmul.f32 %v5090_v62, %v1440_v42  ;;  %v1869_v45 = vmul.f32 1.442695, %v1761_v60  ;;  %v1122_v37 = vmul.f32 1.0614054, %v5185_v49  ;;  %v997_v38 = vadd.f32 1.0, %v933_v18 }
 0x23b   : > { %v2205_v21 = vsel %vm2077_vm8, %v2141_v41, %v2013_v36  ;;  %v1315_v34 = vadd.f32 1.4214138, %v1251_v0  ;;  %v1699_v16 = vsub.f32 0.0, %v5088_v22  ;;  %v5195_v32 = vand.u32 2147483647, %v5179_v7 }
 0x23c   : > { %vm2079_vm9 = vcmp.lt.f32.partialorder %v4938_v47, 0.0  ;;  %v1441_v40 = vadd.f32 -0.28449672, %v1377_v1  ;;  %v1186_v52 = vadd.f32 -1.4531521, %v1122_v37  ;;  %3395 = vrcp.f32 %v997_v38 }
 0x23d   : > { %v5199_v14 = vmul.f32 0.70710677, %v5183_v39  ;;  %v3392_v17 = vpop.eup %3391  ;;  %v2015_v31 = vsub.f32 1.0, %v1951_v56  ;;  %v1950_v42 = vmul.f32 %v3388_v8, %v1630_v2  ;;  %v1698_v4 = vsub.f32 0.0, %v5110_v24 }
 0x23e   : > { %v935_v36 = vmul.f32 0.3275911, %v5195_v32  ;;  %v5203_v60 = vpop.eup %3393  ;;  %v1568_v41 = vadd.f32 0.2548296, %v1504_v63  ;;  %3397 = vpow2.f32 %v1869_v45  ;;  %v5206_v15 = vmul.f32 0.5, %v5082_v59 }
 0x23f   : > { %v1250_v1 = vmul.f32 %v5185_v49, %v1186_v52  ;;  %v2269_v18 = vadd.f32 1.0, %v2205_v21  ;;  %v1379_v0 = vmul.f32 %v5150_v55, %v1315_v34  ;;  %v1763_v37 = vmul.f32 %v1699_v16, %v5088_v22 }
 0x240   : > { %v1124_v8 = vmul.f32 1.0614054, %v5203_v60  ;;  %vm2078_vm10 = vcmp.lt.f32.partialorder %v4954_v5, 0.0  ;;  %v1505_v56 = vmul.f32 %v5119_v48, %v1441_v40  ;;  %v999_v38 = vadd.f32 1.0, %v935_v36 }
 0x241   : > { %v1314_v2 = vadd.f32 1.4214138, %v1250_v1  ;;  %v5215_v63 = vand.u32 2147483647, %v5199_v14  ;;  %v2143_v59 = vsub.f32 0.0, %v2015_v31  ;;  %v2014_v45 = vsub.f32 1.0, %v1950_v42 }
 0x242   : > { %v1762_v52 = vmul.f32 %v1698_v4, %v5110_v24  ;;  %v1188_v21 = vadd.f32 -1.4531521, %v1124_v8  ;;  %v1632_v34 = vmul.f32 %v5090_v62, %v1568_v41  ;;  %3399 = vrcp.f32 %v999_v38  ;;  %v5989_v24 = vld [vmem:[#allocation19_spill] sm:$0xff] }
 0x243   : > { %v1378_v22 = vmul.f32 %v5185_v49, %v1314_v2  ;;  %v934_v16 = vmul.f32 0.3275911, %v5215_v63  ;;  %v1443_v61 = vadd.f32 -0.28449672, %v1379_v0  ;;  %v1873_v53 = vmul.f32 1.442695, %v1763_v37 }
 0x244   : > { %v1252_v40 = vmul.f32 %v5203_v60, %v1188_v21  ;;  %v1700_v36 = vsub.f32 0.0, %v5130_v35  ;;  %v5224_v1 = vmul.f32 %v2268_v46, %v5013_v27  ;;  %v1569_v42 = vadd.f32 0.2548296, %v1505_v56 }
 0x245   : > { %v998_v57 = vadd.f32 1.0, %v934_v16  ;;  %v5228_v4 = vadd.f32 %v5989_v24, %v3714_v26  ;;  %v2207_v62 = vsel %vm2079_vm9, %v2143_v59, %v2015_v31  ;;  %v2142_v41 = vsub.f32 0.0, %v2014_v45 }
 0x246   : > { %v1442_v8 = vadd.f32 -0.28449672, %v1378_v22  ;;  %v1316_v0 = vadd.f32 1.4214138, %v1252_v40  ;;  %v5232_v37 = vpop.eup %3395  ;;  %v5235_v2 = vmul.f32 %v2269_v18, %v5023_v28  ;;  %v1952_v38 = vmul.f32 %v3392_v17, %v1632_v34  ;;  %v5991_v28 = vld [vmem:[#allocation44_spill] sm:$0xff] }
 0x247   : > { %v1871_v27 = vmul.f32 1.442695, %v1762_v52  ;;  %3401 = vrcp.f32 %v998_v57  ;;  %v1507_v46 = vmul.f32 %v5150_v55, %v1443_v61  ;;  %v1764_v56 = vmul.f32 %v1700_v36, %v5130_v35 }
 0x248   : > { %5990 = vst [vmem:[#allocation15_spill] sm:$0xff] %v5235_v2  ;;  %3403 = vpow2.f32 %v1873_v53  ;;  %v1125_v21 = vmul.f32 1.0614054, %v5232_v37  ;;  %v3398_v47 = vpop.eup %3397  ;;  %v2271_v31 = vadd.f32 1.0, %v2207_v62  ;;  %v1633_v59 = vmul.f32 %v5119_v48, %v1569_v42 }
 0x249   : > { %v5242_v22 = vmul.f32 0.70710677, %v5228_v4  ;;  %v5246_v18 = vadd.f32 %v5991_v28, %v3696_v11  ;;  %v2206_v57 = vsel %vm2078_vm10, %v2142_v41, %v2014_v45  ;;  %vm2080_vm11 = vcmp.lt.f32.partialorder %v5007_v25, 0.0 }
 0x24a   : > { %v1506_v61 = vmul.f32 %v5185_v49, %v1442_v8  ;;  %v1380_v35 = vmul.f32 %v5203_v60, %v1316_v0  ;;  %v1189_v53 = vadd.f32 -1.4531521, %v1125_v21  ;;  %v2016_v17 = vsub.f32 1.0, %v1952_v38 }
 0x24b   : > { %3405 = vpow2.f32 %v1871_v27  ;;  %v5254_v48 = vmul.f32 0.5, %v5104_v29  ;;  %v5257_v52 = vand.u32 2147483647, %v5242_v22  ;;  %v1571_v34 = vadd.f32 0.2548296, %v1507_v46 }
 0x24c   : > { %v1875_v16 = vmul.f32 1.442695, %v1764_v56  ;;  %v1253_v5 = vmul.f32 %v5232_v37, %v1189_v53  ;;  %v5261_v45 = vmul.f32 0.70710677, %v5246_v18  ;;  %v5263_v40 = vpop.eup %3399  ;;  %v2270_v36 = vadd.f32 1.0, %v2206_v57 }
 0x24d   : > { %v1953_v42 = vmul.f32 %v3398_v47, %v1633_v59  ;;  %v1701_v24 = vsub.f32 0.0, %v5168_v9  ;;  %v936_v62 = vmul.f32 0.3275911, %v5257_v52  ;;  %v5268_v29 = vmul.f32 %v2271_v31, %v5066_v10 }
 0x24e   : > { %v1570_v41 = vadd.f32 0.2548296, %v1506_v61  ;;  %v1444_v8 = vadd.f32 -0.28449672, %v1380_v35  ;;  %v1127_v0 = vmul.f32 1.0614054, %v5263_v40  ;;  %v1635_v21 = vmul.f32 %v5150_v55, %v1571_v34 }
 0x24f   : > { %5992 = vst [vmem:[#allocation3_spill] sm:$0xff] %v5268_v29  ;;  %v2144_v38 = vsub.f32 0.0, %v2016_v17  ;;  %v1317_v27 = vadd.f32 1.4214138, %v1253_v5  ;;  %v1703_v46 = vsub.f32 0.0, %v5195_v32  ;;  %v1000_v56 = vadd.f32 1.0, %v936_v62 }
 0x250   : > { %vm2081_vm12 = vcmp.lt.f32.partialorder %v5044_v51, 0.0  ;;  %3407 = vpow2.f32 %v1875_v16  ;;  %v1191_v47 = vadd.f32 -1.4531521, %v1127_v0  ;;  %v5275_v59 = vand.u32 2147483647, %v5261_v45  ;;  %v5993_v62 = vld [vmem:[#allocation24_spill] sm:$0xff] }
 0x251   : > { %v5277_v10 = vpop.eup %3401  ;;  %v2017_v31 = vsub.f32 1.0, %v1953_v42  ;;  %v5280_v28 = vmul.f32 0.5, %v5137_v23  ;;  %v1765_v57 = vmul.f32 %v1701_v24, %v5168_v9  ;;  %3409 = vrcp.f32 %v1000_v56 }
 0x252   : > { %v3404_v61 = vpop.eup %3403  ;;  %v1634_v35 = vmul.f32 %v5185_v49, %v1570_v41  ;;  %v1508_v53 = vmul.f32 %v5203_v60, %v1444_v8  ;;  %v1255_v55 = vmul.f32 %v5263_v40, %v1191_v47  ;;  %v1126_v34 = vmul.f32 1.0614054, %v5277_v10 }
 0x253   : > { %v2208_v16 = vsel %vm2080_vm11, %v2144_v38, %v2016_v17  ;;  %v1381_v5 = vmul.f32 %v5232_v37, %v1317_v27  ;;  %v1767_v23 = vmul.f32 %v1703_v46, %v5195_v32  ;;  %v937_v42 = vmul.f32 0.3275911, %v5275_v59 }
 0x254   : > { %v5293_v9 = vmul.f32 %v2270_v36, %v5078_v54  ;;  %v1955_v24 = vmul.f32 %v3404_v61, %v1635_v21  ;;  %v1319_v49 = vadd.f32 1.4214138, %v1255_v55  ;;  %v5297_v41 = vadd.f32 %v5993_v62, %v3698_v12 }
 0x255   : > { %v3406_v8 = vpop.eup %3405  ;;  %v2145_v0 = vsub.f32 0.0, %v2017_v31  ;;  %v1877_v56 = vmul.f32 1.442695, %v1765_v57  ;;  %v1190_v25 = vadd.f32 -1.4531521, %v1126_v34  ;;  %v1001_v17 = vadd.f32 1.0, %v937_v42 }
 0x256   : > { %v2272_v38 = vadd.f32 1.0, %v2208_v16  ;;  %v1954_v27 = vmul.f32 %v3406_v8, %v1634_v35  ;;  %v1572_v47 = vadd.f32 0.2548296, %v1508_v53  ;;  %v5300_v32 = vmul.f32 0.5, %v5162_v20  ;;  %v5994_v53 = vld [vmem:[#allocation10_spill] sm:$0xff] }
 0x257   : > { %vm2083_vm13 = vcmp.lt.f32.partialorder %v5073_v43, 0.0  ;;  %v1445_v54 = vadd.f32 -0.28449672, %v1381_v5  ;;  %v1881_v36 = vmul.f32 1.442695, %v1767_v23  ;;  %v1254_v46 = vmul.f32 %v5277_v10, %v1190_v25 }
 0x258   : > { %3411 = vrcp.f32 %v1001_v17  ;;  %v2019_v21 = vsub.f32 1.0, %v1955_v24  ;;  %v1383_v61 = vmul.f32 %v5263_v40, %v1319_v49  ;;  %v5306_v57 = vmul.f32 0.5, %v5183_v39 }
 0x259   : > { %v5309_v55 = vmul.f32 0.70710677, %v5297_v41  ;;  %v2209_v20 = vsel %vm2081_vm12, %v2145_v0, %v2017_v31  ;;  %vm2082_vm14 = vcmp.lt.f32.partialorder %v5100_v13, 0.0  ;;  %3413 = vpow2.f32 %v1877_v56 }
 0x25a   : > { %v1702_v35 = vsub.f32 0.0, %v5215_v63  ;;  %v5317_v34 = vadd.f32 %v5994_v53, %v3706_v19  ;;  %v3408_v16 = vpop.eup %3407  ;;  %v2018_v5 = vsub.f32 1.0, %v1954_v27  ;;  %v1636_v39 = vmul.f32 %v5203_v60, %v1572_v47 }
 0x25b   : > { %v1318_v23 = vadd.f32 1.4214138, %v1254_v46  ;;  %v5321_v42 = vand.u32 2147483647, %v5309_v55  ;;  %v5323_v24 = vpop.eup %3409  ;;  %v5326_v51 = vmul.f32 %v2272_v38, %v5115_v50  ;;  %v1509_v31 = vmul.f32 %v5232_v37, %v1445_v54 }
 0x25c   : > { %3415 = vpow2.f32 %v1881_v36  ;;  %v5330_v49 = vmul.f32 0.70710677, %v5317_v34  ;;  %v2147_v62 = vsub.f32 0.0, %v2019_v21  ;;  %v1447_v8 = vadd.f32 -0.28449672, %v1383_v61 }
 0x25d   : > { %5995 = vst [vmem:[#allocation19_spill] sm:$0xff] %v5326_v51  ;;  %v1128_v0 = vmul.f32 1.0614054, %v5323_v24  ;;  %v1704_v60 = vsub.f32 0.0, %v5257_v52  ;;  %v2273_v56 = vadd.f32 1.0, %v2209_v20  ;;  %v1766_v25 = vmul.f32 %v1702_v35, %v5215_v63 }
 0x25e   : > { %v939_v17 = vmul.f32 0.3275911, %v5321_v42  ;;  %v5337_v50 = vand.u32 2147483647, %v5330_v49  ;;  %v2146_v38 = vsub.f32 0.0, %v2018_v5  ;;  %v1956_v27 = vmul.f32 %v3408_v16, %v1636_v39 }
 0x25f   : > { %v1382_v47 = vmul.f32 %v5277_v10, %v1318_v23  ;;  %v1192_v54 = vadd.f32 -1.4531521, %v1128_v0  ;;  %v1573_v36 = vadd.f32 0.2548296, %v1509_v31  ;;  %v5341_v46 = vmul.f32 0.5, %v5228_v4  ;;  %v5996_v23 = vld [vmem:[#allocation48_spill] sm:$0xff] }
 0x260   : > { %v1003_v61 = vadd.f32 1.0, %v939_v17  ;;  %v938_v53 = vmul.f32 0.3275911, %v5337_v50  ;;  %v2211_v63 = vsel %vm2083_vm13, %v2147_v62, %v2019_v21  ;;  %v1511_v20 = vmul.f32 %v5263_v40, %v1447_v8 }
 0x261   : > { %v1256_v35 = vmul.f32 %v5323_v24, %v1192_v54  ;;  %v1768_v29 = vmul.f32 %v1704_v60, %v5257_v52  ;;  %vm2084_vm15 = vcmp.lt.f32.partialorder %v5124_v33, 0.0  ;;  %v1705_v39 = vsub.f32 0.0, %v5275_v59 }
 0x262   : > { %v5349_v16 = vpop.eup %3411  ;;  %3417 = vrcp.f32 %v1003_v61  ;;  %v1002_v4 = vadd.f32 1.0, %v938_v53  ;;  %v5355_v31 = vadd.f32 %v5996_v23, %v3714_v26  ;;  %v2210_v43 = vsel %vm2082_vm14, %v2146_v38, %v2018_v5 }
 0x263   : > { %v2020_v21 = vsub.f32 1.0, %v1956_v27  ;;  %v1446_v62 = vadd.f32 -0.28449672, %v1382_v47  ;;  %v1129_v8 = vmul.f32 1.0614054, %v5349_v16  ;;  %v3414_v52 = vpop.eup %3413  ;;  %v2275_v0 = vadd.f32 1.0, %v2211_v63 }
 0x264   : > { %v1637_v60 = vmul.f32 %v5232_v37, %v1573_v36  ;;  %v1879_v17 = vmul.f32 1.442695, %v1766_v25  ;;  %3419 = vrcp.f32 %v1002_v4  ;;  %v5362_v54 = vmul.f32 %v2273_v56, %v5148_v58  ;;  %v5997_v25 = vld [vmem:[#allocation30_spill] sm:$0xff] }
 0x265   : > { %v1575_v61 = vadd.f32 0.2548296, %v1511_v20  ;;  %v1320_v53 = vadd.f32 1.4214138, %v1256_v35  ;;  %v1193_v23 = vadd.f32 -1.4531521, %v1129_v8  ;;  %v1769_v5 = vmul.f32 %v1705_v39, %v5275_v59 }
 0x266   : > { %v3416_v2 = vpop.eup %3415  ;;  %v2274_v51 = vadd.f32 1.0, %v2210_v43  ;;  %v1883_v13 = vmul.f32 1.442695, %v1768_v29  ;;  %v5366_v38 = vmul.f32 0.70710677, %v5355_v31  ;;  %v2148_v27 = vsub.f32 0.0, %v2020_v21 }
 0x267   : > { %v1510_v47 = vmul.f32 %v5277_v10, %v1446_v62  ;;  %v1257_v37 = vmul.f32 %v5349_v16, %v1193_v23  ;;  %v5372_v58 = vadd.f32 %v5997_v25, %v3696_v11  ;;  %v1957_v56 = vmul.f32 %v3414_v52, %v1637_v60  ;;  %v6000_v60 = vld [vmem:[#allocation29_spill] sm:$0xff]  ;;  %v6002_v25 = vld [vmem:[#allocation18_spill] sm:$0xff] }
 0x268   : > { %3421 = vpow2.f32 %v1879_v17  ;;  %v5375_v36 = vmul.f32 0.5, %v5246_v18  ;;  %v5378_v29 = vand.u32 2147483647, %v5366_v38  ;;  %v5381_v59 = vmul.f32 %v2275_v0, %v5174_v30  ;;  %v5999_v0 = vld [vmem:[#allocation28_spill] sm:$0xff] }
 0x269   : > { %v1639_v63 = vmul.f32 %v5263_v40, %v1575_v61  ;;  %v1384_v20 = vmul.f32 %v5323_v24, %v1320_v53  ;;  %v1321_v35 = vadd.f32 1.4214138, %v1257_v37  ;;  %v5386_v39 = vmul.f32 %v2274_v51, %v5206_v15 }
 0x26a   : > { %5998 = vst [vmem:[#allocation44_spill] sm:$0xff] %v5381_v59  ;;  %3423 = vpow2.f32 %v1883_v13  ;;  %v1885_v4 = vmul.f32 1.442695, %v1769_v5  ;;  %v940_v43 = vmul.f32 0.3275911, %v5378_v29  ;;  %v2212_v18 = vsel %vm2084_vm15, %v2148_v27, %v2020_v21 }
 0x26b   : > { %vm2085_vm0 = vcmp.lt.f32.partialorder %v5156_v3, 0.0  ;;  %v1574_v62 = vadd.f32 0.2548296, %v1510_v47  ;;  %v1707_v30 = vsub.f32 0.0, %v5321_v42  ;;  %v5394_v40 = vmul.f32 0.70710677, %v5372_v58 }
 0x26c   : > { %v5396_v8 = vpop.eup %3417  ;;  %v2021_v52 = vsub.f32 1.0, %v1957_v56  ;;  %v5399_v15 = vmul.f32 0.5, %v5297_v41  ;;  %v1004_v51 = vadd.f32 1.0, %v940_v43  ;;  %v2358_v17 = vpack.c.bf16 %v6000_v60, %v5999_v0  ;;  %v6001_v41 = vld [vmem:[#allocation49_spill] sm:$0xff] }
 0x26d   : > { %v1959_v33 = vmul.f32 %v3416_v2, %v1639_v63  ;;  %v1448_v21 = vadd.f32 -0.28449672, %v1384_v20  ;;  %v1385_v61 = vmul.f32 %v5349_v16, %v1321_v35  ;;  %v1131_v53 = vmul.f32 1.0614054, %v5396_v8  ;;  %v6003_v56 = vld [vmem:[#allocation17_spill] sm:$0xff] }
 0x26e   : > { %v5405_v23 = vpop.eup %3419  ;;  %v2276_v13 = vadd.f32 1.0, %v2212_v18  ;;  %3425 = vrcp.f32 %v1004_v51  ;;  %v5408_v5 = vand.u32 2147483647, %v5394_v40  ;;  %v5412_v27 = vadd.f32 %v6001_v41, %v3698_v12  ;;  %2684 = vmatprep.mubr.bf16.mxu0 %v2358_v17 }
 0x26f   : > { %v1638_v47 = vmul.f32 %v5277_v10, %v1574_v62  ;;  %3427 = vpow2.f32 %v1885_v4  ;;  %v1195_v2 = vadd.f32 -1.4531521, %v1131_v53  ;;  %v1771_v37 = vmul.f32 %v1707_v30, %v5321_v42 }
 0x270   : > { %v6004_v63 = vpack.c.bf16 %v6002_v25, %v6003_v56  ;;  %v2149_v20 = vsub.f32 0.0, %v2021_v52  ;;  %vm2087_vm1 = vcmp.lt.f32.partialorder %v5179_v7, 0.0  ;;  %v1130_v35 = vmul.f32 1.0614054, %v5405_v23  ;;  %v6005_v56 = vld [vmem:[#allocation12_spill] sm:$0xff] }
 0x271   : > { %v1706_v43 = vsub.f32 0.0, %v5337_v50  ;;  %v941_v18 = vmul.f32 0.3275911, %v5408_v5  ;;  %v2023_v51 = vsub.f32 1.0, %v1959_v33  ;;  %v1512_v10 = vmul.f32 %v5323_v24, %v1448_v21 }
 0x272   : > { %2685 = vmatmul.mubr.bf16.vlgmr.msra.gmra.mrb[32].mxu0 %v6004_v63  ;;  %v1449_v4 = vadd.f32 -0.28449672, %v1385_v61  ;;  %v1259_v62 = vmul.f32 %v5396_v8, %v1195_v2  ;;  %v3422_v42 = vpop.eup %3421  ;;  %v5426_v30 = vmul.f32 %v2276_v13, %v5254_v48  ;;  %v1194_v0 = vadd.f32 -1.4531521, %v1130_v35  ;;  %v6006_v63 = vld [vmem:[#allocation31_spill] sm:$0xff] }
 0x273   : > { %v1005_v60 = vadd.f32 1.0, %v941_v18  ;;  %v5429_v17 = vmul.f32 0.70710677, %v5412_v27  ;;  %v1958_v53 = vmul.f32 %v3422_v42, %v1638_v47  ;;  %v1889_v25 = vmul.f32 1.442695, %v1771_v37  ;;  %v6007_v18 = vld [vmem:[#allocation21_spill] sm:$0xff] }
 0x274   : > { %v1323_v41 = vadd.f32 1.4214138, %v1259_v62  ;;  %v2360_v33 = vpack.c.bf16 %v6006_v63, %v6005_v56  ;;  %v3424_v59 = vpop.eup %3423  ;;  %v2213_v21 = vsel %vm2085_vm0, %v2149_v20, %v2021_v52  ;;  %v1258_v61 = vmul.f32 %v5405_v23, %v1194_v0  ;;  %v6008_v62 = vld [vmem:[#allocation20_spill] sm:$0xff] }
 0x275   : > { %3429 = vrcp.f32 %v1005_v60  ;;  %v5437_v48 = vand.u32 2147483647, %v5429_v17  ;;  %v2151_v13 = vsub.f32 0.0, %v2023_v51  ;;  %v1576_v2 = vadd.f32 0.2548296, %v1512_v10 }
 0x276   : > { %v1387_v35 = vmul.f32 %v5396_v8, %v1323_v41  ;;  %v1770_v47 = vmul.f32 %v1706_v43, %v5337_v50  ;;  %2781 = vmatprep.mubr.bf16.mxu1 %v2360_v33  ;;  %vm2086_vm2 = vcmp.lt.f32.partialorder %v5199_v14, 0.0  ;;  %v1513_v37 = vmul.f32 %v5349_v16, %v1449_v4  ;;  %v6010_v50 = vld [vmem:[#allocation2_spill] sm:$0xff] }
 0x277   : > { %v5444_v3 = vmul.f32 0.5, %v5317_v34  ;;  %v1322_v52 = vadd.f32 1.4214138, %v1258_v61  ;;  %v943_v20 = vmul.f32 0.3275911, %v5437_v48  ;;  %v6009_v42 = vpack.c.bf16 %v6007_v18, %v6008_v62 }
 0x278   : > { %v2277_v10 = vadd.f32 1.0, %v2213_v21  ;;  %v2022_v0 = vsub.f32 1.0, %v1958_v53  ;;  %3431 = vpow2.f32 %v1889_v25  ;;  %v5452_v43 = vadd.f32 %v6010_v50, %v3706_v19  ;;  %v5454_v60 = vpop.eup %3425 }
 0x279   : > { %2782 = vmatmul.mubr.bf16.vlgmr.msra.gmra.mrb[32].mxu1 %v6009_v42  ;;  %v1451_v4 = vadd.f32 -0.28449672, %v1387_v35  ;;  %v1386_v34 = vmul.f32 %v5405_v23, %v1322_v52  ;;  %v1708_v41 = vsub.f32 0.0, %v5378_v29  ;;  %v1007_v56 = vadd.f32 1.0, %v943_v20  ;;  %v3428_v63 = vpop.eup %3427  ;;  %v6011_v42 = vld [vmem:[#allocation33_spill] sm:$0xff] }
 0x27a   : > { %v2215_v33 = vsel %vm2087_vm1, %v2151_v13, %v2023_v51  ;;  %v1640_v21 = vmul.f32 %v5323_v24, %v1576_v2  ;;  %v1887_v53 = vmul.f32 1.442695, %v1770_v47  ;;  %v1132_v25 = vmul.f32 1.0614054, %v5454_v60 }
 0x27b   : > { %v1577_v61 = vadd.f32 0.2548296, %v1513_v37  ;;  %v1450_v18 = vadd.f32 -0.28449672, %v1386_v34  ;;  %3433 = vrcp.f32 %v1007_v56  ;;  %v5463_v62 = vmul.f32 0.70710677, %v5452_v43 }
 0x27c   : > { %v5466_v35 = vmul.f32 %v2277_v10, %v5280_v28  ;;  %v2150_v52 = vsub.f32 0.0, %v2022_v0  ;;  %v1196_v20 = vadd.f32 -1.4531521, %v1132_v25  ;;  %v5470_v7 = vadd.f32 %v6011_v42, %v3714_v26 }
 0x27d   : > { %v1515_v24 = vmul.f32 %v5396_v8, %v1451_v4  ;;  %v1772_v51 = vmul.f32 %v1708_v41, %v5378_v29  ;;  %v1709_v13 = vsub.f32 0.0, %v5408_v5  ;;  %v5476_v2 = vand.u32 2147483647, %v5463_v62 }
 0x27e   : > { %6012 = vst [vmem:[#allocation24_spill] sm:$0xff] %v5470_v7  ;;  %v2279_v47 = vadd.f32 1.0, %v2215_v33  ;;  %v1514_v37 = vmul.f32 %v5405_v23, %v1450_v18  ;;  %v5480_v28 = vmul.f32 0.5, %v5355_v31  ;;  %v1260_v10 = vmul.f32 %v5454_v60, %v1196_v20 }
 0x27f   : > { %v5483_v50 = vpop.eup %3429  ;;  %v1960_v34 = vmul.f32 %v3424_v59, %v1640_v21  ;;  %v1641_v4 = vmul.f32 %v5349_v16, %v1577_v61  ;;  %3435 = vpow2.f32 %v1887_v53  ;;  %v942_v29 = vmul.f32 0.3275911, %v5476_v2 }
 0x280   : > { %v2214_v41 = vsel %vm2086_vm2, %v2150_v52, %v2022_v0  ;;  %v1324_v56 = vadd.f32 1.4214138, %v1260_v10  ;;  %v1133_v33 = vmul.f32 1.0614054, %v5483_v50  ;;  %v5491_v25 = vmul.f32 0.70710677, %v5470_v7 }
 0x281   : > { %v1579_v31 = vadd.f32 0.2548296, %v1515_v24  ;;  %v1891_v18 = vmul.f32 1.442695, %v1772_v51  ;;  %v1773_v20 = vmul.f32 %v1709_v13, %v5408_v5  ;;  %v1006_v42 = vadd.f32 1.0, %v942_v29  ;;  %v6014_v13 = vld [vmem:[#allocation16_spill] sm:$0xff] }
 0x282   : > { %6013 = vst [vmem:[#allocation10_spill] sm:$0xff] %v5491_v25  ;;  %v3432_v59 = vpop.eup %3431  ;;  %vm2088_vm3 = vcmp.lt.f32.partialorder %v5242_v22, 0.0  ;;  %v1578_v16 = vadd.f32 0.2548296, %v1514_v37  ;;  %v1388_v21 = vmul.f32 %v5454_v60, %v1324_v56  ;;  %v1197_v53 = vadd.f32 -1.4531521, %v1133_v33 }
 0x283   : > { %v5497_v14 = vand.u32 2147483647, %v5491_v25  ;;  %v2024_v0 = vsub.f32 1.0, %v1960_v34  ;;  %v1961_v61 = vmul.f32 %v3428_v63, %v1641_v4  ;;  %v5500_v52 = vmul.f32 0.5, %v5372_v58 }
 0x284   : > { %3437 = vrcp.f32 %v1006_v42  ;;  %v1452_v24 = vadd.f32 -0.28449672, %v1388_v21  ;;  %v1261_v5 = vmul.f32 %v5483_v50, %v1197_v53  ;;  %v5506_v37 = vadd.f32 %v6014_v13, %v3696_v11 }
 0x285   : > { %v944_v51 = vmul.f32 0.3275911, %v5497_v14  ;;  %v5508_v10 = vpop.eup %3433  ;;  %v2278_v29 = vadd.f32 1.0, %v2214_v41  ;;  %v1643_v56 = vmul.f32 %v5396_v8, %v1579_v31  ;;  %3439 = vpow2.f32 %v1891_v18 }
 0x286   : > { %v1893_v63 = vmul.f32 1.442695, %v1773_v20  ;;  %v1642_v58 = vmul.f32 %v5405_v23, %v1578_v16  ;;  %v1516_v34 = vmul.f32 %v5454_v60, %v1452_v24  ;;  %v1325_v4 = vadd.f32 1.4214138, %v1261_v5 }
 0x287   : > { %v1135_v33 = vmul.f32 1.0614054, %v5508_v10  ;;  %v2152_v42 = vsub.f32 0.0, %v2024_v0  ;;  %v2025_v21 = vsub.f32 1.0, %v1961_v61  ;;  %vm2089_vm4 = vcmp.lt.f32.partialorder %v5261_v45, 0.0 }
 0x288   : > { %v1711_v11 = vsub.f32 0.0, %v5437_v48  ;;  %v1008_v53 = vadd.f32 1.0, %v944_v51  ;;  %v1580_v13 = vadd.f32 0.2548296, %v1516_v34  ;;  %v1389_v41 = vmul.f32 %v5483_v50, %v1325_v4 }
 0x289   : > { %v1199_v8 = vadd.f32 -1.4531521, %v1135_v33  ;;  %v5518_v31 = vmul.f32 0.70710677, %v5506_v37  ;;  %v3436_v23 = vpop.eup %3435  ;;  %v5521_v18 = vmul.f32 %v2279_v47, %v5300_v32  ;;  %v5524_v20 = vmul.f32 %v2278_v29, %v5306_v57  ;;  %v6015_v32 = vld [vmem:[#allocation35_spill] sm:$0xff] }
 0x28a   : > { %v1963_v16 = vmul.f32 %v3432_v59, %v1643_v56  ;;  %3441 = vrcp.f32 %v1008_v53  ;;  %v1962_v61 = vmul.f32 %v3436_v23, %v1642_v58  ;;  %v1453_v24 = vadd.f32 -0.28449672, %v1389_v41 }
 0x28b   : > { %3443 = vpow2.f32 %v1893_v63  ;;  %v1263_v5 = vmul.f32 %v5508_v10, %v1199_v8  ;;  %v2216_v51 = vsel %vm2088_vm3, %v2152_v42, %v2024_v0  ;;  %v1775_v34 = vmul.f32 %v1711_v11, %v5437_v48 }
 0x28c   : > { %v881_v4 = vand.u32 2147483647, %v5518_v31  ;;  %v5533_v47 = vadd.f32 %v6015_v32, %v3698_v12  ;;  %v2153_v57 = vsub.f32 0.0, %v2025_v21  ;;  %v1644_v59 = vmul.f32 %v5454_v60, %v1580_v13 }
 0x28d   : > { %v1517_v29 = vmul.f32 %v5483_v50, %v1453_v24  ;;  %v1327_v56 = vadd.f32 1.4214138, %v1263_v5  ;;  %v2027_v58 = vsub.f32 1.0, %v1963_v16  ;;  %vm2091_vm5 = vcmp.lt.f32.partialorder %v5309_v55, 0.0 }
 0x28e   : > { %v5537_v63 = vpop.eup %3437  ;;  %vm2090_vm6 = vcmp.lt.f32.partialorder %v5330_v49, 0.0  ;;  %v1710_v22 = vsub.f32 0.0, %v5476_v2  ;;  %v945_v48 = vmul.f32 0.3275911, %v881_v4  ;;  %v5543_v0 = vmul.f32 0.70710677, %v5533_v47 }
 0x28f   : > { %v2026_v12 = vsub.f32 1.0, %v1962_v61  ;;  %v1581_v33 = vadd.f32 0.2548296, %v1517_v29  ;;  %v1391_v60 = vmul.f32 %v5508_v10, %v1327_v56  ;;  %v1134_v42 = vmul.f32 1.0614054, %v5537_v63  ;;  %v3440_v11 = vpop.eup %3439  ;;  %v6020_v49 = vld [vmem:[#allocation39_spill] sm:$0xff] }
 0x290   : > { %v2280_v53 = vadd.f32 1.0, %v2216_v51  ;;  %v1897_v13 = vmul.f32 1.442695, %v1775_v34  ;;  %v1009_v41 = vadd.f32 1.0, %v945_v48  ;;  %v883_v8 = vand.u32 2147483647, %v5543_v0 }
 0x291   : > { %v2217_v23 = vsel %vm2089_vm4, %v2153_v57, %v2025_v21  ;;  %v1964_v16 = vmul.f32 %v3440_v11, %v1644_v59  ;;  %v1455_v24 = vadd.f32 -0.28449672, %v1391_v60  ;;  %v1198_v5 = vadd.f32 -1.4531521, %v1134_v42 }
 0x292   : > { %v1645_v32 = vmul.f32 %v5483_v50, %v1581_v33  ;;  %v1774_v61 = vmul.f32 %v1710_v22, %v5476_v2  ;;  %3445 = vrcp.f32 %v1009_v41  ;;  %v947_v29 = vmul.f32 0.3275911, %v883_v8  ;;  %v6016_v33 = vld [vmem:[#allocation51_spill] sm:$0xff] }
 0x293   : > { %v2155_v56 = vsub.f32 0.0, %v2027_v58  ;;  %v2154_v7 = vsub.f32 0.0, %v2026_v12  ;;  %v1519_v51 = vmul.f32 %v5508_v10, %v1455_v24  ;;  %v1712_v34 = vsub.f32 0.0, %v5497_v14 }
 0x294   : > { %v5554_v48 = vpop.eup %3441  ;;  %v5557_v45 = vmul.f32 %v2280_v53, %v5341_v46  ;;  %vm2092_vm7 = vcmp.lt.f32.partialorder %v5366_v38, 0.0  ;;  %3447 = vpow2.f32 %v1897_v13  ;;  %v1262_v50 = vmul.f32 %v5537_v63, %v1198_v5 }
 0x295   : > { %v1011_v21 = vadd.f32 1.0, %v947_v29  ;;  %v3444_v2 = vpop.eup %3443  ;;  %v2281_v57 = vadd.f32 1.0, %v2217_v23  ;;  %v2028_v59 = vsub.f32 1.0, %v1964_v16  ;;  %v1713_v22 = vsub.f32 0.0, %v881_v4 }
 0x296   : > { %v5563_v60 = vadd.f32 %v6016_v33, %v3706_v19  ;;  %v1965_v42 = vmul.f32 %v3444_v2, %v1645_v32  ;;  %v1895_v11 = vmul.f32 1.442695, %v1774_v61  ;;  %v1136_v41 = vmul.f32 1.0614054, %v5554_v48  ;;  %v6019_v61 = vld [vmem:[#allocation9_spill] sm:$0xff] }
 0x297   : > { %3449 = vrcp.f32 %v1011_v21  ;;  %v2219_v46 = vsel %vm2091_vm5, %v2155_v56, %v2027_v58  ;;  %v2218_v53 = vsel %vm2090_vm6, %v2154_v7, %v2026_v12  ;;  %v1583_v13 = vadd.f32 0.2548296, %v1519_v51 }
 0x298   : > { %6017 = vst [vmem:[#allocation48_spill] sm:$0xff] %v5563_v60  ;;  %v1776_v23 = vmul.f32 %v1712_v34, %v5497_v14  ;;  %v1326_v16 = vadd.f32 1.4214138, %v1262_v50  ;;  %v1200_v24 = vadd.f32 -1.4531521, %v1136_v41  ;;  %v5576_v19 = vadd.f32 %v5001_v6, %v3714_v26 }
 0x299   : > { %v5572_v5 = vmul.f32 0.70710677, %v5563_v60  ;;  %v2156_v32 = vsub.f32 0.0, %v2028_v59  ;;  %vm2093_vm8 = vcmp.lt.f32.partialorder %v5394_v40, 0.0  ;;  %v1777_v55 = vmul.f32 %v1713_v22, %v881_v4 }
 0x29a   : > { %6018 = vst [vmem:[#allocation30_spill] sm:$0xff] %v5576_v19  ;;  %v1715_v58 = vsub.f32 0.0, %v883_v8  ;;  %v2362_v7 = vpack.c.bf16 %v6020_v49, %v6019_v61  ;;  %v5582_v12 = vmul.f32 %v2281_v57, %v5375_v36  ;;  %v2029_v14 = vsub.f32 1.0, %v1965_v42 }
 0x29b   : > { %v1264_v29 = vmul.f32 %v5554_v48, %v1200_v24  ;;  %v5586_v56 = vand.u32 2147483647, %v5572_v5  ;;  %v1647_v26 = vmul.f32 %v5508_v10, %v1583_v13  ;;  %3451 = vpow2.f32 %v1895_v11 }
 0x29c   : > { %v1899_v6 = vmul.f32 1.442695, %v1776_v23  ;;  %v5590_v51 = vmul.f32 0.70710677, %v5576_v19  ;;  %2692 = vmatprep.mubr.bf16.mxu0 %v2362_v7  ;;  %v5592_v4 = vpop.eup %3445  ;;  %v2283_v34 = vadd.f32 1.0, %v2219_v46  ;;  %v2282_v50 = vadd.f32 1.0, %v2218_v53 }
 0x29d   : > { %v1390_v36 = vmul.f32 %v5537_v63, %v1326_v16  ;;  %v946_v21 = vmul.f32 0.3275911, %v5586_v56  ;;  %v2220_v2 = vsel %vm2092_vm7, %v2156_v32, %v2028_v59  ;;  %v1137_v57 = vmul.f32 1.0614054, %v5592_v4  ;;  %v6022_v23 = vld [vmem:[#allocation37_spill] sm:$0xff]  ;;  %v6046_v19 = vld [vmem:[#allocation7_spill] sm:$0xff] }
 0x29e   : > { %6021 = vst [vmem:[#allocation28_spill] sm:$0xff] %v5590_v51  ;;  %v1901_v10 = vmul.f32 1.442695, %v1777_v55  ;;  %v1779_v22 = vmul.f32 %v1715_v58, %v883_v8  ;;  %v3448_v33 = vpop.eup %3447  ;;  %v2157_v42 = vsub.f32 0.0, %v2029_v14  ;;  %v1328_v11 = vadd.f32 1.4214138, %v1264_v29 }
 0x29f   : > { %v1010_v41 = vadd.f32 1.0, %v946_v21  ;;  %v5600_v13 = vand.u32 2147483647, %v5590_v51  ;;  %v5602_v46 = vmul.f32 %v3448_v33, %v1647_v26  ;;  %3453 = vpow2.f32 %v1899_v6  ;;  %v6023_v16 = vld [vmem:[#allocation41_spill] sm:$0xff]  ;;  %v6024_v21 = vld [vmem:[#allocation32_spill] sm:$0xff]  ;;  %v6026_v33 = vld [vmem:[#allocation6_spill] sm:$0xff] }
 0x2a0   : > { %v1201_v53 = vadd.f32 -1.4531521, %v1137_v57  ;;  %v2364_v24 = vpack.c.bf16 %v6023_v16, %v6022_v23  ;;  %v5609_v59 = vmul.f32 %v2283_v34, %v5399_v15  ;;  %v5612_v8 = vmul.f32 %v2282_v50, %v5444_v3  ;;  %v6029_v23 = vld [vmem:[#allocation46_spill] sm:$0xff]  ;;  %v6048_v51 = vld [vmem:[#allocation25_spill] sm:$0xff] }
 0x2a1   : > { %v5606_v38 = vpop.eup %3449  ;;  %v1454_v32 = vadd.f32 -0.28449672, %v1390_v36  ;;  %3455 = vrcp.f32 %v1010_v41  ;;  %v2284_v55 = vadd.f32 1.0, %v2220_v2  ;;  %v948_v49 = vmul.f32 0.3275911, %v5600_v13  ;;  %v6025_v2 = vld [vmem:[#allocation26_spill] sm:$0xff] }
 0x2a2   : > { %v1265_v58 = vmul.f32 %v5592_v4, %v1201_v53  ;;  %v1139_v61 = vmul.f32 1.0614054, %v5606_v38  ;;  %2789 = vmatprep.mubr.bf16.mxu1 %v2364_v24  ;;  %v2221_v7 = vsel %vm2093_vm8, %v2157_v42, %v2029_v14  ;;  %v1392_v29 = vmul.f32 %v5554_v48, %v1328_v11  ;;  %v6027_v41 = vld [vmem:[#allocation11_spill] sm:$0xff]  ;;  %v6028_v53 = vld [vmem:[#allocation4_spill] sm:$0xff]  ;;  %v6030_v24 = vld [vmem:[#allocation22_spill] sm:$0xff] }
 0x2a3   : > { %3457 = vpow2.f32 %v1901_v10  ;;  %v1905_v15 = vmul.f32 1.442695, %v1779_v22  ;;  %v5848_v3 = vsub.f32 1.0, %v5602_v46  ;;  %v1012_v34 = vadd.f32 1.0, %v948_v49 }
 0x2a4   : > { %v1329_v26 = vadd.f32 1.4214138, %v1265_v58  ;;  %v1203_v6 = vadd.f32 -1.4531521, %v1139_v61  ;;  %v1518_v50 = vmul.f32 %v5537_v63, %v1454_v32  ;;  %v1714_v36 = vsub.f32 0.0, %v5586_v56  ;;  %v6031_v32 = vld [vmem:[#allocation47_spill] sm:$0xff] }
 0x2a5   : > { %v2361_v57 = vpack.c.bf16 %v6025_v2, %v6024_v21  ;;  %v2363_v40 = vpack.c.bf16 %v6027_v41, %v6026_v33  ;;  %v5627_v14 = vpop.eup %3451  ;;  %v5630_v10 = vmul.f32 %v2284_v55, %v5480_v28  ;;  %3459 = vrcp.f32 %v1012_v34  ;;  %v6032_v55 = vld [vmem:[#allocation42_spill] sm:$0xff]  ;;  %v6033_v21 = vld [vmem:[#allocation23_spill] sm:$0xff]  ;;  %v6035_v2 = vld [vmem:[#allocation45_spill] sm:$0xff] }
 0x2a6   : > { %v1393_v22 = vmul.f32 %v5592_v4, %v1329_v26  ;;  %v1267_v42 = vmul.f32 %v5606_v38, %v1203_v6  ;;  %v1456_v11 = vadd.f32 -0.28449672, %v1392_v29  ;;  %3461 = vpow2.f32 %v1905_v15  ;;  %v6034_v34 = vld [vmem:[#allocation43_spill] sm:$0xff] }
 0x2a7   : > { %2693 = vmatmul.mubr.bf16.gmra.mrb[36].mxu0 %v2361_v57  ;;  %2790 = vmatmul.mubr.bf16.gmra.mrb[36].mxu1 %v2363_v40  ;;  %v2366_v16 = vpack.c.bf16 %v6029_v23, %v6028_v53  ;;  %v2368_v58 = vpack.c.bf16 %v6031_v32, %v6030_v24  ;;  %v5638_v61 = vadd.f32 1.0, %v2221_v7  ;;  %v2365_v26 = vpack.c.bf16 %v6033_v21, %v6032_v55  ;;  %v6036_v40 = vld [vmem:[#allocation50_spill] sm:$0xff]  ;;  %v6038_v53 = vld [vmem:[#allocation52_spill] sm:$0xff]  ;;  %v6040_v24 = vld [vmem:[#allocation5_spill] sm:$0xff] }
 0x2a8   : > { %v1457_v49 = vadd.f32 -0.28449672, %v1393_v22  ;;  %v1331_v28 = vadd.f32 1.4214138, %v1267_v42  ;;  %v5644_v6 = vsub.f32 0.0, %v5848_v3  ;;  %v1778_v15 = vmul.f32 %v1714_v36, %v5586_v56  ;;  %v6037_v42 = vld [vmem:[#allocation34_spill] sm:$0xff] }
 0x2a9   : > { %v1582_v29 = vadd.f32 0.2548296, %v1518_v50  ;;  %2700 = vmatprep.mubr.bf16.mxu0 %v2366_v16  ;;  %2797 = vmatprep.mubr.bf16.mxu1 %v2368_v58  ;;  %v2367_v57 = vpack.c.bf16 %v6035_v2, %v6034_v34  ;;  %v5649_v33 = vpop.eup %3453  ;;  %v2370_v22 = vpack.c.bf16 %v4979_v44, %v6036_v40  ;;  %v2372_v23 = vpack.c.bf16 %v6038_v53, %v6037_v42  ;;  %v6039_v16 = vld [vmem:[#allocation27_spill] sm:$0xff]  ;;  %v6041_v58 = vld [vmem:[#allocation8_spill] sm:$0xff]  ;;  %v6043_v44 = vld [vmem:[#allocation53_spill] sm:$0xff] }
 0x2aa   : > { %v1521_v7 = vmul.f32 %v5592_v4, %v1457_v49  ;;  %v1395_v41 = vmul.f32 %v5606_v38, %v1331_v28  ;;  %v1520_v56 = vmul.f32 %v5554_v48, %v1456_v11  ;;  %v1716_v36 = vsub.f32 0.0, %v5600_v13  ;;  %v6042_v55 = vld [vmem:[#allocation36_spill] sm:$0xff]  ;;  %v6044_v2 = vld [vmem:[#allocation14_spill] sm:$0xff] }
 0x2ab   : > { %v5657_v50 = vpop.eup %3455  ;;  %v2369_v32 = vpack.c.bf16 %v6040_v24, %v6039_v16  ;;  %v2371_v49 = vpack.c.bf16 %v6042_v55, %v6041_v58  ;;  %v2374_v40 = vpack.c.bf16 %v6044_v2, %v6043_v44  ;;  %vm2095_vm9 = vcmp.lt.f32.partialorder %v5429_v17, 0.0  ;;  %v6045_v53 = vld [vmem:[#allocation38_spill] sm:$0xff]  ;;  %v6047_v16 = vld [vmem:[#allocation40_spill] sm:$0xff]  ;;  %v6049_v58 = vld [vmem:[#allocation13_spill] sm:$0xff] }
 0x2ac   : > { %v1585_v21 = vadd.f32 0.2548296, %v1521_v7  ;;  %v1459_v28 = vadd.f32 -0.28449672, %v1395_v41  ;;  %v1138_v34 = vmul.f32 1.0614054, %v5657_v50  ;;  %v1646_v11 = vmul.f32 %v5537_v63, %v1582_v29 }
 0x2ad   : > { %v3458_v42 = vpop.eup %3457  ;;  %v2376_v3 = vpack.c.bf16 %v5224_v1, %v6045_v53  ;;  %v1584_v2 = vadd.f32 0.2548296, %v1520_v56  ;;  %v1903_v25 = vmul.f32 1.442695, %v1778_v15  ;;  %v6050_v63 = vld [vmem:[#allocation19_spill] sm:$0xff]  ;;  %vm2097_vm10 = vcmp.lt.f32.partialorder %v5518_v31, 0.0 }
 0x2ae   : > { %v1649_v41 = vmul.f32 %v5592_v4, %v1585_v21  ;;  %v1523_v55 = vmul.f32 %v5606_v38, %v1459_v28  ;;  %v1202_v60 = vadd.f32 -1.4531521, %v1138_v34  ;;  %v6051_v29 = vld [vmem:[#allocation15_spill] sm:$0xff]  ;;  %v1780_v28 = vmul.f32 %v1716_v36, %v5600_v13 }
 0x2af   : > { %2701 = vmatmul.mubr.bf16.gmra.mrb[40].mxu0 %v2365_v26  ;;  %2798 = vmatmul.mubr.bf16.gmra.mrb[40].mxu1 %v2367_v57  ;;  %v5684_v24 = vpop.eup %3459  ;;  %v6052_v15 = vld [vmem:[#allocation3_spill] sm:$0xff]  ;;  %v6053_v57 = vld [vmem:[#allocation44_spill] sm:$0xff]  ;;  %3463 = vpow2.f32 %v1903_v25  ;;  %v2383_v36 = vpack.c.bf16 %v5609_v59, %v5521_v18  ;;  %v1648_v53 = vmul.f32 %v5554_v48, %v1584_v2  ;;  %vm2099_vm11 = vcmp.lt.f32.partialorder %v5543_v0, 0.0 }
 0x2b0   : > { %v1969_v7 = vmul.f32 %v3458_v42, %v1649_v41  ;;  %v1587_v4 = vadd.f32 0.2548296, %v1523_v55  ;;  %v1266_v21 = vmul.f32 %v5657_v50, %v1202_v60  ;;  %2708 = vmatprep.mubr.bf16.mxu0 %v2370_v22  ;;  %2805 = vmatprep.mubr.bf16.mxu1 %v2372_v23  ;;  %v3462_v56 = vpop.eup %3461  ;;  %v1140_v26 = vmul.f32 1.0614054, %v5684_v24 }
 0x2b1   : > { %v1966_v42 = vmul.f32 %v5627_v14, %v1646_v11  ;;  %v2381_v23 = vpack.c.bf16 %v5582_v12, %v5466_v35  ;;  %v1907_v44 = vmul.f32 1.442695, %v1780_v28  ;;  %v753_v14 = vmul.f32 0.5, %v5506_v37 }
 0x2b2   : > { %v2033_v41 = vsub.f32 1.0, %v1969_v7  ;;  %v1651_v60 = vmul.f32 %v5606_v38, %v1587_v4  ;;  %v1330_v13 = vadd.f32 1.4214138, %v1266_v21  ;;  %v1204_v22 = vadd.f32 -1.4531521, %v1140_v26 }
 0x2b3   : > { %v6054_v38 = vsub.f32 1.0, %v5602_v46  ;;  %v5713_v28 = vmul.f32 %v5638_v61, %v5500_v52  ;;  %v2030_v31 = vsub.f32 1.0, %v1966_v42  ;;  %3465 = vpow2.f32 %v1907_v44 }
 0x2b4   : > { %v2161_v55 = vsub.f32 0.0, %v2033_v41  ;;  %v1971_v34 = vmul.f32 %v3462_v56, %v1651_v60  ;;  %v1394_v1 = vmul.f32 %v5657_v50, %v1330_v13  ;;  %v1268_v25 = vmul.f32 %v5684_v24, %v1204_v22 }
 0x2b5   : > { %v2223_v11 = vsel %vm2095_vm9, %v5644_v6, %v6054_v38  ;;  %v1968_v6 = vmul.f32 %v5649_v33, %v1648_v53  ;;  %v751_v61 = vmul.f32 0.5, %v5412_v27  ;;  %v2158_v42 = vsub.f32 0.0, %v2030_v31 }
 0x2b6   : > { %v2225_v7 = vsel %vm2097_vm10, %v2161_v55, %v2033_v41  ;;  %v2035_v4 = vsub.f32 1.0, %v1971_v34  ;;  %v1458_v21 = vadd.f32 -0.28449672, %v1394_v1  ;;  %v1332_v37 = vadd.f32 1.4214138, %v1268_v25 }
 0x2b7   : > { %v2289_v48 = vadd.f32 1.0, %v2225_v7  ;;  %2709 = vmatmul.mubr.bf16.gmra.mrb[44].mxu0 %v2369_v32  ;;  %2806 = vmatmul.mubr.bf16.gmra.mrb[44].mxu1 %v2371_v49  ;;  %v2287_v17 = vadd.f32 1.0, %v2223_v11  ;;  %v755_v32 = vmul.f32 0.5, %v5533_v47  ;;  %v2032_v41 = vsub.f32 1.0, %v1968_v6  ;;  %v6059_v7 = vld [vmem:[#allocation10_spill] sm:$0xff] }
 0x2b8   : > { %v2163_v2 = vsub.f32 0.0, %v2035_v4  ;;  %v1522_v46 = vmul.f32 %v5657_v50, %v1458_v21  ;;  %2716 = vmatprep.mubr.bf16.mxu0 %v2374_v40  ;;  %2813 = vmatprep.mubr.bf16.mxu1 %v2376_v3  ;;  %v1396_v52 = vmul.f32 %v5684_v24, %v1332_v37  ;;  %vm2094_vm12 = vcmp.lt.f32.partialorder %v5463_v62, 0.0 }
 0x2b9   : > { %v2353_v1 = vmul.f32 %v2289_v48, %v753_v14  ;;  %v3464_v3 = vpop.eup %3463  ;;  %v2351_v44 = vmul.f32 %v2287_v17, %v751_v61  ;;  %v6055_v47 = vpack.c.bf16 %v6047_v16, %v6046_v19  ;;  %v6056_v13 = vpack.c.bf16 %v6049_v58, %v6048_v51 }
 0x2ba   : > { %v2227_v56 = vsel %vm2099_vm11, %v2163_v2, %v2035_v4  ;;  %v1586_v0 = vadd.f32 0.2548296, %v1522_v46  ;;  %v1460_v26 = vadd.f32 -0.28449672, %v1396_v52  ;;  %v6057_v14 = vpack.c.bf16 %v5386_v39, %v5293_v9  ;;  %v6060_v39 = vld [vmem:[#allocation48_spill] sm:$0xff] }
 0x2bb   : > { %v2291_v49 = vadd.f32 1.0, %v2227_v56  ;;  %v2385_v34 = vpack.c.bf16 %v2353_v1, %v5713_v28  ;;  %v6058_v25 = vpack.c.bf16 %v5426_v30, %v6050_v63  ;;  %v2160_v62 = vsub.f32 0.0, %v2032_v41  ;;  %v6066_v1 = vld [vmem:[#allocation24_spill] sm:$0xff] }
 0x2bc   : > { %v1650_v40 = vmul.f32 %v5657_v50, %v1586_v0  ;;  %v1524_v53 = vmul.f32 %v5684_v24, %v1460_v26  ;;  %v2222_v50 = vsel %vm2094_vm12, %v2158_v42, %v2030_v31  ;;  %vm2098_vm13 = vcmp.lt.f32.partialorder %v5572_v5, 0.0  ;;  %v6063_v31 = vld [vmem:[#allocation28_spill] sm:$0xff] }
 0x2bd   : > { %v2355_v33 = vmul.f32 %v2291_v49, %v755_v32  ;;  %v3466_v19 = vpop.eup %3465  ;;  %v2286_v11 = vadd.f32 1.0, %v2222_v50  ;;  %v750_v58 = vmul.f32 0.5, %v5452_v43  ;;  %vm2096_vm14 = vcmp.lt.f32.partialorder %v6059_v7, 0.0  ;;  %v5766_v32 = vld [vmem:[%s5814_s4] ss:$0 sm:$0xff] }
 0x2be   : > { %v1970_v60 = vmul.f32 %v3464_v3, %v1650_v40  ;;  %v1588_v27 = vadd.f32 0.2548296, %v1524_v53  ;;  %v2224_v9 = vsel %vm2096_vm14, %v2160_v62, %v2032_v41  ;;  %v754_v21 = vmul.f32 0.5, %v6060_v39 }
 0x2bf   : > { %2717 = vmatmul.mubr.bf16.gmra.mrb[48].mxu0 %v6055_v47  ;;  %2814 = vmatmul.mubr.bf16.gmra.mrb[48].mxu1 %v6056_v13  ;;  %v2387_v22 = vpack.c.bf16 %v2355_v33, %v2351_v44  ;;  %v2350_v63 = vmul.f32 %v2286_v11, %v750_v58  ;;  %v6062_v5 = vpack.c.bf16 %v6053_v57, %v6052_v15  ;;  %v2288_v43 = vadd.f32 1.0, %v2224_v9 }
 0x2c0   : > { %v2034_v55 = vsub.f32 1.0, %v1970_v60  ;;  %2724 = vmatprep.mubr.bf16.mxu0 %v6057_v14  ;;  %2821 = vmatprep.mubr.bf16.mxu1 %v6058_v25  ;;  %v1652_v38 = vmul.f32 %v5684_v24, %v1588_v27  ;;  %v6061_v24 = vpack.c.bf16 %v5362_v54, %v6051_v29  ;;  %vm2100_vm15 = vcmp.lt.f32.partialorder %v6063_v31, 0.0  ;;  %v6067_v29 = vld [vmem:[#allocation30_spill] sm:$0xff] }
 0x2c1   : > { %v6064_v2 = vpack.c.bf16 %v5612_v8, %v5524_v20  ;;  %v6065_v46 = vpack.c.bf16 %v5630_v10, %v5557_v45  ;;  %v752_v54 = vmul.f32 0.5, %v6066_v1  ;;  %v756_v52 = vmul.f32 0.5, %v6067_v29 }
 0x2c2   : > { %v2162_v16 = vsub.f32 0.0, %v2034_v55  ;;  %v1972_v51 = vmul.f32 %v3466_v19, %v1652_v38 }
 0x2c3   : > { %v2352_v15 = vmul.f32 %v2288_v43, %v752_v54 }
 0x2c4   : > { %v2226_v4 = vsel %vm2098_vm13, %v2162_v16, %v2034_v55  ;;  %v2036_v30 = vsub.f32 1.0, %v1972_v51 }
 0x2c5   : > { %v2290_v28 = vadd.f32 1.0, %v2226_v4 }
 0x2c6   : > { %v2164_v37 = vsub.f32 0.0, %v2036_v30 }
 0x2c7   : > { %v2354_v48 = vmul.f32 %v2290_v28, %v754_v21  ;;  %2725 = vmatmul.mubr.bf16.gmra.mrb[52].mxu0 %v6061_v24  ;;  %2822 = vmatmul.mubr.bf16.gmra.mrb[52].mxu1 %v6062_v5 }
 0x2c8   : > { %2732 = vmatprep.mubr.bf16.mxu0 %v6064_v2  ;;  %2829 = vmatprep.mubr.bf16.mxu1 %v6065_v46  ;;  %v2228_v17 = vsel %vm2100_vm15, %v2164_v37, %v2036_v30 }
 0x2c9   : > { %v2386_v6 = vpack.c.bf16 %v2354_v48, %v2350_v63  ;;  %v2292_v61 = vadd.f32 1.0, %v2228_v17 }
 0x2cb   : > { %v2356_v57 = vmul.f32 %v2292_v61, %v756_v52 }
 0x2cd   : > { %v2388_v56 = vpack.c.bf16 %v2356_v57, %v2352_v15 }
 0x2cf   : > { %2733 = vmatmul.mubr.bf16.gmra.mrb[56].mxu0 %v2381_v23  ;;  %2830 = vmatmul.mubr.bf16.gmra.mrb[56].mxu1 %v2383_v36 }
 0x2d0   : > { %2740 = vmatprep.mubr.bf16.mxu0 %v2386_v6  ;;  %2837 = vmatprep.mubr.bf16.mxu1 %v2388_v56 }
 0x2d7   : > { %2741 = vmatmul.mubr.bf16.gmra.mrb[60].mxu0 %v2385_v34  ;;  %2838 = vmatmul.mubr.bf16.gmra.mrb[60].mxu1 %v2387_v22 }
 0x345   : > { %v3010_v20 = vpop.f32.mrb[32].mxu0 }
 0x346   : > { %v3011_v45 = vpop.f32.mrb[33].mxu0 }
 0x347   : > { %v3012_v8 = vadd.f32 %v3011_v45, %v3010_v20  ;;  %v3013_v10 = vpop.f32.mrb[34].mxu0 }
 0x348   : > { %v3014_v0 = vpop.f32.mrb[35].mxu0 }
 0x349   : > { %v3015_v35 = vadd.f32 %v3014_v0, %v3013_v10  ;;  %v2687_v18 = vadd.f32 %v3012_v8, %v5766_v32 }
 0x34b   : > { %v2690_v49 = vadd.f32 %v3015_v35, %v5766_v32 }
 0x34c   : > { %v3074_v12 = vpop.f32.mrb[32].mxu1 }
 0x34d   : > { %v3075_v59 = vpop.f32.mrb[33].mxu1 }
 0x34e   : > { %v3076_v23 = vadd.f32 %v3075_v59, %v3074_v12  ;;  %v3077_v36 = vpop.f32.mrb[34].mxu1 }
 0x34f   : > { %v3078_v26 = vpop.f32.mrb[35].mxu1 }
 0x350   : > { %v2784_v34 = vadd.f32 %v3076_v23, %v2687_v18  ;;  %v3079_v42 = vadd.f32 %v3078_v26, %v3077_v36 }
 0x352   : > { %2846 = vst [vmem:[%s5775_s24] sm:$0xff] %v2784_v34  ;;  %v2787_v40 = vadd.f32 %v3079_v42, %v2690_v49 }
 0x354   : > { %2847 = vst [vmem:[%s5775_s24 + $0x8] sm:$0xff] %v2787_v40 }
 0x37a   : > { %v3016_v3 = vpop.f32.mrb[36].mxu0  ;;  %v3080_v44 = vpop.f32.mrb[36].mxu1 }
 0x37b   : > { %v3017_v41 = vpop.f32.mrb[37].mxu0  ;;  %v3081_v33 = vpop.f32.mrb[37].mxu1 }
 0x37c   : > { %v3018_v53 = vadd.f32 %v3017_v41, %v3016_v3  ;;  %v3082_v60 = vadd.f32 %v3081_v33, %v3080_v44  ;;  %v3019_v27 = vpop.f32.mrb[38].mxu0  ;;  %v3083_v47 = vpop.f32.mrb[38].mxu1 }
 0x37d   : > { %v3020_v13 = vpop.f32.mrb[39].mxu0  ;;  %v3084_v22 = vpop.f32.mrb[39].mxu1 }
 0x37e   : > { %v2695_v50 = vadd.f32 %v3018_v53, %v5766_v32  ;;  %v3021_v55 = vadd.f32 %v3020_v13, %v3019_v27  ;;  %v3085_v14 = vadd.f32 %v3084_v22, %v3083_v47 }
 0x380   : > { %v2792_v25 = vadd.f32 %v3082_v60, %v2695_v50  ;;  %v2698_v62 = vadd.f32 %v3021_v55, %v5766_v32 }
 0x382   : > { %2848 = vst [vmem:[%s5775_s24 + $0x10] sm:$0xff] %v2792_v25  ;;  %v2795_v38 = vadd.f32 %v3085_v14, %v2698_v62  ;;  %v3022_v19 = vpop.f32.mrb[40].mxu0  ;;  %v3086_v16 = vpop.f32.mrb[40].mxu1 }
 0x383   : > { %v3023_v11 = vpop.f32.mrb[41].mxu0  ;;  %v3087_v51 = vpop.f32.mrb[41].mxu1 }
 0x384   : > { %2849 = vst [vmem:[%s5775_s24 + $0x18] sm:$0xff] %v2795_v38  ;;  %v3024_v58 = vadd.f32 %v3023_v11, %v3022_v19  ;;  %v3088_v7 = vadd.f32 %v3087_v51, %v3086_v16  ;;  %v3025_v4 = vpop.f32.mrb[42].mxu0  ;;  %v3089_v9 = vpop.f32.mrb[42].mxu1 }
 0x385   : > { %v3026_v39 = vpop.f32.mrb[43].mxu0  ;;  %v3090_v21 = vpop.f32.mrb[43].mxu1 }
 0x386   : > { %v2703_v28 = vadd.f32 %v3024_v58, %v5766_v32  ;;  %v3027_v30 = vadd.f32 %v3026_v39, %v3025_v4  ;;  %v3091_v63 = vadd.f32 %v3090_v21, %v3089_v9 }
 0x388   : > { %v2800_v48 = vadd.f32 %v3088_v7, %v2703_v28  ;;  %v2706_v37 = vadd.f32 %v3027_v30, %v5766_v32 }
 0x38a   : > { %2850 = vst [vmem:[%s5775_s24 + $0x20] sm:$0xff] %v2800_v48  ;;  %v2803_v24 = vadd.f32 %v3091_v63, %v2706_v37  ;;  %v3028_v5 = vpop.f32.mrb[44].mxu0  ;;  %v3092_v43 = vpop.f32.mrb[44].mxu1 }
 0x38b   : > { %v3029_v31 = vpop.f32.mrb[45].mxu0  ;;  %v3093_v2 = vpop.f32.mrb[45].mxu1 }
 0x38c   : > { %2851 = vst [vmem:[%s5775_s24 + $0x28] sm:$0xff] %v2803_v24  ;;  %v3030_v46 = vadd.f32 %v3029_v31, %v3028_v5  ;;  %v3094_v17 = vadd.f32 %v3093_v2, %v3092_v43  ;;  %v3031_v6 = vpop.f32.mrb[46].mxu0  ;;  %v3095_v1 = vpop.f32.mrb[46].mxu1 }
 0x38d   : > { %v3032_v54 = vpop.f32.mrb[47].mxu0  ;;  %v3096_v29 = vpop.f32.mrb[47].mxu1 }
 0x38e   : > { %v2711_v52 = vadd.f32 %v3030_v46, %v5766_v32  ;;  %v3033_v61 = vadd.f32 %v3032_v54, %v3031_v6  ;;  %v3097_v15 = vadd.f32 %v3096_v29, %v3095_v1 }
 0x390   : > { %v2808_v57 = vadd.f32 %v3094_v17, %v2711_v52  ;;  %v2714_v56 = vadd.f32 %v3033_v61, %v5766_v32 }
 0x392   : > { %2852 = vst [vmem:[%s5775_s24 + $0x30] sm:$0xff] %v2808_v57  ;;  %v2811_v20 = vadd.f32 %v3097_v15, %v2714_v56  ;;  %v3034_v45 = vpop.f32.mrb[48].mxu0  ;;  %v3098_v8 = vpop.f32.mrb[48].mxu1 }
 0x393   : > { %v3035_v10 = vpop.f32.mrb[49].mxu0  ;;  %v3099_v0 = vpop.f32.mrb[49].mxu1 }
 0x394   : > { %2853 = vst [vmem:[%s5775_s24 + $0x38] sm:$0xff] %v2811_v20  ;;  %v3036_v35 = vadd.f32 %v3035_v10, %v3034_v45  ;;  %v3100_v12 = vadd.f32 %v3099_v0, %v3098_v8  ;;  %v3037_v18 = vpop.f32.mrb[50].mxu0  ;;  %v3101_v59 = vpop.f32.mrb[50].mxu1 }
 0x395   : > { %v3038_v23 = vpop.f32.mrb[51].mxu0  ;;  %v3102_v36 = vpop.f32.mrb[51].mxu1 }
 0x396   : > { %v2719_v49 = vadd.f32 %v3036_v35, %v5766_v32  ;;  %v3039_v26 = vadd.f32 %v3038_v23, %v3037_v18  ;;  %v3103_v34 = vadd.f32 %v3102_v36, %v3101_v59 }
 0x398   : > { %v2816_v42 = vadd.f32 %v3100_v12, %v2719_v49  ;;  %v2722_v40 = vadd.f32 %v3039_v26, %v5766_v32 }
 0x39a   : > { %2854 = vst [vmem:[%s5775_s24 + $0x40] sm:$0xff] %v2816_v42  ;;  %v2819_v3 = vadd.f32 %v3103_v34, %v2722_v40  ;;  %v3040_v44 = vpop.f32.mrb[52].mxu0  ;;  %v3104_v41 = vpop.f32.mrb[52].mxu1 }
 0x39b   : > { %v3041_v33 = vpop.f32.mrb[53].mxu0  ;;  %v3105_v53 = vpop.f32.mrb[53].mxu1 }
 0x39c   : > { %2855 = vst [vmem:[%s5775_s24 + $0x48] sm:$0xff] %v2819_v3  ;;  %v3042_v60 = vadd.f32 %v3041_v33, %v3040_v44  ;;  %v3106_v27 = vadd.f32 %v3105_v53, %v3104_v41  ;;  %v3043_v47 = vpop.f32.mrb[54].mxu0  ;;  %v3107_v13 = vpop.f32.mrb[54].mxu1 }
 0x39d   : > { %v3044_v22 = vpop.f32.mrb[55].mxu0  ;;  %v3108_v50 = vpop.f32.mrb[55].mxu1 }
 0x39e   : > { %v2727_v55 = vadd.f32 %v3042_v60, %v5766_v32  ;;  %v3045_v14 = vadd.f32 %v3044_v22, %v3043_v47  ;;  %v3109_v25 = vadd.f32 %v3108_v50, %v3107_v13 }
 0x3a0   : > { %v2824_v62 = vadd.f32 %v3106_v27, %v2727_v55  ;;  %v2730_v38 = vadd.f32 %v3045_v14, %v5766_v32 }
 0x3a2   : > { %2856 = vst [vmem:[%s5775_s24 + $0x50] sm:$0xff] %v2824_v62  ;;  %v2827_v19 = vadd.f32 %v3109_v25, %v2730_v38  ;;  %v3046_v16 = vpop.f32.mrb[56].mxu0  ;;  %v3110_v11 = vpop.f32.mrb[56].mxu1 }
 0x3a3   : > { %v3047_v51 = vpop.f32.mrb[57].mxu0  ;;  %v3111_v58 = vpop.f32.mrb[57].mxu1 }
 0x3a4   : > { %2857 = vst [vmem:[%s5775_s24 + $0x58] sm:$0xff] %v2827_v19  ;;  %v3048_v7 = vadd.f32 %v3047_v51, %v3046_v16  ;;  %v3112_v4 = vadd.f32 %v3111_v58, %v3110_v11  ;;  %v3049_v9 = vpop.f32.mrb[58].mxu0  ;;  %v3113_v39 = vpop.f32.mrb[58].mxu1 }
 0x3a5   : > { %v3050_v21 = vpop.f32.mrb[59].mxu0  ;;  %v3114_v28 = vpop.f32.mrb[59].mxu1 }
 0x3a6   : > { %v2735_v30 = vadd.f32 %v3048_v7, %v5766_v32  ;;  %v3051_v63 = vadd.f32 %v3050_v21, %v3049_v9  ;;  %v3115_v48 = vadd.f32 %v3114_v28, %v3113_v39 }
 0x3a8   : > { %v2832_v37 = vadd.f32 %v3112_v4, %v2735_v30  ;;  %v2738_v24 = vadd.f32 %v3051_v63, %v5766_v32 }
 0x3aa   : > { %2858 = vst [vmem:[%s5775_s24 + $0x60] sm:$0xff] %v2832_v37  ;;  %v2835_v5 = vadd.f32 %v3115_v48, %v2738_v24  ;;  %v3052_v43 = vpop.f32.mrb[60].mxu0  ;;  %v3116_v31 = vpop.f32.mrb[60].mxu1 }
 0x3ab   : > { %v3053_v2 = vpop.f32.mrb[61].mxu0  ;;  %v3117_v46 = vpop.f32.mrb[61].mxu1 }
 0x3ac   : > { %2859 = vst [vmem:[%s5775_s24 + $0x68] sm:$0xff] %v2835_v5  ;;  %v3054_v17 = vadd.f32 %v3053_v2, %v3052_v43  ;;  %v3118_v6 = vadd.f32 %v3117_v46, %v3116_v31  ;;  %v3055_v1 = vpop.f32.mrb[62].mxu0  ;;  %v3119_v54 = vpop.f32.mrb[62].mxu1 }
 0x3ad   : > { %v3056_v29 = vpop.f32.mrb[63].mxu0  ;;  %v3120_v52 = vpop.f32.mrb[63].mxu1 }
 0x3ae   : > { %v2743_v61 = vadd.f32 %v3054_v17, %v5766_v32  ;;  %v3057_v15 = vadd.f32 %v3056_v29, %v3055_v1  ;;  %v3121_v57 = vadd.f32 %v3120_v52, %v3119_v54 }
 0x3b0   : > { %v2840_v56 = vadd.f32 %v3118_v6, %v2743_v61  ;;  %v2746_v20 = vadd.f32 %v3057_v15, %v5766_v32 }
 0x3b2   : > { %2860 = vst [vmem:[%s5775_s24 + $0x70] sm:$0xff] %v2840_v56  ;;  %v2843_v45 = vadd.f32 %v3121_v57, %v2746_v20 }
 0x3b4   : > { %2861 = vst [vmem:[%s5775_s24 + $0x78] sm:$0xff] %v2843_v45 }
 0x3b5 PF: > { %s15_s18 = sadd.s32 1, %s3473_s18  }
 0x3b6   : > { %p12_p4 = scmp.ge.s32.totalorder %s15_s18, 4  }
 0x3b8   :  { %14 = sbr.rel (!%p12_p4) target bundleno = 1 (0x1), region = 70 }

</bundles_post_ra>
